<compile_context>
chip_gen: v7x
topology: tpu7x:2x2x1
jax: 0.10.0
libtpu: 0.0.40
codegen_flags: <defaults>
</compile_context>

<pallas_src>
import jax
import jax.numpy as jnp
from jax.experimental import pallas as pl
from jax.experimental.pallas import tpu as pltpu

FEATURES = 800
PADDED = 896          # 7 * 128 — lane-aligned feature dim
EPS = 1e-5


def rosenet_kernel(x_ref, w1_ref, w2_ref, bn_ref, o_ref):
    # x_ref: (B, 896) f32      w1_ref/w2_ref: (896, 896) in (in, out) layout
    # bn_ref: (4, 896) f32 rows = [gamma1, beta1, gamma2, beta2]
    x = x_ref[...]
    h = x.astype(jnp.float32)
    inv_b = jnp.float32(1.0 / x_ref.shape[0])

    # ---- layer1 (bias dropped: cancelled by batch-mean BN) ----------------
    y = jnp.dot(x.astype(w1_ref.dtype), w1_ref[...],
                preferred_element_type=jnp.float32)

    # ---- batch_norm (training stats), one-pass, folded to scale/shift -----
    mean1 = jnp.sum(y, axis=0, keepdims=True) * inv_b
    ex2_1 = jnp.sum(y * y, axis=0, keepdims=True) * inv_b
    var1 = jnp.maximum(ex2_1 - mean1 * mean1, 0.0)
    scale1 = bn_ref[0:1, :] * jax.lax.rsqrt(var1 + EPS)
    shift1 = bn_ref[1:2, :] - mean1 * scale1
    y = jnp.maximum(y * scale1 + shift1, 0.0)          # BN + ReLU

    # ---- layer2 (bias dropped) --------------------------------------------
    y = jnp.dot(y.astype(w2_ref.dtype), w2_ref[...],
                preferred_element_type=jnp.float32)

    # ---- batch_norm_2 + ReLU ----------------------------------------------
    mean2 = jnp.sum(y, axis=0, keepdims=True) * inv_b
    ex2_2 = jnp.sum(y * y, axis=0, keepdims=True) * inv_b
    var2 = jnp.maximum(ex2_2 - mean2 * mean2, 0.0)
    scale2 = bn_ref[2:3, :] * jax.lax.rsqrt(var2 + EPS)
    shift2 = bn_ref[3:4, :] - mean2 * scale2
    y = jnp.maximum(y * scale2 + shift2, 0.0)

    # ---- residual add -------------------------------------------------------
    o_ref[...] = (h + y).astype(o_ref.dtype)


def prepare_params(w1, g1, beta1, w2, g2, beta2, *, weights_dtype=jnp.float32):
    """One-time preprocessing of the module parameters.

    * Transposes PyTorch (out, in) Linear weights to (in, out) and zero-pads
      800 -> 896 on both dims (do this ONCE, not per call).
    * Stacks the BN affine vectors into a single (4, 896) array; padded
      features get gamma=0 / beta=0 so they stay exactly zero in the kernel.
    * Linear biases are intentionally not included: with training-mode BN the
      bias cancels out of the forward pass exactly.
    * weights_dtype=jnp.bfloat16 halves weight DMA bytes on v5e/v6e if the
      accuracy budget allows (default f32 preserves exact module numerics).
    """
    pad_f = PADDED - FEATURES

    def pad_w(w):
        return jnp.pad(w.T.astype(weights_dtype), ((0, pad_f), (0, pad_f)))

    def pad_v(v):
        return jnp.pad(v.astype(jnp.float32), (0, pad_f))

    bn = jnp.stack([pad_v(g1), pad_v(beta1), pad_v(g2), pad_v(beta2)])
    return pad_w(w1), pad_w(w2), bn


def rosenet_block(x, w1_p, w2_p, bn_p):
    """x: (B, 800) f32. w1_p/w2_p/bn_p from prepare_params()."""
    B, F = x.shape
    assert F == FEATURES

    x_pad = jnp.pad(x, ((0, 0), (0, PADDED - FEATURES)))

    vmem = pl.BlockSpec(memory_space=pltpu.MemorySpace.VMEM)
    w_bytes = 2 * PADDED * PADDED * jnp.dtype(w1_p.dtype).itemsize
    cost = pl.CostEstimate(
        flops=2 * 2 * B * PADDED * PADDED,          # two (B,896)x(896,896) matmuls
        transcendentals=0,
        bytes_accessed=w_bytes + 2 * B * PADDED * 4 + 4 * PADDED * 4,
    )

    out = pl.pallas_call(
        rosenet_kernel,
        out_shape=jax.ShapeDtypeStruct((B, PADDED), x.dtype),
        in_specs=[vmem, vmem, vmem, vmem],
        out_specs=vmem,
        compiler_params=pltpu.CompilerParams(vmem_limit_bytes=32 << 20),
        cost_estimate=cost,
    )(x_pad, w1_p, w2_p, bn_p)

    return out[:, :FEATURES]


def _reference(x, w1, b1, g1, beta1, w2, b2, g2, beta2):
    """Pure-JAX reference matching PyTorch training-mode forward (with biases)."""
    h = x
    y = x @ w1.T + b1
    m = y.mean(0); v = ((y - m) ** 2).mean(0)
    y = (y - m) / jnp.sqrt(v + EPS) * g1 + beta1
    y = jnp.maximum(y, 0.0)
    y = y @ w2.T + b2
    m = y.mean(0); v = ((y - m) ** 2).mean(0)
    y = (y - m) / jnp.sqrt(v + EPS) * g2 + beta2
    y = jnp.maximum(y, 0.0)
    return h + y


if __name__ == "__main__":
    key = jax.random.PRNGKey(0)
    kx, kw1, kb1, kw2, kb2 = jax.random.split(key, 5)

    B = 8  # small batch
    x = jax.random.normal(kx, (B, FEATURES), dtype=jnp.float32)

    # PyTorch-Linear-like uniform init (deterministic).
    bound = 1.0 / (FEATURES ** 0.5)
    w1 = jax.random.uniform(kw1, (FEATURES, FEATURES), jnp.float32, -bound, bound)
    b1 = jax.random.uniform(kb1, (FEATURES,), jnp.float32, -bound, bound)
    w2 = jax.random.uniform(kw2, (FEATURES, FEATURES), jnp.float32, -bound, bound)
    b2 = jax.random.uniform(kb2, (FEATURES,), jnp.float32, -bound, bound)
    # BatchNorm affine defaults: gamma=1, beta=0.
    g1 = jnp.ones((FEATURES,), jnp.float32)
    beta1 = jnp.zeros((FEATURES,), jnp.float32)
    g2 = jnp.ones((FEATURES,), jnp.float32)
    beta2 = jnp.zeros((FEATURES,), jnp.float32)

    # One-time parameter prep (transpose + pad + BN stack). Biases are not
    # needed: training-mode BN cancels them exactly.
    w1_p, w2_p, bn_p = prepare_params(w1, g1, beta1, w2, g2, beta2)

    out = rosenet_block(x, w1_p, w2_p, bn_p)
    out = jax.block_until_ready(out)

    ref = _reference(x, w1, b1, g1, beta1, w2, b2, g2, beta2)
    assert out.shape == (B, FEATURES)
    assert jnp.allclose(out, ref, atol=1e-4, rtol=1e-4), "mismatch vs reference"

    print("KERNEL_OK")
</pallas_src>

<mosaic_0001>
module attributes {stable_mosaic.version = 11 : i64} {
  func.func @rosenet_kernel(%arg0: memref<8x896xf32, #tpu.memory_space<vmem>>, %arg1: memref<896x896xf32, #tpu.memory_space<vmem>>, %arg2: memref<896x896xf32, #tpu.memory_space<vmem>>, %arg3: memref<4x896xf32, #tpu.memory_space<vmem>>, %arg4: memref<8x896xf32, #tpu.memory_space<vmem>>) attributes {dimension_semantics = [], scalar_prefetch = 0 : i64, scratch_operands = 0 : i64, tpu.core_type = #tpu.core_type<tc>} {
    %c0 = arith.constant 0 : index
    %c0_0 = arith.constant 0 : index
    %0 = vector.load %arg0[%c0, %c0_0] : memref<8x896xf32, #tpu.memory_space<vmem>>, vector<8x896xf32>
    %c0_1 = arith.constant 0 : index
    %c0_2 = arith.constant 0 : index
    %1 = vector.load %arg1[%c0_1, %c0_2] : memref<896x896xf32, #tpu.memory_space<vmem>>, vector<896x896xf32>
    %cst = arith.constant dense<0.000000e+00> : vector<8x896xf32>
    %2 = tpu.matmul %0, %1, %cst {dimension_numbers = #tpu.dot_dimension_numbers<[1], [0], [0], [1], [0, 0, 1, 1], [], []>} : vector<8x896xf32>, vector<896x896xf32>, vector<8x896xf32> -> vector<8x896xf32>
    %cst_3 = arith.constant dense<0.000000e+00> : vector<896xf32>
    %3 = vector.multi_reduction <add>, %2, %cst_3 [0] : vector<8x896xf32> to vector<896xf32>
    %4 = vector.shape_cast %3 : vector<896xf32> to vector<1x896xf32>
    %cst_4 = arith.constant 1.250000e-01 : f32
    %5 = vector.broadcast %cst_4 : f32 to vector<1x896xf32>
    %6 = arith.mulf %4, %5 : vector<1x896xf32>
    %7 = arith.mulf %2, %2 : vector<8x896xf32>
    %cst_5 = arith.constant dense<0.000000e+00> : vector<896xf32>
    %8 = vector.multi_reduction <add>, %7, %cst_5 [0] : vector<8x896xf32> to vector<896xf32>
    %9 = vector.shape_cast %8 : vector<896xf32> to vector<1x896xf32>
    %cst_6 = arith.constant 1.250000e-01 : f32
    %10 = vector.broadcast %cst_6 : f32 to vector<1x896xf32>
    %11 = arith.mulf %9, %10 : vector<1x896xf32>
    %12 = arith.mulf %6, %6 : vector<1x896xf32>
    %13 = arith.subf %11, %12 : vector<1x896xf32>
    %cst_7 = arith.constant 0.000000e+00 : f32
    %14 = vector.broadcast %cst_7 : f32 to vector<1x896xf32>
    %15 = arith.maximumf %13, %14 : vector<1x896xf32>
    %c0_8 = arith.constant 0 : index
    %c0_9 = arith.constant 0 : index
    %16 = vector.load %arg3[%c0_8, %c0_9] : memref<4x896xf32, #tpu.memory_space<vmem>>, vector<1x896xf32>
    %cst_10 = arith.constant 9.99999974E-6 : f32
    %17 = vector.broadcast %cst_10 : f32 to vector<1x896xf32>
    %18 = arith.addf %15, %17 : vector<1x896xf32>
    %19 = math.rsqrt %18 : vector<1x896xf32>
    %20 = arith.mulf %16, %19 : vector<1x896xf32>
    %c1 = arith.constant 1 : index
    %c0_11 = arith.constant 0 : index
    %21 = vector.load %arg3[%c1, %c0_11] : memref<4x896xf32, #tpu.memory_space<vmem>>, vector<1x896xf32>
    %22 = arith.mulf %6, %20 : vector<1x896xf32>
    %23 = arith.subf %21, %22 : vector<1x896xf32>
    %24 = vector.broadcast %20 : vector<1x896xf32> to vector<8x896xf32>
    %25 = arith.mulf %2, %24 : vector<8x896xf32>
    %26 = vector.broadcast %23 : vector<1x896xf32> to vector<8x896xf32>
    %27 = arith.addf %25, %26 : vector<8x896xf32>
    %cst_12 = arith.constant 0.000000e+00 : f32
    %28 = vector.broadcast %cst_12 : f32 to vector<8x896xf32>
    %29 = arith.maximumf %27, %28 : vector<8x896xf32>
    %c0_13 = arith.constant 0 : index
    %c0_14 = arith.constant 0 : index
    %30 = vector.load %arg2[%c0_13, %c0_14] : memref<896x896xf32, #tpu.memory_space<vmem>>, vector<896x896xf32>
    %cst_15 = arith.constant dense<0.000000e+00> : vector<8x896xf32>
    %31 = tpu.matmul %29, %30, %cst_15 {dimension_numbers = #tpu.dot_dimension_numbers<[1], [0], [0], [1], [0, 0, 1, 1], [], []>} : vector<8x896xf32>, vector<896x896xf32>, vector<8x896xf32> -> vector<8x896xf32>
    %cst_16 = arith.constant dense<0.000000e+00> : vector<896xf32>
    %32 = vector.multi_reduction <add>, %31, %cst_16 [0] : vector<8x896xf32> to vector<896xf32>
    %33 = vector.shape_cast %32 : vector<896xf32> to vector<1x896xf32>
    %cst_17 = arith.constant 1.250000e-01 : f32
    %34 = vector.broadcast %cst_17 : f32 to vector<1x896xf32>
    %35 = arith.mulf %33, %34 : vector<1x896xf32>
    %36 = arith.mulf %31, %31 : vector<8x896xf32>
    %cst_18 = arith.constant dense<0.000000e+00> : vector<896xf32>
    %37 = vector.multi_reduction <add>, %36, %cst_18 [0] : vector<8x896xf32> to vector<896xf32>
    %38 = vector.shape_cast %37 : vector<896xf32> to vector<1x896xf32>
    %cst_19 = arith.constant 1.250000e-01 : f32
    %39 = vector.broadcast %cst_19 : f32 to vector<1x896xf32>
    %40 = arith.mulf %38, %39 : vector<1x896xf32>
    %41 = arith.mulf %35, %35 : vector<1x896xf32>
    %42 = arith.subf %40, %41 : vector<1x896xf32>
    %cst_20 = arith.constant 0.000000e+00 : f32
    %43 = vector.broadcast %cst_20 : f32 to vector<1x896xf32>
    %44 = arith.maximumf %42, %43 : vector<1x896xf32>
    %c2 = arith.constant 2 : index
    %c0_21 = arith.constant 0 : index
    %45 = vector.load %arg3[%c2, %c0_21] : memref<4x896xf32, #tpu.memory_space<vmem>>, vector<1x896xf32>
    %cst_22 = arith.constant 9.99999974E-6 : f32
    %46 = vector.broadcast %cst_22 : f32 to vector<1x896xf32>
    %47 = arith.addf %44, %46 : vector<1x896xf32>
    %48 = math.rsqrt %47 : vector<1x896xf32>
    %49 = arith.mulf %45, %48 : vector<1x896xf32>
    %c3 = arith.constant 3 : index
    %c0_23 = arith.constant 0 : index
    %50 = vector.load %arg3[%c3, %c0_23] : memref<4x896xf32, #tpu.memory_space<vmem>>, vector<1x896xf32>
    %51 = arith.mulf %35, %49 : vector<1x896xf32>
    %52 = arith.subf %50, %51 : vector<1x896xf32>
    %53 = vector.broadcast %49 : vector<1x896xf32> to vector<8x896xf32>
    %54 = arith.mulf %31, %53 : vector<8x896xf32>
    %55 = vector.broadcast %52 : vector<1x896xf32> to vector<8x896xf32>
    %56 = arith.addf %54, %55 : vector<8x896xf32>
    %cst_24 = arith.constant 0.000000e+00 : f32
    %57 = vector.broadcast %cst_24 : f32 to vector<8x896xf32>
    %58 = arith.maximumf %56, %57 : vector<8x896xf32>
    %59 = arith.addf %0, %58 : vector<8x896xf32>
    %c0_25 = arith.constant 0 : index
    %c0_26 = arith.constant 0 : index
    %60 = vector.load %arg4[%c0_25, %c0_26] : memref<8x896xf32, #tpu.memory_space<vmem>>, vector<8x896xf32>
    tpu.vector_store %arg4[%c0_25, %c0_26], %59 {strides = array<i32>} : memref<8x896xf32, #tpu.memory_space<vmem>>, vector<8x896xf32>,
    return
  }
}

</mosaic_0001>

<bundles_post_ra>
// kernel: tpu_custom_call.1
= control target key start
LH: loop header
LB: loop body
LE: loop exit
PB: predicated region body
PF: predicated region fallthrough
CT: control target
= control target key end

     0   :  { %9 = vsyncpa [#allocation3], 0  ;;  %s7213_s0 = inlined_call_operand.hbm [shape: f32[8,896], index: 0, kind: input, shape index: {}]   ;;  %s7214_s1 = inlined_call_operand.hbm [shape: f32[896,896], index: 1, kind: input, shape index: {}]   ;;  %s7215_s2 = inlined_call_operand.hbm [shape: f32[896,896], index: 2, kind: input, shape index: {}]   ;;  %s7216_s3 = inlined_call_operand.hbm [shape: f32[4,896], index: 3, kind: input, shape index: {}]   ;;  %s7217_s4 = inlined_call_operand.hbm [shape: f32[8,896], index: 4, kind: output, shape index: {}]  }
   0x1   :  { %10 = vsyncpa [#allocation6], 0 }
   0x2   :  { %11 = vsyncpa [#allocation9], 0 }
   0x3   :  { %12 = vsyncpa [#allocation4], 0  ;;  %s6759_s15 = smov [#allocation5]   ;;  %s6641_s19 = scalar_lea.hbm %s7214_s1, 100352 }
   0x4   :  { %s28_s16 = sshll.u32 %s6759_s15, 4  ;;  %p6642_p0 = scmp.ne.s32.totalorder %s7214_s1, %s6641_s19  ;;  %s29_s16 = int_to_ptr.vmem [resolvable:$true] %s28_s16 }
   0x5   :  { %p6645_p1 = scmp.lt.u32.totalorder %s6641_s19, %s7214_s1 }
   0x7   :  { %p6647_p2 = pnand %p6645_p1, %p6642_p0 }
   0x9   :  { %6650 = shalt.err (!%p6647_p2)
}
   0xa   :  { %s6651_s24 = scalar_lea.vmem %s29_s16, 100352  ;;  %p6656_p4 = scmp.lt.s32.totalorder %s29_s16, %s29_s16 }
   0xb   :  { %p6652_p3 = scmp.ne.s32.totalorder %s29_s16, %s6651_s24  ;;  %p6657_p5 = scmp.lt.s32.totalorder %s6651_s24, %s6651_s24 }
   0xd   :  { %p6658_p6 = por %p6657_p5, %p6656_p4 }
   0xf   :  { %p6659_p7 = pnand %p6658_p6, %p6652_p3 }
  0x11   :  { %6662 = shalt.err (!%p6659_p7)
}
  0x12   :  { %s6760_s25 = smov 896   ;;  %s6761_s26 = smov 56  }
  0x13   :  { %34 = dma.hbm_to_vmem [thread:$0]  %s7214_s1, 100352, %s29_s16, [#allocation6], %s6760_s25, %s6760_s25, %s6761_s26  }
  0x14   :  { %s6762_s29 = smov [#allocation2]   ;;  %s6763_s5 = smov [#allocation7]  }
  0x15   :  { %s19_s30 = sshll.u32 %s6762_s29, 4  ;;  %s40_s6 = sshll.u32 %s6763_s5, 4  ;;  %s20_s30 = int_to_ptr.vmem [resolvable:$true] %s19_s30  ;;  %s41_s6 = int_to_ptr.vmem [resolvable:$true] %s40_s6 }
  0x16   :  { %s6663_s9 = scalar_lea.hbm %s7213_s0, 896 }
  0x17   :  { %p6664_p8 = scmp.ne.s32.totalorder %s7213_s0, %s6663_s9  ;;  %p6667_p9 = scmp.lt.u32.totalorder %s6663_s9, %s7213_s0 }
  0x19   :  { %p6669_p10 = pnand %p6667_p9, %p6664_p8 }
  0x1b   :  { %6672 = shalt.err (!%p6669_p10)
}
  0x1c   :  { %s6673_s1 = scalar_lea.vmem %s20_s30, 896  ;;  %p6678_p12 = scmp.lt.s32.totalorder %s20_s30, %s20_s30 }
  0x1d   :  { %p6674_p11 = scmp.ne.s32.totalorder %s20_s30, %s6673_s1  ;;  %p6679_p13 = scmp.lt.s32.totalorder %s6673_s1, %s6673_s1 }
  0x1f   :  { %p6680_p0 = por %p6679_p13, %p6678_p12 }
  0x21   :  { %p6681_p1 = pnand %p6680_p0, %p6674_p11 }
  0x23   :  { %6684 = shalt.err (!%p6681_p1)
}
  0x24   :  { %22 = dma.hbm_to_vmem [thread:$0]  %s7213_s0, 896, %s20_s30, [#allocation3]  }
  0x25   :  { %s6685_s18 = scalar_lea.hbm %s7215_s2, 100352 }
  0x26   :  { %p6686_p2 = scmp.ne.s32.totalorder %s7215_s2, %s6685_s18  ;;  %p6689_p3 = scmp.lt.u32.totalorder %s6685_s18, %s7215_s2 }
  0x28   :  { %p6691_p4 = pnand %p6689_p3, %p6686_p2 }
  0x2a   :  { %6694 = shalt.err (!%p6691_p4)
}
  0x2b   :  { %s6695_s23 = scalar_lea.vmem %s41_s6, 100352  ;;  %p6700_p6 = scmp.lt.s32.totalorder %s41_s6, %s41_s6 }
  0x2c   :  { %p6696_p5 = scmp.ne.s32.totalorder %s41_s6, %s6695_s23  ;;  %p6701_p7 = scmp.lt.s32.totalorder %s6695_s23, %s6695_s23 }
  0x2e   :  { %p6702_p8 = por %p6701_p7, %p6700_p6 }
  0x30   :  { %p6703_p9 = pnand %p6702_p8, %p6696_p5 }
  0x32   :  { %6706 = shalt.err (!%p6703_p9)
}
  0x33   :  { %46 = dma.hbm_to_vmem [thread:$0]  %s7215_s2, 100352, %s41_s6, [#allocation6], %s6760_s25, %s6760_s25, %s6761_s26  }
  0x34   :  { %s6764_s27 = smov [#allocation8]   ;;  %s6707_s5 = scalar_lea.hbm %s7216_s3, 448 }
  0x35   :  { %s53_s28 = sshll.u32 %s6764_s27, 4  ;;  %p6708_p10 = scmp.ne.s32.totalorder %s7216_s3, %s6707_s5  ;;  %s54_s28 = int_to_ptr.vmem [resolvable:$true] %s53_s28 }
  0x36   :  { %p6711_p11 = scmp.lt.u32.totalorder %s6707_s5, %s7216_s3 }
  0x38   :  { %p6713_p12 = pnand %p6711_p11, %p6708_p10 }
  0x3a   :  { %6716 = shalt.err (!%p6713_p12)
}
  0x3b   :  { %s6717_s11 = scalar_lea.vmem %s54_s28, 448  ;;  %p6722_p0 = scmp.lt.s32.totalorder %s54_s28, %s54_s28 }
  0x3c   :  { %p6718_p13 = scmp.ne.s32.totalorder %s54_s28, %s6717_s11  ;;  %p6723_p1 = scmp.lt.s32.totalorder %s6717_s11, %s6717_s11 }
  0x3e   :  { %p6724_p2 = por %p6723_p1, %p6722_p0 }
  0x40   :  { %p6725_p3 = pnand %p6724_p2, %p6718_p13 }
  0x42   :  { %6728 = shalt.err (!%p6725_p3)
}
  0x43   :  { %56 = dma.hbm_to_vmem [thread:$0]  %s7216_s3, 448, %s54_s28, [#allocation9]  }
  0x44   :  { %6751 = dma.done.wait [#allocation3], 896  }
  0x45   :  { %6752 = vsyncadd [#allocation3], 4294966400 }
  0x46   :  { %6753 = dma.done.wait [#allocation6], 200704  }
  0x47   :  { %6754 = vsyncadd [#allocation6], 4294766592 }
  0x48   :  { %6755 = dma.done.wait [#allocation9], 448  }
  0x49   :  { %6756 = vsyncadd [#allocation9], 4294966848  ;;  %v77_v0 = vld [vmem:[#allocation5 + $0x8] sm:$0xff]  ;;  %v84_v1 = vld [vmem:[#allocation5 + $0x40] sm:$0xff]  ;;  %vm6767_vm0 = vmmov 0   ;;  %s6769_s3 = smov [#allocation10]  }
  0x4a   :  { %v79_v2 = vld [vmem:[#allocation5 + $0x18] sm:$0xff]  ;;  %v4968_v3 = vpack.c.bf16 %v84_v1, %v77_v0  ;;  %v86_v4 = vld [vmem:[#allocation5 + $0x50] sm:$0xff]  ;;  %v76_v5 = vld [vmem:[#allocation5] sm:$0xff]  ;;  %s4643_s26 = sshll.u32 %s6769_s3, 4  ;;  %s4644_s26 = int_to_ptr.vmem [resolvable:$true] %s4643_s26 }
  0x4b   :  { %v83_v6 = vld [vmem:[#allocation5 + $0x38] sm:$0xff]  ;;  %v5192_v7 = vpack.c.bf16 %v86_v4, %v79_v2  ;;  %v78_v9 = vld [vmem:[#allocation5 + $0x10] sm:$0xff]  ;;  %v85_v10 = vld [vmem:[#allocation5 + $0x48] sm:$0xff]  ;;  %s6729_s6 = scalar_lea.vmem %s4644_s26, 896  ;;  %p6734_p5 = scmp.lt.s32.totalorder %s4644_s26, %s4644_s26 }
  0x4c   :  { %v4970_v8 = vpack.c.bf16 %v83_v6, %v76_v5  ;;  %v91_v11 = vld [vmem:[#allocation5 + $0x78] sm:$0xff]  ;;  %4969 = vmatprep.subr.bf16.mxu0 %v4968_v3  ;;  %v5194_v12 = vpack.c.bf16 %v85_v10, %v78_v9  ;;  %v98_v13 = vld [vmem:[#allocation5 + $0xb0] sm:$0xff]  ;;  %v93_v14 = vld [vmem:[#allocation5 + $0x88] sm:$0xff]  ;;  %p6730_p4 = scmp.ne.s32.totalorder %s4644_s26, %s6729_s6  ;;  %p6735_p6 = scmp.lt.s32.totalorder %s6729_s6, %s6729_s6 }
  0x4d   :  { %v100_v15 = vld [vmem:[#allocation5 + $0xc0] sm:$0xff]  ;;  %5193 = vmatprep.subr.bf16.mxu1 %v5192_v7  ;;  %v4972_v16 = vpack.c.bf16 %v98_v13, %v91_v11  ;;  %v90_v18 = vld [vmem:[#allocation5 + $0x70] sm:$0xff]  ;;  %v97_v19 = vld [vmem:[#allocation5 + $0xa8] sm:$0xff] }
  0x4e   :  { %4971 = vmatpush1.bf16.msra.mxu0 %v4970_v8  ;;  %v5196_v17 = vpack.c.bf16 %v100_v15, %v93_v14  ;;  %v92_v20 = vld [vmem:[#allocation5 + $0x80] sm:$0xff]  ;;  %5195 = vmatpush1.bf16.msra.mxu1 %v5194_v12  ;;  %v4974_v21 = vpack.c.bf16 %v97_v19, %v90_v18  ;;  %v99_v22 = vld [vmem:[#allocation5 + $0xb8] sm:$0xff]  ;;  %v105_v23 = vld [vmem:[#allocation5 + $0xe8] sm:$0xff]  ;;  %p6736_p7 = por %p6735_p6, %p6734_p5 }
  0x4f   :  { %v112_v24 = vld [vmem:[#allocation5 + $0x120] sm:$0xff]  ;;  %4973 = vmatprep.subr.bf16.mxu0 %v4972_v16  ;;  %v5198_v25 = vpack.c.bf16 %v99_v22, %v92_v20  ;;  %v107_v27 = vld [vmem:[#allocation5 + $0xf8] sm:$0xff]  ;;  %v114_v28 = vld [vmem:[#allocation5 + $0x130] sm:$0xff] }
  0x50   :  { %5197 = vmatprep.subr.bf16.mxu1 %v5196_v17  ;;  %v4976_v26 = vpack.c.bf16 %v112_v24, %v105_v23  ;;  %v104_v29 = vld [vmem:[#allocation5 + $0xe0] sm:$0xff]  ;;  %v5200_v30 = vpack.c.bf16 %v114_v28, %v107_v27  ;;  %v111_v31 = vld [vmem:[#allocation5 + $0x118] sm:$0xff]  ;;  %v106_v32 = vld [vmem:[#allocation5 + $0xf0] sm:$0xff]  ;;  %p6737_p8 = pnand %p6736_p7, %p6730_p4 }
  0x51   :  { %v113_v33 = vld [vmem:[#allocation5 + $0x128] sm:$0xff]  ;;  %v4978_v34 = vpack.c.bf16 %v111_v31, %v104_v29  ;;  %v119_v35 = vld [vmem:[#allocation5 + $0x158] sm:$0xff]  ;;  %v126_v36 = vld [vmem:[#allocation5 + $0x190] sm:$0xff] }
  0x52   :  { %4975 = vmatpush1.bf16.msra.mxu0 %v4974_v21  ;;  %v121_v37 = vld [vmem:[#allocation5 + $0x168] sm:$0xff]  ;;  %5199 = vmatpush1.bf16.msra.mxu1 %v5198_v25  ;;  %v5202_v38 = vpack.c.bf16 %v113_v33, %v106_v32  ;;  %v4980_v39 = vpack.c.bf16 %v126_v36, %v119_v35  ;;  %v128_v40 = vld [vmem:[#allocation5 + $0x1a0] sm:$0xff]  ;;  %v118_v41 = vld [vmem:[#allocation5 + $0x150] sm:$0xff] }
  0x53   :  { %4977 = vmatprep.subr.bf16.mxu0 %v4976_v26  ;;  %v125_v42 = vld [vmem:[#allocation5 + $0x188] sm:$0xff]  ;;  %5201 = vmatprep.subr.bf16.mxu1 %v5200_v30  ;;  %v5204_v43 = vpack.c.bf16 %v128_v40, %v121_v37  ;;  %v120_v44 = vld [vmem:[#allocation5 + $0x160] sm:$0xff]  ;;  %v127_v45 = vld [vmem:[#allocation5 + $0x198] sm:$0xff] }
  0x54   :  { %v133_v46 = vld [vmem:[#allocation5 + $0x1c8] sm:$0xff]  ;;  %v140_v47 = vld [vmem:[#allocation5 + $0x200] sm:$0xff]  ;;  %v135_v48 = vld [vmem:[#allocation5 + $0x1d8] sm:$0xff]  ;;  %v4982_v50 = vpack.c.bf16 %v125_v42, %v118_v41  ;;  %v5206_v51 = vpack.c.bf16 %v127_v45, %v120_v44 }
  0x55   :  { %v142_v49 = vld [vmem:[#allocation5 + $0x210] sm:$0xff]  ;;  %v4984_v52 = vpack.c.bf16 %v140_v47, %v133_v46  ;;  %v132_v53 = vld [vmem:[#allocation5 + $0x1c0] sm:$0xff]  ;;  %v139_v54 = vld [vmem:[#allocation5 + $0x1f8] sm:$0xff] }
  0x56   :  { %4979 = vmatpush1.bf16.msra.mxu0 %v4978_v34  ;;  %5203 = vmatpush1.bf16.msra.mxu1 %v5202_v38  ;;  %v134_v55 = vld [vmem:[#allocation5 + $0x1d0] sm:$0xff]  ;;  %v5208_v56 = vpack.c.bf16 %v142_v49, %v135_v48  ;;  %v141_v57 = vld [vmem:[#allocation5 + $0x208] sm:$0xff]  ;;  %v147_v58 = vld [vmem:[#allocation5 + $0x238] sm:$0xff]  ;;  %v4986_v62 = vpack.c.bf16 %v139_v54, %v132_v53 }
  0x57   :  { %4981 = vmatprep.subr.bf16.mxu0 %v4980_v39  ;;  %5205 = vmatprep.subr.bf16.mxu1 %v5204_v43  ;;  %v154_v59 = vld [vmem:[#allocation5 + $0x270] sm:$0xff]  ;;  %v149_v60 = vld [vmem:[#allocation5 + $0x248] sm:$0xff]  ;;  %v156_v61 = vld [vmem:[#allocation5 + $0x280] sm:$0xff]  ;;  %v5210_v63 = vpack.c.bf16 %v141_v57, %v134_v55 }
  0x58   :  { %v4988_v0 = vpack.c.bf16 %v154_v59, %v147_v58  ;;  %v146_v1 = vld [vmem:[#allocation5 + $0x230] sm:$0xff]  ;;  %v153_v2 = vld [vmem:[#allocation5 + $0x268] sm:$0xff]  ;;  %v148_v3 = vld [vmem:[#allocation5 + $0x240] sm:$0xff]  ;;  %v5212_v4 = vpack.c.bf16 %v156_v61, %v149_v60 }
  0x59   :  { %v155_v5 = vld [vmem:[#allocation5 + $0x278] sm:$0xff]  ;;  %v161_v6 = vld [vmem:[#allocation5 + $0x2a8] sm:$0xff]  ;;  %v168_v7 = vld [vmem:[#allocation5 + $0x2e0] sm:$0xff]  ;;  %v4990_v10 = vpack.c.bf16 %v153_v2, %v146_v1 }
  0x5a   :  { %4983 = vmatpush1.bf16.msra.mxu0 %v4982_v50  ;;  %5207 = vmatpush1.bf16.msra.mxu1 %v5206_v51  ;;  %v163_v8 = vld [vmem:[#allocation5 + $0x2b8] sm:$0xff]  ;;  %v170_v9 = vld [vmem:[#allocation5 + $0x2f0] sm:$0xff]  ;;  %v5214_v11 = vpack.c.bf16 %v155_v5, %v148_v3  ;;  %v4992_v12 = vpack.c.bf16 %v168_v7, %v161_v6  ;;  %v160_v13 = vld [vmem:[#allocation5 + $0x2a0] sm:$0xff] }
  0x5b   :  { %4985 = vmatprep.subr.bf16.mxu0 %v4984_v52  ;;  %5209 = vmatprep.subr.bf16.mxu1 %v5208_v56  ;;  %v167_v14 = vld [vmem:[#allocation5 + $0x2d8] sm:$0xff]  ;;  %v162_v15 = vld [vmem:[#allocation5 + $0x2b0] sm:$0xff]  ;;  %v5216_v16 = vpack.c.bf16 %v170_v9, %v163_v8  ;;  %v169_v17 = vld [vmem:[#allocation5 + $0x2e8] sm:$0xff] }
  0x5c   :  { %v175_v18 = vld [vmem:[#allocation5 + $0x318] sm:$0xff]  ;;  %v182_v19 = vld [vmem:[#allocation5 + $0x350] sm:$0xff]  ;;  %v177_v20 = vld [vmem:[#allocation5 + $0x328] sm:$0xff]  ;;  %v4994_v22 = vpack.c.bf16 %v167_v14, %v160_v13  ;;  %v5218_v23 = vpack.c.bf16 %v169_v17, %v162_v15 }
  0x5d   :  { %v184_v21 = vld [vmem:[#allocation5 + $0x360] sm:$0xff]  ;;  %v4996_v24 = vpack.c.bf16 %v182_v19, %v175_v18  ;;  %v174_v25 = vld [vmem:[#allocation5 + $0x310] sm:$0xff]  ;;  %v181_v26 = vld [vmem:[#allocation5 + $0x348] sm:$0xff] }
  0x5e   :  { %4987 = vmatpush1.bf16.msra.mxu0 %v4986_v62  ;;  %5211 = vmatpush1.bf16.msra.mxu1 %v5210_v63  ;;  %v176_v27 = vld [vmem:[#allocation5 + $0x320] sm:$0xff]  ;;  %v5220_v28 = vpack.c.bf16 %v184_v21, %v177_v20  ;;  %v183_v29 = vld [vmem:[#allocation5 + $0x358] sm:$0xff]  ;;  %v189_v30 = vld [vmem:[#allocation5 + $0x388] sm:$0xff]  ;;  %v4998_v34 = vpack.c.bf16 %v181_v26, %v174_v25 }
  0x5f   :  { %4989 = vmatprep.subr.bf16.mxu0 %v4988_v0  ;;  %5213 = vmatprep.subr.bf16.mxu1 %v5212_v4  ;;  %v196_v31 = vld [vmem:[#allocation5 + $0x3c0] sm:$0xff]  ;;  %v191_v32 = vld [vmem:[#allocation5 + $0x398] sm:$0xff]  ;;  %v198_v33 = vld [vmem:[#allocation5 + $0x3d0] sm:$0xff]  ;;  %v5222_v35 = vpack.c.bf16 %v183_v29, %v176_v27 }
  0x60   :  { %v5000_v36 = vpack.c.bf16 %v196_v31, %v189_v30  ;;  %v188_v37 = vld [vmem:[#allocation5 + $0x380] sm:$0xff]  ;;  %v195_v38 = vld [vmem:[#allocation5 + $0x3b8] sm:$0xff]  ;;  %v190_v39 = vld [vmem:[#allocation5 + $0x390] sm:$0xff]  ;;  %v5224_v40 = vpack.c.bf16 %v198_v33, %v191_v32 }
  0x61   :  { %v197_v41 = vld [vmem:[#allocation5 + $0x3c8] sm:$0xff]  ;;  %v203_v42 = vld [vmem:[#allocation5 + $0x3f8] sm:$0xff]  ;;  %v210_v43 = vld [vmem:[#allocation5 + $0x430] sm:$0xff]  ;;  %v5002_v46 = vpack.c.bf16 %v195_v38, %v188_v37 }
  0x62   :  { %4991 = vmatpush1.bf16.msra.mxu0 %v4990_v10  ;;  %5215 = vmatpush1.bf16.msra.mxu1 %v5214_v11  ;;  %v205_v44 = vld [vmem:[#allocation5 + $0x408] sm:$0xff]  ;;  %v212_v45 = vld [vmem:[#allocation5 + $0x440] sm:$0xff]  ;;  %v5226_v47 = vpack.c.bf16 %v197_v41, %v190_v39  ;;  %v5004_v48 = vpack.c.bf16 %v210_v43, %v203_v42  ;;  %v202_v49 = vld [vmem:[#allocation5 + $0x3f0] sm:$0xff] }
  0x63   :  { %4993 = vmatprep.subr.bf16.mxu0 %v4992_v12  ;;  %5217 = vmatprep.subr.bf16.mxu1 %v5216_v16  ;;  %v209_v50 = vld [vmem:[#allocation5 + $0x428] sm:$0xff]  ;;  %v204_v51 = vld [vmem:[#allocation5 + $0x400] sm:$0xff]  ;;  %v5228_v52 = vpack.c.bf16 %v212_v45, %v205_v44  ;;  %v211_v53 = vld [vmem:[#allocation5 + $0x438] sm:$0xff] }
  0x64   :  { %v217_v54 = vld [vmem:[#allocation5 + $0x468] sm:$0xff]  ;;  %v224_v55 = vld [vmem:[#allocation5 + $0x4a0] sm:$0xff]  ;;  %v219_v56 = vld [vmem:[#allocation5 + $0x478] sm:$0xff]  ;;  %v5006_v58 = vpack.c.bf16 %v209_v50, %v202_v49  ;;  %v5230_v59 = vpack.c.bf16 %v211_v53, %v204_v51 }
  0x65   :  { %v226_v57 = vld [vmem:[#allocation5 + $0x4b0] sm:$0xff]  ;;  %v5008_v60 = vpack.c.bf16 %v224_v55, %v217_v54  ;;  %v216_v61 = vld [vmem:[#allocation5 + $0x460] sm:$0xff]  ;;  %v223_v62 = vld [vmem:[#allocation5 + $0x498] sm:$0xff] }
  0x66   :  { %4995 = vmatpush1.bf16.msra.mxu0 %v4994_v22  ;;  %5219 = vmatpush1.bf16.msra.mxu1 %v5218_v23  ;;  %v218_v63 = vld [vmem:[#allocation5 + $0x470] sm:$0xff]  ;;  %v5232_v0 = vpack.c.bf16 %v226_v57, %v219_v56  ;;  %v225_v1 = vld [vmem:[#allocation5 + $0x4a8] sm:$0xff]  ;;  %v231_v2 = vld [vmem:[#allocation5 + $0x4d8] sm:$0xff]  ;;  %v5010_v6 = vpack.c.bf16 %v223_v62, %v216_v61 }
  0x67   :  { %4997 = vmatprep.subr.bf16.mxu0 %v4996_v24  ;;  %5221 = vmatprep.subr.bf16.mxu1 %v5220_v28  ;;  %v238_v3 = vld [vmem:[#allocation5 + $0x510] sm:$0xff]  ;;  %v233_v4 = vld [vmem:[#allocation5 + $0x4e8] sm:$0xff]  ;;  %v240_v5 = vld [vmem:[#allocation5 + $0x520] sm:$0xff]  ;;  %v5234_v8 = vpack.c.bf16 %v225_v1, %v218_v63 }
  0x68   :  { %v230_v7 = vld [vmem:[#allocation5 + $0x4d0] sm:$0xff]  ;;  %v5012_v9 = vpack.c.bf16 %v238_v3, %v231_v2  ;;  %v237_v10 = vld [vmem:[#allocation5 + $0x508] sm:$0xff]  ;;  %v232_v11 = vld [vmem:[#allocation5 + $0x4e0] sm:$0xff]  ;;  %v5236_v13 = vpack.c.bf16 %v240_v5, %v233_v4 }
  0x69   :  { %v239_v12 = vld [vmem:[#allocation5 + $0x518] sm:$0xff]  ;;  %v245_v14 = vld [vmem:[#allocation5 + $0x548] sm:$0xff]  ;;  %v252_v15 = vld [vmem:[#allocation5 + $0x580] sm:$0xff]  ;;  %v5014_v19 = vpack.c.bf16 %v237_v10, %v230_v7 }
  0x6a   :  { %4999 = vmatpush1.bf16.msra.mxu0 %v4998_v34  ;;  %5223 = vmatpush1.bf16.msra.mxu1 %v5222_v35  ;;  %v70_v16 = vld [vmem:[#allocation2 + $0x8] sm:$0xff]  ;;  %v247_v17 = vld [vmem:[#allocation5 + $0x558] sm:$0xff]  ;;  %v5238_v20 = vpack.c.bf16 %v239_v12, %v232_v11  ;;  %v5016_v21 = vpack.c.bf16 %v252_v15, %v245_v14  ;;  %v244_v22 = vld [vmem:[#allocation5 + $0x540] sm:$0xff] }
  0x6b   :  { %5001 = vmatprep.subr.bf16.mxu0 %v5000_v36  ;;  %5225 = vmatprep.subr.bf16.mxu1 %v5224_v40  ;;  %v254_v18 = vld [vmem:[#allocation5 + $0x590] sm:$0xff]  ;;  %v251_v23 = vld [vmem:[#allocation5 + $0x578] sm:$0xff]  ;;  %v253_v26 = vld [vmem:[#allocation5 + $0x588] sm:$0xff] }
  0x6c   :  { %924 = vmatprep.mubr.f32.mxu0 %v70_v16  ;;  %1208 = vmatprep.mubr.f32.mxu1 %v70_v16  ;;  %v246_v24 = vld [vmem:[#allocation5 + $0x550] sm:$0xff]  ;;  %v5240_v25 = vpack.c.bf16 %v254_v18, %v247_v17  ;;  %v259_v27 = vld [vmem:[#allocation5 + $0x5b8] sm:$0xff]  ;;  %v261_v29 = vld [vmem:[#allocation5 + $0x5c8] sm:$0xff]  ;;  %v5018_v31 = vpack.c.bf16 %v251_v23, %v244_v22 }
  0x6d   :  { %v266_v28 = vld [vmem:[#allocation5 + $0x5f0] sm:$0xff]  ;;  %v268_v30 = vld [vmem:[#allocation5 + $0x600] sm:$0xff]  ;;  %v5242_v32 = vpack.c.bf16 %v253_v26, %v246_v24  ;;  %v265_v35 = vld [vmem:[#allocation5 + $0x5e8] sm:$0xff] }
  0x6e   :  { %5003 = vmatpush1.bf16.msra.mxu0 %v5002_v46  ;;  %5227 = vmatpush1.bf16.msra.mxu1 %v5226_v47  ;;  %v5020_v33 = vpack.c.bf16 %v266_v28, %v259_v27  ;;  %v258_v34 = vld [vmem:[#allocation5 + $0x5b0] sm:$0xff]  ;;  %v260_v36 = vld [vmem:[#allocation5 + $0x5c0] sm:$0xff]  ;;  %v5244_v37 = vpack.c.bf16 %v268_v30, %v261_v29  ;;  %v267_v38 = vld [vmem:[#allocation5 + $0x5f8] sm:$0xff] }
  0x6f   :  { %5005 = vmatprep.subr.bf16.mxu0 %v5004_v48  ;;  %5229 = vmatprep.subr.bf16.mxu1 %v5228_v52  ;;  %v273_v39 = vld [vmem:[#allocation5 + $0x628] sm:$0xff]  ;;  %v280_v40 = vld [vmem:[#allocation5 + $0x660] sm:$0xff]  ;;  %v275_v41 = vld [vmem:[#allocation5 + $0x638] sm:$0xff]  ;;  %v5022_v43 = vpack.c.bf16 %v265_v35, %v258_v34  ;;  %v5246_v44 = vpack.c.bf16 %v267_v38, %v260_v36 }
  0x70   :  { %v282_v42 = vld [vmem:[#allocation5 + $0x670] sm:$0xff]  ;;  %v5024_v45 = vpack.c.bf16 %v280_v40, %v273_v39  ;;  %v272_v46 = vld [vmem:[#allocation5 + $0x620] sm:$0xff]  ;;  %v279_v47 = vld [vmem:[#allocation5 + $0x658] sm:$0xff] }
  0x71   :  { %v274_v48 = vld [vmem:[#allocation5 + $0x630] sm:$0xff]  ;;  %v5248_v49 = vpack.c.bf16 %v282_v42, %v275_v41  ;;  %v281_v50 = vld [vmem:[#allocation5 + $0x668] sm:$0xff]  ;;  %v287_v51 = vld [vmem:[#allocation5 + $0x698] sm:$0xff]  ;;  %v5026_v55 = vpack.c.bf16 %v279_v47, %v272_v46 }
  0x72   :  { %5007 = vmatpush1.bf16.msra.mxu0 %v5006_v58  ;;  %5231 = vmatpush1.bf16.msra.mxu1 %v5230_v59  ;;  %v294_v52 = vld [vmem:[#allocation5 + $0x6d0] sm:$0xff]  ;;  %v289_v53 = vld [vmem:[#allocation5 + $0x6a8] sm:$0xff]  ;;  %v296_v54 = vld [vmem:[#allocation5 + $0x6e0] sm:$0xff]  ;;  %v5250_v56 = vpack.c.bf16 %v281_v50, %v274_v48 }
  0x73   :  { %5009 = vmatprep.subr.bf16.mxu0 %v5008_v60  ;;  %5233 = vmatprep.subr.bf16.mxu1 %v5232_v0  ;;  %v5028_v57 = vpack.c.bf16 %v294_v52, %v287_v51  ;;  %v286_v58 = vld [vmem:[#allocation5 + $0x690] sm:$0xff]  ;;  %v293_v59 = vld [vmem:[#allocation5 + $0x6c8] sm:$0xff]  ;;  %v288_v60 = vld [vmem:[#allocation5 + $0x6a0] sm:$0xff]  ;;  %v5252_v61 = vpack.c.bf16 %v296_v54, %v289_v53 }
  0x74   :  { %v295_v62 = vld [vmem:[#allocation5 + $0x6d8] sm:$0xff]  ;;  %v301_v63 = vld [vmem:[#allocation5 + $0x708] sm:$0xff]  ;;  %v308_v0 = vld [vmem:[#allocation5 + $0x740] sm:$0xff]  ;;  %v5030_v3 = vpack.c.bf16 %v293_v59, %v286_v58 }
  0x75   :  { %v303_v1 = vld [vmem:[#allocation5 + $0x718] sm:$0xff]  ;;  %v310_v2 = vld [vmem:[#allocation5 + $0x750] sm:$0xff]  ;;  %v5254_v4 = vpack.c.bf16 %v295_v62, %v288_v60  ;;  %v5032_v5 = vpack.c.bf16 %v308_v0, %v301_v63  ;;  %v309_v10 = vld [vmem:[#allocation5 + $0x748] sm:$0xff] }
  0x76   :  { %5011 = vmatpush1.bf16.msra.mxu0 %v5010_v6  ;;  %5235 = vmatpush1.bf16.msra.mxu1 %v5234_v8  ;;  %v300_v6 = vld [vmem:[#allocation5 + $0x700] sm:$0xff]  ;;  %v307_v7 = vld [vmem:[#allocation5 + $0x738] sm:$0xff]  ;;  %v302_v8 = vld [vmem:[#allocation5 + $0x710] sm:$0xff] }
  0x77   :  { %5013 = vmatprep.subr.bf16.mxu0 %v5012_v9  ;;  %5237 = vmatprep.subr.bf16.mxu1 %v5236_v13  ;;  %v5256_v9 = vpack.c.bf16 %v310_v2, %v303_v1  ;;  %v315_v11 = vld [vmem:[#allocation5 + $0x778] sm:$0xff]  ;;  %v322_v12 = vld [vmem:[#allocation5 + $0x7b0] sm:$0xff]  ;;  %v317_v13 = vld [vmem:[#allocation5 + $0x788] sm:$0xff]  ;;  %v5034_v16 = vpack.c.bf16 %v307_v7, %v300_v6  ;;  %v5258_v17 = vpack.c.bf16 %v309_v10, %v302_v8 }
  0x78   :  { %v324_v14 = vld [vmem:[#allocation5 + $0x7c0] sm:$0xff]  ;;  %v69_v15 = vld [vmem:[#allocation2] sm:$0xff]  ;;  %v5036_v18 = vpack.c.bf16 %v322_v12, %v315_v11  ;;  %v323_v23 = vld [vmem:[#allocation5 + $0x7b8] sm:$0xff] }
  0x79   :  { %v5260_v22 = vpack.c.bf16 %v324_v14, %v317_v13  ;;  %v329_v24 = vld [vmem:[#allocation5 + $0x7e8] sm:$0xff]  ;;  %v331_v26 = vld [vmem:[#allocation5 + $0x7f8] sm:$0xff]  ;;  %v338_v27 = vld [vmem:[#allocation5 + $0x830] sm:$0xff] }
  0x7a   :  { %5015 = vmatpush1.bf16.msra.mxu0 %v5014_v19  ;;  %5239 = vmatpush1.bf16.msra.mxu1 %v5238_v20  ;;  %v314_v19 = vld [vmem:[#allocation5 + $0x770] sm:$0xff]  ;;  %v321_v20 = vld [vmem:[#allocation5 + $0x7a8] sm:$0xff]  ;;  %v5264_v34 = vpack.c.bf16 %v338_v27, %v331_v26  ;;  %v343_v36 = vld [vmem:[#allocation5 + $0x858] sm:$0xff] }
  0x7b   :  { %5017 = vmatprep.subr.bf16.mxu0 %v5016_v21  ;;  %5241 = vmatprep.subr.bf16.mxu1 %v5240_v25  ;;  %v316_v21 = vld [vmem:[#allocation5 + $0x780] sm:$0xff]  ;;  %v5038_v28 = vpack.c.bf16 %v321_v20, %v314_v19  ;;  %v337_v35 = vld [vmem:[#allocation5 + $0x828] sm:$0xff]  ;;  %v351_v47 = vld [vmem:[#allocation5 + $0x898] sm:$0xff] }
  0x7c   :  { %v336_v25 = vld [vmem:[#allocation5 + $0x820] sm:$0xff]  ;;  %v5262_v29 = vpack.c.bf16 %v323_v23, %v316_v21  ;;  %v345_v38 = vld [vmem:[#allocation5 + $0x868] sm:$0xff]  ;;  %v359_v50 = vld [vmem:[#allocation5 + $0x8d8] sm:$0xff] }
  0x7d   :  { %v5040_v30 = vpack.c.bf16 %v336_v25, %v329_v24  ;;  %v352_v39 = vld [vmem:[#allocation5 + $0x8a0] sm:$0xff]  ;;  %v357_v48 = vld [vmem:[#allocation5 + $0x8c8] sm:$0xff]  ;;  %v366_v51 = vld [vmem:[#allocation5 + $0x910] sm:$0xff] }
  0x7e   :  { %5019 = vmatpush1.bf16.msra.mxu0 %v5018_v31  ;;  %5243 = vmatpush1.bf16.msra.mxu1 %v5242_v32  ;;  %v328_v31 = vld [vmem:[#allocation5 + $0x7e0] sm:$0xff]  ;;  %v335_v32 = vld [vmem:[#allocation5 + $0x818] sm:$0xff]  ;;  %v5268_v46 = vpack.c.bf16 %v352_v39, %v345_v38  ;;  %v5272_v58 = vpack.c.bf16 %v366_v51, %v359_v50  ;;  %v365_v59 = vld [vmem:[#allocation5 + $0x908] sm:$0xff] }
  0x7f   :  { %5021 = vmatprep.subr.bf16.mxu0 %v5020_v33  ;;  %5245 = vmatprep.subr.bf16.mxu1 %v5244_v37  ;;  %v330_v33 = vld [vmem:[#allocation5 + $0x7f0] sm:$0xff]  ;;  %v5042_v40 = vpack.c.bf16 %v335_v32, %v328_v31  ;;  %v371_v60 = vld [vmem:[#allocation5 + $0x938] sm:$0xff]  ;;  %v373_v62 = vld [vmem:[#allocation5 + $0x948] sm:$0xff] }
  0x80   :  { %v350_v37 = vld [vmem:[#allocation5 + $0x890] sm:$0xff]  ;;  %v5266_v41 = vpack.c.bf16 %v337_v35, %v330_v33  ;;  %v380_v63 = vld [vmem:[#allocation5 + $0x980] sm:$0xff]  ;;  %v379_v7 = vld [vmem:[#allocation5 + $0x978] sm:$0xff] }
  0x81   :  { %v5044_v42 = vpack.c.bf16 %v350_v37, %v343_v36  ;;  %v5276_v6 = vpack.c.bf16 %v380_v63, %v373_v62  ;;  %v385_v8 = vld [vmem:[#allocation5 + $0x9a8] sm:$0xff]  ;;  %v387_v10 = vld [vmem:[#allocation5 + $0x9b8] sm:$0xff]  ;;  %v394_v11 = vld [vmem:[#allocation5 + $0x9f0] sm:$0xff] }
  0x82   :  { %5023 = vmatpush1.bf16.msra.mxu0 %v5022_v43  ;;  %5247 = vmatpush1.bf16.msra.mxu1 %v5246_v44  ;;  %v342_v43 = vld [vmem:[#allocation5 + $0x850] sm:$0xff]  ;;  %v349_v44 = vld [vmem:[#allocation5 + $0x888] sm:$0xff]  ;;  %v384_v13 = vld [vmem:[#allocation5 + $0x9a0] sm:$0xff]  ;;  %v5280_v19 = vpack.c.bf16 %v394_v11, %v387_v10 }
  0x83   :  { %5025 = vmatprep.subr.bf16.mxu0 %v5024_v45  ;;  %5249 = vmatprep.subr.bf16.mxu1 %v5248_v49  ;;  %v344_v45 = vld [vmem:[#allocation5 + $0x860] sm:$0xff]  ;;  %v5046_v52 = vpack.c.bf16 %v349_v44, %v342_v43  ;;  %v399_v20 = vld [vmem:[#allocation5 + $0xa18] sm:$0xff]  ;;  %v406_v21 = vld [vmem:[#allocation5 + $0xa50] sm:$0xff] }
  0x84   :  { %v364_v49 = vld [vmem:[#allocation5 + $0x900] sm:$0xff]  ;;  %v5270_v53 = vpack.c.bf16 %v351_v47, %v344_v45  ;;  %v401_v23 = vld [vmem:[#allocation5 + $0xa28] sm:$0xff]  ;;  %v5060_v27 = vpack.c.bf16 %v406_v21, %v399_v20  ;;  %v407_v32 = vld [vmem:[#allocation5 + $0xa58] sm:$0xff] }
  0x85   :  { %v5048_v54 = vpack.c.bf16 %v364_v49, %v357_v48  ;;  %v408_v24 = vld [vmem:[#allocation5 + $0xa60] sm:$0xff]  ;;  %v413_v33 = vld [vmem:[#allocation5 + $0xa88] sm:$0xff]  ;;  %v415_v35 = vld [vmem:[#allocation5 + $0xa98] sm:$0xff] }
  0x86   :  { %5027 = vmatpush1.bf16.msra.mxu0 %v5026_v55  ;;  %5251 = vmatpush1.bf16.msra.mxu1 %v5250_v56  ;;  %v356_v55 = vld [vmem:[#allocation5 + $0x8c0] sm:$0xff]  ;;  %v363_v56 = vld [vmem:[#allocation5 + $0x8f8] sm:$0xff]  ;;  %v5284_v31 = vpack.c.bf16 %v408_v24, %v401_v23  ;;  %v422_v36 = vld [vmem:[#allocation5 + $0xad0] sm:$0xff] }
  0x87   :  { %5029 = vmatprep.subr.bf16.mxu0 %v5028_v57  ;;  %5253 = vmatprep.subr.bf16.mxu1 %v5252_v61  ;;  %v358_v57 = vld [vmem:[#allocation5 + $0x8d0] sm:$0xff]  ;;  %v5050_v0 = vpack.c.bf16 %v363_v56, %v356_v55  ;;  %v5288_v43 = vpack.c.bf16 %v422_v36, %v415_v35  ;;  %v421_v44 = vld [vmem:[#allocation5 + $0xac8] sm:$0xff]  ;;  %v427_v45 = vld [vmem:[#allocation5 + $0xaf8] sm:$0xff] }
  0x88   :  { %v378_v61 = vld [vmem:[#allocation5 + $0x970] sm:$0xff]  ;;  %v5274_v1 = vpack.c.bf16 %v365_v59, %v358_v57  ;;  %v429_v47 = vld [vmem:[#allocation5 + $0xb08] sm:$0xff]  ;;  %v436_v48 = vld [vmem:[#allocation5 + $0xb40] sm:$0xff] }
  0x89   :  { %v5052_v2 = vpack.c.bf16 %v378_v61, %v371_v60  ;;  %v5292_v55 = vpack.c.bf16 %v436_v48, %v429_v47  ;;  %v435_v56 = vld [vmem:[#allocation5 + $0xb38] sm:$0xff]  ;;  %v441_v57 = vld [vmem:[#allocation5 + $0xb68] sm:$0xff]  ;;  %v450_v60 = vld [vmem:[#allocation5 + $0xbb0] sm:$0xff] }
  0x8a   :  { %5031 = vmatpush1.bf16.msra.mxu0 %v5030_v3  ;;  %5255 = vmatpush1.bf16.msra.mxu1 %v5254_v4  ;;  %v370_v3 = vld [vmem:[#allocation5 + $0x930] sm:$0xff]  ;;  %v377_v4 = vld [vmem:[#allocation5 + $0x968] sm:$0xff]  ;;  %v443_v59 = vld [vmem:[#allocation5 + $0xb78] sm:$0xff] }
  0x8b   :  { %5033 = vmatprep.subr.bf16.mxu0 %v5032_v5  ;;  %5257 = vmatprep.subr.bf16.mxu1 %v5256_v9  ;;  %v372_v5 = vld [vmem:[#allocation5 + $0x940] sm:$0xff]  ;;  %v5054_v12 = vpack.c.bf16 %v377_v4, %v370_v3  ;;  %v5296_v3 = vpack.c.bf16 %v450_v60, %v443_v59  ;;  %v449_v4 = vld [vmem:[#allocation5 + $0xba8] sm:$0xff]  ;;  %v478_v20 = vld [vmem:[#allocation5 + $0xc90] sm:$0xff] }
  0x8c   :  { %v392_v9 = vld [vmem:[#allocation5 + $0x9e0] sm:$0xff]  ;;  %v5278_v14 = vpack.c.bf16 %v379_v7, %v372_v5  ;;  %v455_v5 = vld [vmem:[#allocation5 + $0xbd8] sm:$0xff]  ;;  %v457_v7 = vld [vmem:[#allocation5 + $0xbe8] sm:$0xff] }
  0x8d   :  { %925 = vmatmul.mubr.f32.vlgmr.msra.gmra.mrb[0].mxu0 %v69_v15  ;;  %1209 = vmatmul.mubr.f32.vlgmr.msra.gmra.mrb[0].mxu1 %v69_v15  ;;  %v5056_v15 = vpack.c.bf16 %v392_v9, %v385_v8  ;;  %v464_v8 = vld [vmem:[#allocation5 + $0xc20] sm:$0xff]  ;;  %v482_v36 = vld [vmem:[#allocation5 + $0xcb0] sm:$0xff] }
  0x8e   :  { %5035 = vmatpush1.bf16.msra.mxu0 %v5034_v16  ;;  %5259 = vmatpush1.bf16.msra.mxu1 %v5258_v17  ;;  %v391_v16 = vld [vmem:[#allocation5 + $0x9d8] sm:$0xff]  ;;  %v386_v17 = vld [vmem:[#allocation5 + $0x9b0] sm:$0xff]  ;;  %v468_v24 = vld [vmem:[#allocation5 + $0xc40] sm:$0xff] }
  0x8f   :  { %5037 = vmatprep.subr.bf16.mxu0 %v5036_v18  ;;  %5261 = vmatprep.subr.bf16.mxu1 %v5260_v22  ;;  %v393_v18 = vld [vmem:[#allocation5 + $0x9e8] sm:$0xff]  ;;  %v72_v22 = vld [vmem:[#allocation2 + $0x18] sm:$0xff]  ;;  %v5058_v25 = vpack.c.bf16 %v391_v16, %v384_v13  ;;  %v463_v16 = vld [vmem:[#allocation5 + $0xc18] sm:$0xff] }
  0x90   :  { %995 = vmatprep.mubr.f32.mxu0 %v72_v22  ;;  %1279 = vmatprep.mubr.f32.mxu1 %v72_v22  ;;  %v5282_v26 = vpack.c.bf16 %v393_v18, %v386_v17  ;;  %v461_v13 = vld [vmem:[#allocation5 + $0xc08] sm:$0xff]  ;;  %v476_v18 = vld [vmem:[#allocation5 + $0xc80] sm:$0xff]  ;;  %v510_v60 = vld [vmem:[#allocation5 + $0xd90] sm:$0xff] }
  0x91   :  { %v469_v17 = vld [vmem:[#allocation5 + $0xc48] sm:$0xff]  ;;  %v496_v48 = vld [vmem:[#allocation5 + $0xd20] sm:$0xff] }
  0x92   :  { %5039 = vmatpush1.bf16.msra.mxu0 %v5038_v28  ;;  %5263 = vmatpush1.bf16.msra.mxu1 %v5262_v29  ;;  %v398_v28 = vld [vmem:[#allocation5 + $0xa10] sm:$0xff]  ;;  %v405_v29 = vld [vmem:[#allocation5 + $0xa48] sm:$0xff]  ;;  %v5080_v23 = vpack.c.bf16 %v476_v18, %v469_v17  ;;  %v71_v17 = vld [vmem:[#allocation2 + $0x10] sm:$0xff] }
  0x93   :  { %5041 = vmatprep.subr.bf16.mxu0 %v5040_v30  ;;  %5265 = vmatprep.subr.bf16.mxu1 %v5264_v34  ;;  %v400_v30 = vld [vmem:[#allocation5 + $0xa20] sm:$0xff]  ;;  %v5062_v37 = vpack.c.bf16 %v405_v29, %v398_v28  ;;  %v477_v28 = vld [vmem:[#allocation5 + $0xc88] sm:$0xff]  ;;  %v483_v29 = vld [vmem:[#allocation5 + $0xcb8] sm:$0xff] }
  0x94   :  { %v420_v34 = vld [vmem:[#allocation5 + $0xac0] sm:$0xff]  ;;  %v5286_v38 = vpack.c.bf16 %v407_v32, %v400_v30  ;;  %v490_v30 = vld [vmem:[#allocation5 + $0xcf0] sm:$0xff] }
  0x95   :  { %v5064_v39 = vpack.c.bf16 %v420_v34, %v413_v33  ;;  %v492_v32 = vld [vmem:[#allocation5 + $0xd00] sm:$0xff]  ;;  %v5084_v35 = vpack.c.bf16 %v490_v30, %v483_v29  ;;  %v562_v29 = vld [vmem:[#allocation5 + $0xf30] sm:$0xff] }
  0x96   :  { %5043 = vmatpush1.bf16.msra.mxu0 %v5042_v40  ;;  %5267 = vmatpush1.bf16.msra.mxu1 %v5266_v41  ;;  %v412_v40 = vld [vmem:[#allocation5 + $0xa80] sm:$0xff]  ;;  %v419_v41 = vld [vmem:[#allocation5 + $0xab8] sm:$0xff]  ;;  %v74_v30 = vld [vmem:[#allocation2 + $0x28] sm:$0xff] }
  0x97   :  { %5045 = vmatprep.subr.bf16.mxu0 %v5044_v42  ;;  %5269 = vmatprep.subr.bf16.mxu1 %v5268_v46  ;;  %v414_v42 = vld [vmem:[#allocation5 + $0xa90] sm:$0xff]  ;;  %v5066_v49 = vpack.c.bf16 %v419_v41, %v412_v40  ;;  %v491_v40 = vld [vmem:[#allocation5 + $0xcf8] sm:$0xff]  ;;  %v497_v41 = vld [vmem:[#allocation5 + $0xd28] sm:$0xff] }
  0x98   :  { %v434_v46 = vld [vmem:[#allocation5 + $0xb30] sm:$0xff]  ;;  %v5290_v50 = vpack.c.bf16 %v421_v44, %v414_v42  ;;  %v504_v42 = vld [vmem:[#allocation5 + $0xd60] sm:$0xff] }
  0x99   :  { %v5068_v51 = vpack.c.bf16 %v434_v46, %v427_v45  ;;  %v506_v44 = vld [vmem:[#allocation5 + $0xd70] sm:$0xff]  ;;  %v5088_v47 = vpack.c.bf16 %v504_v42, %v497_v41  ;;  %v569_v41 = vld [vmem:[#allocation5 + $0xf68] sm:$0xff]  ;;  %v576_v42 = vld [vmem:[#allocation5 + $0xfa0] sm:$0xff] }
  0x9a   :  { %5047 = vmatpush1.bf16.msra.mxu0 %v5046_v52  ;;  %5271 = vmatpush1.bf16.msra.mxu1 %v5270_v53  ;;  %v426_v52 = vld [vmem:[#allocation5 + $0xaf0] sm:$0xff]  ;;  %v433_v53 = vld [vmem:[#allocation5 + $0xb28] sm:$0xff] }
  0x9b   :  { %5049 = vmatprep.subr.bf16.mxu0 %v5048_v54  ;;  %5273 = vmatprep.subr.bf16.mxu1 %v5272_v58  ;;  %v428_v54 = vld [vmem:[#allocation5 + $0xb00] sm:$0xff]  ;;  %v5070_v61 = vpack.c.bf16 %v433_v53, %v426_v52  ;;  %v505_v52 = vld [vmem:[#allocation5 + $0xd68] sm:$0xff]  ;;  %v511_v53 = vld [vmem:[#allocation5 + $0xd98] sm:$0xff] }
  0x9c   :  { %v448_v58 = vld [vmem:[#allocation5 + $0xba0] sm:$0xff]  ;;  %v5294_v62 = vpack.c.bf16 %v435_v56, %v428_v54  ;;  %v518_v54 = vld [vmem:[#allocation5 + $0xdd0] sm:$0xff] }
  0x9d   :  { %v5072_v63 = vpack.c.bf16 %v448_v58, %v441_v57  ;;  %v520_v56 = vld [vmem:[#allocation5 + $0xde0] sm:$0xff]  ;;  %v5092_v59 = vpack.c.bf16 %v518_v54, %v511_v53  ;;  %v583_v53 = vld [vmem:[#allocation5 + $0xfd8] sm:$0xff]  ;;  %v590_v54 = vld [vmem:[#allocation5 + $0x1010] sm:$0xff] }
  0x9e   :  { %5051 = vmatpush1.bf16.msra.mxu0 %v5050_v0  ;;  %5275 = vmatpush1.bf16.msra.mxu1 %v5274_v1  ;;  %v440_v0 = vld [vmem:[#allocation5 + $0xb60] sm:$0xff]  ;;  %v447_v1 = vld [vmem:[#allocation5 + $0xb98] sm:$0xff] }
  0x9f   :  { %5053 = vmatprep.subr.bf16.mxu0 %v5052_v2  ;;  %5277 = vmatprep.subr.bf16.mxu1 %v5276_v6  ;;  %v442_v2 = vld [vmem:[#allocation5 + $0xb70] sm:$0xff]  ;;  %v5074_v9 = vpack.c.bf16 %v447_v1, %v440_v0  ;;  %v519_v0 = vld [vmem:[#allocation5 + $0xdd8] sm:$0xff]  ;;  %v525_v1 = vld [vmem:[#allocation5 + $0xe08] sm:$0xff] }
  0xa0   :  { %v462_v6 = vld [vmem:[#allocation5 + $0xc10] sm:$0xff]  ;;  %v5298_v10 = vpack.c.bf16 %v449_v4, %v442_v2  ;;  %v532_v2 = vld [vmem:[#allocation5 + $0xe40] sm:$0xff] }
  0xa1   :  { %v5076_v11 = vpack.c.bf16 %v462_v6, %v455_v5  ;;  %v534_v4 = vld [vmem:[#allocation5 + $0xe50] sm:$0xff] }
  0xa2   :  { %5055 = vmatpush1.bf16.msra.mxu0 %v5054_v12  ;;  %5279 = vmatpush1.bf16.msra.mxu1 %v5278_v14  ;;  %v454_v12 = vld [vmem:[#allocation5 + $0xbd0] sm:$0xff]  ;;  %v456_v14 = vld [vmem:[#allocation5 + $0xbe0] sm:$0xff] }
  0xa3   :  { %5057 = vmatprep.subr.bf16.mxu0 %v5056_v15  ;;  %5281 = vmatprep.subr.bf16.mxu1 %v5280_v19  ;;  %v5300_v15 = vpack.c.bf16 %v464_v8, %v457_v7  ;;  %v471_v19 = vld [vmem:[#allocation5 + $0xc58] sm:$0xff]  ;;  %v5078_v21 = vpack.c.bf16 %v461_v13, %v454_v12  ;;  %v5302_v22 = vpack.c.bf16 %v463_v16, %v456_v14  ;;  %v524_v8 = vld [vmem:[#allocation5 + $0xe00] sm:$0xff]  ;;  %v533_v12 = vld [vmem:[#allocation5 + $0xe48] sm:$0xff] }
  0xa4   :  { %v5096_v7 = vpack.c.bf16 %v532_v2, %v525_v1  ;;  %v539_v13 = vld [vmem:[#allocation5 + $0xe78] sm:$0xff]  ;;  %v546_v14 = vld [vmem:[#allocation5 + $0xeb0] sm:$0xff]  ;;  %v548_v16 = vld [vmem:[#allocation5 + $0xec0] sm:$0xff] }
  0xa5   :  { %v597_v1 = vld [vmem:[#allocation5 + $0x1048] sm:$0xff]  ;;  %v604_v2 = vld [vmem:[#allocation5 + $0x1080] sm:$0xff] }
  0xa6   :  { %5059 = vmatpush1.bf16.msra.mxu0 %v5058_v25  ;;  %5283 = vmatpush1.bf16.msra.mxu1 %v5282_v26  ;;  %v475_v25 = vld [vmem:[#allocation5 + $0xc78] sm:$0xff]  ;;  %v470_v26 = vld [vmem:[#allocation5 + $0xc50] sm:$0xff] }
  0xa7   :  { %5061 = vmatprep.subr.bf16.mxu0 %v5060_v27  ;;  %5285 = vmatprep.subr.bf16.mxu1 %v5284_v31  ;;  %v5304_v27 = vpack.c.bf16 %v478_v20, %v471_v19  ;;  %v485_v31 = vld [vmem:[#allocation5 + $0xcc8] sm:$0xff]  ;;  %v5082_v33 = vpack.c.bf16 %v475_v25, %v468_v24  ;;  %v5306_v34 = vpack.c.bf16 %v477_v28, %v470_v26  ;;  %v547_v25 = vld [vmem:[#allocation5 + $0xeb8] sm:$0xff] }
  0xa8   :  { %v5100_v20 = vpack.c.bf16 %v546_v14, %v539_v13  ;;  %v553_v26 = vld [vmem:[#allocation5 + $0xee8] sm:$0xff]  ;;  %v555_v28 = vld [vmem:[#allocation5 + $0xef8] sm:$0xff]  ;;  %v618_v14 = vld [vmem:[#allocation5 + $0x10f0] sm:$0xff] }
  0xa9   :  { %v611_v13 = vld [vmem:[#allocation5 + $0x10b8] sm:$0xff] }
  0xaa   :  { %5063 = vmatpush1.bf16.msra.mxu0 %v5062_v37  ;;  %5287 = vmatpush1.bf16.msra.mxu1 %v5286_v38  ;;  %v489_v37 = vld [vmem:[#allocation5 + $0xce8] sm:$0xff]  ;;  %v484_v38 = vld [vmem:[#allocation5 + $0xcc0] sm:$0xff] }
  0xab   :  { %5065 = vmatprep.subr.bf16.mxu0 %v5064_v39  ;;  %5289 = vmatprep.subr.bf16.mxu1 %v5288_v43  ;;  %v5308_v39 = vpack.c.bf16 %v492_v32, %v485_v31  ;;  %v499_v43 = vld [vmem:[#allocation5 + $0xd38] sm:$0xff]  ;;  %v5086_v45 = vpack.c.bf16 %v489_v37, %v482_v36  ;;  %v5310_v46 = vpack.c.bf16 %v491_v40, %v484_v38  ;;  %v554_v36 = vld [vmem:[#allocation5 + $0xef0] sm:$0xff]  ;;  %v561_v38 = vld [vmem:[#allocation5 + $0xf28] sm:$0xff] }
  0xac   :  { %v5328_v37 = vpack.c.bf16 %v562_v29, %v555_v28  ;;  %v574_v40 = vld [vmem:[#allocation5 + $0xf90] sm:$0xff] }
  0xae   :  { %5067 = vmatpush1.bf16.msra.mxu0 %v5066_v49  ;;  %5291 = vmatpush1.bf16.msra.mxu1 %v5290_v50  ;;  %v503_v49 = vld [vmem:[#allocation5 + $0xd58] sm:$0xff]  ;;  %v498_v50 = vld [vmem:[#allocation5 + $0xd30] sm:$0xff] }
  0xaf   :  { %5069 = vmatprep.subr.bf16.mxu0 %v5068_v51  ;;  %5293 = vmatprep.subr.bf16.mxu1 %v5292_v55  ;;  %v5312_v51 = vpack.c.bf16 %v506_v44, %v499_v43  ;;  %v513_v55 = vld [vmem:[#allocation5 + $0xda8] sm:$0xff]  ;;  %v5090_v57 = vpack.c.bf16 %v503_v49, %v496_v48  ;;  %v5314_v58 = vpack.c.bf16 %v505_v52, %v498_v50  ;;  %v568_v48 = vld [vmem:[#allocation5 + $0xf60] sm:$0xff]  ;;  %v575_v50 = vld [vmem:[#allocation5 + $0xf98] sm:$0xff] }
  0xb0   :  { %v5330_v44 = vpack.c.bf16 %v561_v38, %v554_v36  ;;  %v5332_v49 = vpack.c.bf16 %v576_v42, %v569_v41  ;;  %v588_v52 = vld [vmem:[#allocation5 + $0x1000] sm:$0xff]  ;;  %v646_v38 = vld [vmem:[#allocation5 + $0x11d0] sm:$0xff] }
  0xb1   :  { %v644_v36 = vld [vmem:[#allocation5 + $0x11c0] sm:$0xff] }
  0xb2   :  { %5071 = vmatpush1.bf16.msra.mxu0 %v5070_v61  ;;  %5295 = vmatpush1.bf16.msra.mxu1 %v5294_v62  ;;  %v517_v61 = vld [vmem:[#allocation5 + $0xdc8] sm:$0xff]  ;;  %v512_v62 = vld [vmem:[#allocation5 + $0xda0] sm:$0xff] }
  0xb3   :  { %5073 = vmatprep.subr.bf16.mxu0 %v5072_v63  ;;  %5297 = vmatprep.subr.bf16.mxu1 %v5296_v3  ;;  %v5316_v63 = vpack.c.bf16 %v520_v56, %v513_v55  ;;  %v527_v3 = vld [vmem:[#allocation5 + $0xe18] sm:$0xff]  ;;  %v5094_v5 = vpack.c.bf16 %v517_v61, %v510_v60  ;;  %v5318_v6 = vpack.c.bf16 %v519_v0, %v512_v62  ;;  %v582_v60 = vld [vmem:[#allocation5 + $0xfd0] sm:$0xff]  ;;  %v589_v62 = vld [vmem:[#allocation5 + $0x1008] sm:$0xff] }
  0xb4   :  { %v5334_v56 = vpack.c.bf16 %v575_v50, %v568_v48  ;;  %v5336_v61 = vpack.c.bf16 %v590_v54, %v583_v53  ;;  %v602_v0 = vld [vmem:[#allocation5 + $0x1070] sm:$0xff]  ;;  %v636_v42 = vld [vmem:[#allocation5 + $0x1180] sm:$0xff] }
  0xb5   :  { %v658_v48 = vld [vmem:[#allocation5 + $0x1230] sm:$0xff]  ;;  %v660_v50 = vld [vmem:[#allocation5 + $0x1240] sm:$0xff] }
  0xb6   :  { %5075 = vmatpush1.bf16.msra.mxu0 %v5074_v9  ;;  %5299 = vmatpush1.bf16.msra.mxu1 %v5298_v10  ;;  %v531_v9 = vld [vmem:[#allocation5 + $0xe38] sm:$0xff]  ;;  %v526_v10 = vld [vmem:[#allocation5 + $0xe10] sm:$0xff] }
  0xb7   :  { %5077 = vmatprep.subr.bf16.mxu0 %v5076_v11  ;;  %5301 = vmatprep.subr.bf16.mxu1 %v5300_v15  ;;  %v5320_v11 = vpack.c.bf16 %v534_v4, %v527_v3  ;;  %v541_v15 = vld [vmem:[#allocation5 + $0xe88] sm:$0xff]  ;;  %v5098_v18 = vpack.c.bf16 %v531_v9, %v524_v8  ;;  %v5322_v19 = vpack.c.bf16 %v533_v12, %v526_v10  ;;  %v596_v8 = vld [vmem:[#allocation5 + $0x1040] sm:$0xff]  ;;  %v603_v10 = vld [vmem:[#allocation5 + $0x1078] sm:$0xff] }
  0xb8   :  { %v5324_v24 = vpack.c.bf16 %v548_v16, %v541_v15  ;;  %v5338_v4 = vpack.c.bf16 %v589_v62, %v582_v60  ;;  %v5340_v9 = vpack.c.bf16 %v604_v2, %v597_v1  ;;  %v616_v12 = vld [vmem:[#allocation5 + $0x10e0] sm:$0xff]  ;;  %v5342_v16 = vpack.c.bf16 %v603_v10, %v596_v8  ;;  %v650_v54 = vld [vmem:[#allocation5 + $0x11f0] sm:$0xff] }
  0xb9   :  { %v672_v60 = vld [vmem:[#allocation5 + $0x12a0] sm:$0xff]  ;;  %v674_v62 = vld [vmem:[#allocation5 + $0x12b0] sm:$0xff] }
  0xba   :  { %5079 = vmatpush1.bf16.msra.mxu0 %v5078_v21  ;;  %5303 = vmatpush1.bf16.msra.mxu1 %v5302_v22  ;;  %v538_v21 = vld [vmem:[#allocation5 + $0xe70] sm:$0xff]  ;;  %v545_v22 = vld [vmem:[#allocation5 + $0xea8] sm:$0xff]  ;;  %v664_v2 = vld [vmem:[#allocation5 + $0x1260] sm:$0xff] }
  0xbb   :  { %5081 = vmatprep.subr.bf16.mxu0 %v5080_v23  ;;  %5305 = vmatprep.subr.bf16.mxu1 %v5304_v27  ;;  %v540_v23 = vld [vmem:[#allocation5 + $0xe80] sm:$0xff]  ;;  %v5102_v31 = vpack.c.bf16 %v545_v22, %v538_v21  ;;  %v5344_v21 = vpack.c.bf16 %v618_v14, %v611_v13  ;;  %v617_v22 = vld [vmem:[#allocation5 + $0x10e8] sm:$0xff]  ;;  %v686_v8 = vld [vmem:[#allocation5 + $0x1310] sm:$0xff] }
  0xbc   :  { %v560_v27 = vld [vmem:[#allocation5 + $0xf20] sm:$0xff]  ;;  %v5326_v32 = vpack.c.bf16 %v547_v25, %v540_v23  ;;  %v623_v23 = vld [vmem:[#allocation5 + $0x1118] sm:$0xff]  ;;  %v625_v25 = vld [vmem:[#allocation5 + $0x1128] sm:$0xff] }
  0xbd   :  { %v688_v10 = vld [vmem:[#allocation5 + $0x1320] sm:$0xff]  ;;  %v678_v14 = vld [vmem:[#allocation5 + $0x12d0] sm:$0xff] }
  0xbe   :  { %5083 = vmatpush1.bf16.msra.mxu0 %v5082_v33  ;;  %5307 = vmatpush1.bf16.msra.mxu1 %v5306_v34  ;;  %v5104_v33 = vpack.c.bf16 %v560_v27, %v553_v26  ;;  %v552_v34 = vld [vmem:[#allocation5 + $0xee0] sm:$0xff] }
  0xbf   :  { %5085 = vmatprep.subr.bf16.mxu0 %v5084_v35  ;;  %5309 = vmatprep.subr.bf16.mxu1 %v5308_v39  ;;  %v559_v35 = vld [vmem:[#allocation5 + $0xf18] sm:$0xff]  ;;  %v632_v26 = vld [vmem:[#allocation5 + $0x1160] sm:$0xff] }
  0xc0   :  { %v567_v39 = vld [vmem:[#allocation5 + $0xf58] sm:$0xff]  ;;  %v5106_v43 = vpack.c.bf16 %v559_v35, %v552_v34  ;;  %v637_v35 = vld [vmem:[#allocation5 + $0x1188] sm:$0xff] }
  0xc1   :  { %v631_v34 = vld [vmem:[#allocation5 + $0x1158] sm:$0xff]  ;;  %v5128_v41 = vpack.c.bf16 %v644_v36, %v637_v35 }
  0xc2   :  { %5087 = vmatpush1.bf16.msra.mxu0 %v5086_v45  ;;  %5311 = vmatpush1.bf16.msra.mxu1 %v5310_v46  ;;  %v5108_v45 = vpack.c.bf16 %v574_v40, %v567_v39  ;;  %v566_v46 = vld [vmem:[#allocation5 + $0xf50] sm:$0xff] }
  0xc3   :  { %5089 = vmatprep.subr.bf16.mxu0 %v5088_v47  ;;  %5313 = vmatprep.subr.bf16.mxu1 %v5312_v51  ;;  %v573_v47 = vld [vmem:[#allocation5 + $0xf88] sm:$0xff] }
  0xc4   :  { %v581_v51 = vld [vmem:[#allocation5 + $0xfc8] sm:$0xff]  ;;  %v5110_v55 = vpack.c.bf16 %v573_v47, %v566_v46  ;;  %v651_v47 = vld [vmem:[#allocation5 + $0x11f8] sm:$0xff] }
  0xc5   :  { %v645_v46 = vld [vmem:[#allocation5 + $0x11c8] sm:$0xff]  ;;  %v5132_v53 = vpack.c.bf16 %v658_v48, %v651_v47 }
  0xc6   :  { %5091 = vmatpush1.bf16.msra.mxu0 %v5090_v57  ;;  %5315 = vmatpush1.bf16.msra.mxu1 %v5314_v58  ;;  %v5112_v57 = vpack.c.bf16 %v588_v52, %v581_v51  ;;  %v580_v58 = vld [vmem:[#allocation5 + $0xfc0] sm:$0xff] }
  0xc7   :  { %5093 = vmatprep.subr.bf16.mxu0 %v5092_v59  ;;  %5317 = vmatprep.subr.bf16.mxu1 %v5316_v63  ;;  %v587_v59 = vld [vmem:[#allocation5 + $0xff8] sm:$0xff] }
  0xc8   :  { %v595_v63 = vld [vmem:[#allocation5 + $0x1038] sm:$0xff]  ;;  %v5114_v3 = vpack.c.bf16 %v587_v59, %v580_v58  ;;  %v665_v59 = vld [vmem:[#allocation5 + $0x1268] sm:$0xff] }
  0xc9   :  { %v659_v58 = vld [vmem:[#allocation5 + $0x1238] sm:$0xff]  ;;  %v5136_v1 = vpack.c.bf16 %v672_v60, %v665_v59 }
  0xca   :  { %5095 = vmatpush1.bf16.msra.mxu0 %v5094_v5  ;;  %5319 = vmatpush1.bf16.msra.mxu1 %v5318_v6  ;;  %v5116_v5 = vpack.c.bf16 %v602_v0, %v595_v63  ;;  %v594_v6 = vld [vmem:[#allocation5 + $0x1030] sm:$0xff] }
  0xcb   :  { %5097 = vmatprep.subr.bf16.mxu0 %v5096_v7  ;;  %5321 = vmatprep.subr.bf16.mxu1 %v5320_v11  ;;  %v601_v7 = vld [vmem:[#allocation5 + $0x1068] sm:$0xff] }
  0xcc   :  { %v609_v11 = vld [vmem:[#allocation5 + $0x10a8] sm:$0xff]  ;;  %v5118_v15 = vpack.c.bf16 %v601_v7, %v594_v6  ;;  %v679_v7 = vld [vmem:[#allocation5 + $0x12d8] sm:$0xff] }
  0xcd   :  { %996 = vmatmul.mubr.f32.vlgmr.msra.gmra.mrb[0].mxu0 %v71_v17  ;;  %1280 = vmatmul.mubr.f32.vlgmr.msra.gmra.mrb[0].mxu1 %v71_v17  ;;  %v5120_v17 = vpack.c.bf16 %v616_v12, %v609_v11  ;;  %v673_v6 = vld [vmem:[#allocation5 + $0x12a8] sm:$0xff]  ;;  %v5140_v13 = vpack.c.bf16 %v686_v8, %v679_v7 }
  0xce   :  { %5099 = vmatpush1.bf16.msra.mxu0 %v5098_v18  ;;  %5323 = vmatpush1.bf16.msra.mxu1 %v5322_v19  ;;  %v608_v18 = vld [vmem:[#allocation5 + $0x10a0] sm:$0xff]  ;;  %v615_v19 = vld [vmem:[#allocation5 + $0x10d8] sm:$0xff] }
  0xcf   :  { %5101 = vmatprep.subr.bf16.mxu0 %v5100_v20  ;;  %5325 = vmatprep.subr.bf16.mxu1 %v5324_v24  ;;  %v610_v20 = vld [vmem:[#allocation5 + $0x10b0] sm:$0xff]  ;;  %v5122_v27 = vpack.c.bf16 %v615_v19, %v608_v18  ;;  %v687_v18 = vld [vmem:[#allocation5 + $0x1318] sm:$0xff]  ;;  %v693_v19 = vld [vmem:[#allocation5 + $0x1348] sm:$0xff] }
  0xd0   :  { %1066 = vmatprep.mubr.f32.mxu0 %v74_v30  ;;  %1350 = vmatprep.mubr.f32.mxu1 %v74_v30  ;;  %v630_v24 = vld [vmem:[#allocation5 + $0x1150] sm:$0xff]  ;;  %v5346_v28 = vpack.c.bf16 %v617_v22, %v610_v20  ;;  %v700_v20 = vld [vmem:[#allocation5 + $0x1380] sm:$0xff] }
  0xd1   :  { %v5124_v29 = vpack.c.bf16 %v630_v24, %v623_v23  ;;  %v622_v30 = vld [vmem:[#allocation5 + $0x1110] sm:$0xff] }
  0xd2   :  { %5103 = vmatpush1.bf16.msra.mxu0 %v5102_v31  ;;  %5327 = vmatpush1.bf16.msra.mxu1 %v5326_v32  ;;  %v629_v31 = vld [vmem:[#allocation5 + $0x1148] sm:$0xff]  ;;  %v624_v32 = vld [vmem:[#allocation5 + $0x1120] sm:$0xff]  ;;  %v702_v22 = vld [vmem:[#allocation5 + $0x1390] sm:$0xff] }
  0xd3   :  { %5105 = vmatprep.subr.bf16.mxu0 %v5104_v33  ;;  %5329 = vmatprep.subr.bf16.mxu1 %v5328_v37  ;;  %v5348_v33 = vpack.c.bf16 %v632_v26, %v625_v25  ;;  %v639_v37 = vld [vmem:[#allocation5 + $0x1198] sm:$0xff]  ;;  %v5126_v39 = vpack.c.bf16 %v629_v31, %v622_v30  ;;  %v5350_v40 = vpack.c.bf16 %v631_v34, %v624_v32  ;;  %v692_v26 = vld [vmem:[#allocation5 + $0x1340] sm:$0xff]  ;;  %v701_v30 = vld [vmem:[#allocation5 + $0x1388] sm:$0xff] }
  0xd4   :  { %v5144_v25 = vpack.c.bf16 %v700_v20, %v693_v19  ;;  %v707_v31 = vld [vmem:[#allocation5 + $0x13b8] sm:$0xff]  ;;  %v714_v32 = vld [vmem:[#allocation5 + $0x13f0] sm:$0xff]  ;;  %v716_v34 = vld [vmem:[#allocation5 + $0x1400] sm:$0xff] }
  0xd5   :  { %v73_v19 = vld [vmem:[#allocation2 + $0x20] sm:$0xff] }
  0xd6   :  { %5107 = vmatpush1.bf16.msra.mxu0 %v5106_v43  ;;  %5331 = vmatpush1.bf16.msra.mxu1 %v5330_v44  ;;  %v643_v43 = vld [vmem:[#allocation5 + $0x11b8] sm:$0xff]  ;;  %v638_v44 = vld [vmem:[#allocation5 + $0x1190] sm:$0xff] }
  0xd7   :  { %5109 = vmatprep.subr.bf16.mxu0 %v5108_v45  ;;  %5333 = vmatprep.subr.bf16.mxu1 %v5332_v49  ;;  %v5352_v45 = vpack.c.bf16 %v646_v38, %v639_v37  ;;  %v653_v49 = vld [vmem:[#allocation5 + $0x1208] sm:$0xff]  ;;  %v5130_v51 = vpack.c.bf16 %v643_v43, %v636_v42  ;;  %v5354_v52 = vpack.c.bf16 %v645_v46, %v638_v44  ;;  %v706_v38 = vld [vmem:[#allocation5 + $0x13b0] sm:$0xff]  ;;  %v715_v42 = vld [vmem:[#allocation5 + $0x13f8] sm:$0xff] }
  0xd8   :  { %v5148_v37 = vpack.c.bf16 %v714_v32, %v707_v31  ;;  %v721_v43 = vld [vmem:[#allocation5 + $0x1428] sm:$0xff]  ;;  %v728_v44 = vld [vmem:[#allocation5 + $0x1460] sm:$0xff]  ;;  %v730_v46 = vld [vmem:[#allocation5 + $0x1470] sm:$0xff] }
  0xd9   :  { %v786_v31 = vld [vmem:[#allocation5 + $0x1630] sm:$0xff] }
  0xda   :  { %5111 = vmatpush1.bf16.msra.mxu0 %v5110_v55  ;;  %5335 = vmatpush1.bf16.msra.mxu1 %v5334_v56  ;;  %v657_v55 = vld [vmem:[#allocation5 + $0x1228] sm:$0xff]  ;;  %v652_v56 = vld [vmem:[#allocation5 + $0x1200] sm:$0xff] }
  0xdb   :  { %5113 = vmatprep.subr.bf16.mxu0 %v5112_v57  ;;  %5337 = vmatprep.subr.bf16.mxu1 %v5336_v61  ;;  %v5356_v57 = vpack.c.bf16 %v660_v50, %v653_v49  ;;  %v667_v61 = vld [vmem:[#allocation5 + $0x1278] sm:$0xff]  ;;  %v5134_v63 = vpack.c.bf16 %v657_v55, %v650_v54  ;;  %v5358_v0 = vpack.c.bf16 %v659_v58, %v652_v56  ;;  %v720_v50 = vld [vmem:[#allocation5 + $0x1420] sm:$0xff]  ;;  %v729_v54 = vld [vmem:[#allocation5 + $0x1468] sm:$0xff] }
  0xdc   :  { %v5152_v49 = vpack.c.bf16 %v728_v44, %v721_v43  ;;  %v735_v55 = vld [vmem:[#allocation5 + $0x1498] sm:$0xff]  ;;  %v742_v56 = vld [vmem:[#allocation5 + $0x14d0] sm:$0xff]  ;;  %v744_v58 = vld [vmem:[#allocation5 + $0x14e0] sm:$0xff] }
  0xdd   :  { %v793_v43 = vld [vmem:[#allocation5 + $0x1668] sm:$0xff]  ;;  %v800_v44 = vld [vmem:[#allocation5 + $0x16a0] sm:$0xff] }
  0xde   :  { %5115 = vmatpush1.bf16.msra.mxu0 %v5114_v3  ;;  %5339 = vmatpush1.bf16.msra.mxu1 %v5338_v4  ;;  %v671_v3 = vld [vmem:[#allocation5 + $0x1298] sm:$0xff]  ;;  %v666_v4 = vld [vmem:[#allocation5 + $0x1270] sm:$0xff] }
  0xdf   :  { %5117 = vmatprep.subr.bf16.mxu0 %v5116_v5  ;;  %5341 = vmatprep.subr.bf16.mxu1 %v5340_v9  ;;  %v5360_v5 = vpack.c.bf16 %v674_v62, %v667_v61  ;;  %v681_v9 = vld [vmem:[#allocation5 + $0x12e8] sm:$0xff]  ;;  %v5138_v11 = vpack.c.bf16 %v671_v3, %v664_v2  ;;  %v5362_v12 = vpack.c.bf16 %v673_v6, %v666_v4  ;;  %v734_v62 = vld [vmem:[#allocation5 + $0x1490] sm:$0xff]  ;;  %v743_v2 = vld [vmem:[#allocation5 + $0x14d8] sm:$0xff] }
  0xe0   :  { %v5156_v61 = vpack.c.bf16 %v742_v56, %v735_v55  ;;  %v749_v3 = vld [vmem:[#allocation5 + $0x1508] sm:$0xff]  ;;  %v756_v4 = vld [vmem:[#allocation5 + $0x1540] sm:$0xff]  ;;  %v758_v6 = vld [vmem:[#allocation5 + $0x1550] sm:$0xff] }
  0xe1   :  { %v807_v55 = vld [vmem:[#allocation5 + $0x16d8] sm:$0xff]  ;;  %v814_v56 = vld [vmem:[#allocation5 + $0x1710] sm:$0xff] }
  0xe2   :  { %5119 = vmatpush1.bf16.msra.mxu0 %v5118_v15  ;;  %5343 = vmatpush1.bf16.msra.mxu1 %v5342_v16  ;;  %v685_v15 = vld [vmem:[#allocation5 + $0x1308] sm:$0xff]  ;;  %v680_v16 = vld [vmem:[#allocation5 + $0x12e0] sm:$0xff] }
  0xe3   :  { %5121 = vmatprep.subr.bf16.mxu0 %v5120_v17  ;;  %5345 = vmatprep.subr.bf16.mxu1 %v5344_v21  ;;  %v5364_v17 = vpack.c.bf16 %v688_v10, %v681_v9  ;;  %v695_v21 = vld [vmem:[#allocation5 + $0x1358] sm:$0xff]  ;;  %v5142_v23 = vpack.c.bf16 %v685_v15, %v678_v14  ;;  %v5366_v24 = vpack.c.bf16 %v687_v18, %v680_v16  ;;  %v748_v10 = vld [vmem:[#allocation5 + $0x1500] sm:$0xff]  ;;  %v757_v14 = vld [vmem:[#allocation5 + $0x1548] sm:$0xff] }
  0xe4   :  { %v5160_v9 = vpack.c.bf16 %v756_v4, %v749_v3  ;;  %v763_v15 = vld [vmem:[#allocation5 + $0x1578] sm:$0xff]  ;;  %v770_v16 = vld [vmem:[#allocation5 + $0x15b0] sm:$0xff]  ;;  %v772_v18 = vld [vmem:[#allocation5 + $0x15c0] sm:$0xff] }
  0xe5   :  { %v821_v3 = vld [vmem:[#allocation5 + $0x1748] sm:$0xff]  ;;  %v828_v4 = vld [vmem:[#allocation5 + $0x1780] sm:$0xff] }
  0xe6   :  { %5123 = vmatpush1.bf16.msra.mxu0 %v5122_v27  ;;  %5347 = vmatpush1.bf16.msra.mxu1 %v5346_v28  ;;  %v699_v27 = vld [vmem:[#allocation5 + $0x1378] sm:$0xff]  ;;  %v694_v28 = vld [vmem:[#allocation5 + $0x1350] sm:$0xff] }
  0xe7   :  { %5125 = vmatprep.subr.bf16.mxu0 %v5124_v29  ;;  %5349 = vmatprep.subr.bf16.mxu1 %v5348_v33  ;;  %v5368_v29 = vpack.c.bf16 %v702_v22, %v695_v21  ;;  %v709_v33 = vld [vmem:[#allocation5 + $0x13c8] sm:$0xff]  ;;  %v5146_v35 = vpack.c.bf16 %v699_v27, %v692_v26  ;;  %v5370_v36 = vpack.c.bf16 %v701_v30, %v694_v28  ;;  %v771_v27 = vld [vmem:[#allocation5 + $0x15b8] sm:$0xff] }
  0xe8   :  { %v5164_v22 = vpack.c.bf16 %v770_v16, %v763_v15  ;;  %v777_v28 = vld [vmem:[#allocation5 + $0x15e8] sm:$0xff]  ;;  %v779_v30 = vld [vmem:[#allocation5 + $0x15f8] sm:$0xff]  ;;  %v842_v16 = vld [vmem:[#allocation5 + $0x17f0] sm:$0xff] }
  0xe9   :  { %v835_v15 = vld [vmem:[#allocation5 + $0x17b8] sm:$0xff] }
  0xea   :  { %5127 = vmatpush1.bf16.msra.mxu0 %v5126_v39  ;;  %5351 = vmatpush1.bf16.msra.mxu1 %v5350_v40  ;;  %v713_v39 = vld [vmem:[#allocation5 + $0x13e8] sm:$0xff]  ;;  %v708_v40 = vld [vmem:[#allocation5 + $0x13c0] sm:$0xff] }
  0xeb   :  { %5129 = vmatprep.subr.bf16.mxu0 %v5128_v41  ;;  %5353 = vmatprep.subr.bf16.mxu1 %v5352_v45  ;;  %v5372_v41 = vpack.c.bf16 %v716_v34, %v709_v33  ;;  %v723_v45 = vld [vmem:[#allocation5 + $0x1438] sm:$0xff]  ;;  %v5150_v47 = vpack.c.bf16 %v713_v39, %v706_v38  ;;  %v5374_v48 = vpack.c.bf16 %v715_v42, %v708_v40  ;;  %v785_v39 = vld [vmem:[#allocation5 + $0x1628] sm:$0xff]  ;;  %v6765_v42 = vmov 0.0  }
  0xec   :  { %v5392_v38 = vpack.c.bf16 %v786_v31, %v779_v30  ;;  %v791_v40 = vld [vmem:[#allocation5 + $0x1658] sm:$0xff] }
  0xee   :  { %5131 = vmatpush1.bf16.msra.mxu0 %v5130_v51  ;;  %5355 = vmatpush1.bf16.msra.mxu1 %v5354_v52  ;;  %v727_v51 = vld [vmem:[#allocation5 + $0x1458] sm:$0xff]  ;;  %v722_v52 = vld [vmem:[#allocation5 + $0x1430] sm:$0xff] }
  0xef   :  { %5133 = vmatprep.subr.bf16.mxu0 %v5132_v53  ;;  %5357 = vmatprep.subr.bf16.mxu1 %v5356_v57  ;;  %v5376_v53 = vpack.c.bf16 %v730_v46, %v723_v45  ;;  %v737_v57 = vld [vmem:[#allocation5 + $0x14a8] sm:$0xff]  ;;  %v5154_v59 = vpack.c.bf16 %v727_v51, %v720_v50  ;;  %v5378_v60 = vpack.c.bf16 %v729_v54, %v722_v52  ;;  %v792_v50 = vld [vmem:[#allocation5 + $0x1660] sm:$0xff]  ;;  %v799_v52 = vld [vmem:[#allocation5 + $0x1698] sm:$0xff] }
  0xf0   :  { %v5396_v51 = vpack.c.bf16 %v800_v44, %v793_v43  ;;  %v812_v54 = vld [vmem:[#allocation5 + $0x1700] sm:$0xff] }
  0xf2   :  { %5135 = vmatpush1.bf16.msra.mxu0 %v5134_v63  ;;  %5359 = vmatpush1.bf16.msra.mxu1 %v5358_v0  ;;  %v741_v63 = vld [vmem:[#allocation5 + $0x14c8] sm:$0xff]  ;;  %v736_v0 = vld [vmem:[#allocation5 + $0x14a0] sm:$0xff] }
  0xf3   :  { %5137 = vmatprep.subr.bf16.mxu0 %v5136_v1  ;;  %5361 = vmatprep.subr.bf16.mxu1 %v5360_v5  ;;  %v5380_v1 = vpack.c.bf16 %v744_v58, %v737_v57  ;;  %v751_v5 = vld [vmem:[#allocation5 + $0x1518] sm:$0xff]  ;;  %v5158_v7 = vpack.c.bf16 %v741_v63, %v734_v62  ;;  %v5382_v8 = vpack.c.bf16 %v743_v2, %v736_v0  ;;  %v806_v62 = vld [vmem:[#allocation5 + $0x16d0] sm:$0xff]  ;;  %v813_v0 = vld [vmem:[#allocation5 + $0x1708] sm:$0xff] }
  0xf4   :  { %v5398_v58 = vpack.c.bf16 %v799_v52, %v792_v50  ;;  %v5400_v63 = vpack.c.bf16 %v814_v56, %v807_v55  ;;  %v826_v2 = vld [vmem:[#allocation5 + $0x1770] sm:$0xff]  ;;  %v95_v50 = vld [vmem:[#allocation5 + $0x98] sm:$0xff]  ;;  %v208_v52 = vld [vmem:[#allocation5 + $0x420] sm:$0xff] }
  0xf6   :  { %5139 = vmatpush1.bf16.msra.mxu0 %v5138_v11  ;;  %5363 = vmatpush1.bf16.msra.mxu1 %v5362_v12  ;;  %v755_v11 = vld [vmem:[#allocation5 + $0x1538] sm:$0xff]  ;;  %v750_v12 = vld [vmem:[#allocation5 + $0x1510] sm:$0xff] }
  0xf7   :  { %5141 = vmatprep.subr.bf16.mxu0 %v5140_v13  ;;  %5365 = vmatprep.subr.bf16.mxu1 %v5364_v17  ;;  %v5384_v13 = vpack.c.bf16 %v758_v6, %v751_v5  ;;  %v765_v17 = vld [vmem:[#allocation5 + $0x1588] sm:$0xff]  ;;  %v5162_v20 = vpack.c.bf16 %v755_v11, %v748_v10  ;;  %v5386_v21 = vpack.c.bf16 %v757_v14, %v750_v12  ;;  %v820_v10 = vld [vmem:[#allocation5 + $0x1740] sm:$0xff]  ;;  %v827_v12 = vld [vmem:[#allocation5 + $0x1778] sm:$0xff] }
  0xf8   :  { %v5388_v26 = vpack.c.bf16 %v772_v18, %v765_v17  ;;  %v5402_v6 = vpack.c.bf16 %v813_v0, %v806_v62  ;;  %v5404_v11 = vpack.c.bf16 %v828_v4, %v821_v3  ;;  %v840_v14 = vld [vmem:[#allocation5 + $0x17e0] sm:$0xff]  ;;  %v5406_v18 = vpack.c.bf16 %v827_v12, %v820_v10  ;;  %v103_v62 = vld [vmem:[#allocation5 + $0xd8] sm:$0xff]  ;;  %v117_v10 = vld [vmem:[#allocation5 + $0x148] sm:$0xff] }
  0xf9   :  { %v116_v0 = vld [vmem:[#allocation5 + $0x140] sm:$0xff]  ;;  %v130_v12 = vld [vmem:[#allocation5 + $0x1b0] sm:$0xff] }
  0xfa   :  { %5143 = vmatpush1.bf16.msra.mxu0 %v5142_v23  ;;  %5367 = vmatpush1.bf16.msra.mxu1 %v5366_v24  ;;  %v762_v23 = vld [vmem:[#allocation5 + $0x1570] sm:$0xff]  ;;  %v769_v24 = vld [vmem:[#allocation5 + $0x15a8] sm:$0xff] }
  0xfb   :  { %5145 = vmatprep.subr.bf16.mxu0 %v5144_v25  ;;  %5369 = vmatprep.subr.bf16.mxu1 %v5368_v29  ;;  %v764_v25 = vld [vmem:[#allocation5 + $0x1580] sm:$0xff]  ;;  %v5166_v32 = vpack.c.bf16 %v769_v24, %v762_v23  ;;  %v5408_v23 = vpack.c.bf16 %v842_v16, %v835_v15  ;;  %v841_v24 = vld [vmem:[#allocation5 + $0x17e8] sm:$0xff]  ;;  %v243_v15 = vld [vmem:[#allocation5 + $0x538] sm:$0xff] }
  0xfc   :  { %v784_v29 = vld [vmem:[#allocation5 + $0x1620] sm:$0xff]  ;;  %v5390_v33 = vpack.c.bf16 %v771_v27, %v764_v25  ;;  %v847_v25 = vld [vmem:[#allocation5 + $0x1818] sm:$0xff]  ;;  %v849_v27 = vld [vmem:[#allocation5 + $0x1828] sm:$0xff] }
  0xfd   :  { %v5168_v34 = vpack.c.bf16 %v784_v29, %v777_v28  ;;  %v856_v28 = vld [vmem:[#allocation5 + $0x1860] sm:$0xff] }
  0xfe   :  { %5147 = vmatpush1.bf16.msra.mxu0 %v5146_v35  ;;  %5371 = vmatpush1.bf16.msra.mxu1 %v5370_v36  ;;  %v776_v35 = vld [vmem:[#allocation5 + $0x15e0] sm:$0xff]  ;;  %v783_v36 = vld [vmem:[#allocation5 + $0x1618] sm:$0xff] }
  0xff   :  { %5149 = vmatprep.subr.bf16.mxu0 %v5148_v37  ;;  %5373 = vmatprep.subr.bf16.mxu1 %v5372_v41  ;;  %v778_v37 = vld [vmem:[#allocation5 + $0x15f0] sm:$0xff]  ;;  %v5170_v45 = vpack.c.bf16 %v783_v36, %v776_v35  ;;  %v5412_v35 = vpack.c.bf16 %v856_v28, %v849_v27  ;;  %v855_v36 = vld [vmem:[#allocation5 + $0x1858] sm:$0xff]  ;;  %v257_v27 = vld [vmem:[#allocation5 + $0x5a8] sm:$0xff] }
 0x100   :  { %v798_v41 = vld [vmem:[#allocation5 + $0x1690] sm:$0xff]  ;;  %v5394_v46 = vpack.c.bf16 %v785_v39, %v778_v37  ;;  %v81_v37 = vld [vmem:[#allocation5 + $0x28] sm:$0xff] }
 0x101   :  { %v194_v39 = vld [vmem:[#allocation5 + $0x3b0] sm:$0xff] }
 0x102   :  { %5151 = vmatpush1.bf16.msra.mxu0 %v5150_v47  ;;  %5375 = vmatpush1.bf16.msra.mxu1 %v5374_v48  ;;  %v5172_v47 = vpack.c.bf16 %v798_v41, %v791_v40  ;;  %v790_v48 = vld [vmem:[#allocation5 + $0x1650] sm:$0xff]  ;;  %v201_v40 = vld [vmem:[#allocation5 + $0x3e8] sm:$0xff] }
 0x103   :  { %5153 = vmatprep.subr.bf16.mxu0 %v5152_v49  ;;  %5377 = vmatprep.subr.bf16.mxu1 %v5376_v53  ;;  %v797_v49 = vld [vmem:[#allocation5 + $0x1688] sm:$0xff] }
 0x104   :  { %v805_v53 = vld [vmem:[#allocation5 + $0x16c8] sm:$0xff]  ;;  %v5174_v57 = vpack.c.bf16 %v797_v49, %v790_v48  ;;  %v5640_v48 = vpack.c.bf16 %v201_v40, %v194_v39  ;;  %v271_v39 = vld [vmem:[#allocation5 + $0x618] sm:$0xff] }
 0x105   :  { %v89_v49 = vld [vmem:[#allocation5 + $0x68] sm:$0xff] }
 0x106   :  { %5155 = vmatpush1.bf16.msra.mxu0 %v5154_v59  ;;  %5379 = vmatpush1.bf16.msra.mxu1 %v5378_v60  ;;  %v5176_v59 = vpack.c.bf16 %v812_v54, %v805_v53  ;;  %v804_v60 = vld [vmem:[#allocation5 + $0x16c0] sm:$0xff]  ;;  %v215_v53 = vld [vmem:[#allocation5 + $0x458] sm:$0xff] }
 0x107   :  { %5157 = vmatprep.subr.bf16.mxu0 %v5156_v61  ;;  %5381 = vmatprep.subr.bf16.mxu1 %v5380_v1  ;;  %v811_v61 = vld [vmem:[#allocation5 + $0x16f8] sm:$0xff] }
 0x108   :  { %v819_v1 = vld [vmem:[#allocation5 + $0x1738] sm:$0xff]  ;;  %v5178_v5 = vpack.c.bf16 %v811_v61, %v804_v60  ;;  %v96_v60 = vld [vmem:[#allocation5 + $0xa0] sm:$0xff]  ;;  %v5644_v61 = vpack.c.bf16 %v215_v53, %v208_v52  ;;  %v285_v52 = vld [vmem:[#allocation5 + $0x688] sm:$0xff] }
 0x109   :  { %v6851_v54 = vld [vmem:[#allocation2 + $0x30] sm:$0xff]  ;;  %v5646_v4 = vpack.c.bf16 %v103_v62, %v96_v60 }
 0x10a   :  { %5159 = vmatpush1.bf16.msra.mxu0 %v5158_v7  ;;  %5383 = vmatpush1.bf16.msra.mxu1 %v5382_v8  ;;  %v5180_v7 = vpack.c.bf16 %v826_v2, %v819_v1  ;;  %v818_v8 = vld [vmem:[#allocation5 + $0x1730] sm:$0xff]  ;;  %v229_v2 = vld [vmem:[#allocation5 + $0x4c8] sm:$0xff]  ;;  %v179_v62 = vld [vmem:[#allocation5 + $0x338] sm:$0xff] }
 0x10b   :  { %5161 = vmatprep.subr.bf16.mxu0 %v5160_v9  ;;  %5385 = vmatprep.subr.bf16.mxu1 %v5384_v13  ;;  %v825_v9 = vld [vmem:[#allocation5 + $0x1768] sm:$0xff]  ;;  %v222_v1 = vld [vmem:[#allocation5 + $0x490] sm:$0xff] }
 0x10c   :  { %v833_v13 = vld [vmem:[#allocation5 + $0x17a8] sm:$0xff]  ;;  %v5182_v17 = vpack.c.bf16 %v825_v9, %v818_v8  ;;  %v110_v8 = vld [vmem:[#allocation5 + $0x110] sm:$0xff]  ;;  %v5648_v9 = vpack.c.bf16 %v229_v2, %v222_v1  ;;  %v299_v1 = vld [vmem:[#allocation5 + $0x6f8] sm:$0xff] }
 0x10d   :  { %1067 = vmatmul.mubr.f32.vlgmr.msra.gmra.mrb[0].mxu0 %v73_v19  ;;  %1351 = vmatmul.mubr.f32.vlgmr.msra.gmra.mrb[0].mxu1 %v73_v19  ;;  %v5184_v19 = vpack.c.bf16 %v840_v14, %v833_v13  ;;  %v6627_v13 = vld [vmem:[#allocation2 + $0x8] sm:$0xff]  ;;  %v236_v14 = vld [vmem:[#allocation5 + $0x500] sm:$0xff] }
 0x10e   :  { %5163 = vmatpush1.bf16.msra.mxu0 %v5162_v20  ;;  %5387 = vmatpush1.bf16.msra.mxu1 %v5386_v21  ;;  %v832_v20 = vld [vmem:[#allocation5 + $0x17a0] sm:$0xff]  ;;  %v839_v21 = vld [vmem:[#allocation5 + $0x17d8] sm:$0xff] }
 0x10f   :  { %5165 = vmatprep.subr.bf16.mxu0 %v5164_v22  ;;  %5389 = vmatprep.subr.bf16.mxu1 %v5388_v26  ;;  %v834_v22 = vld [vmem:[#allocation5 + $0x17b0] sm:$0xff]  ;;  %v5186_v29 = vpack.c.bf16 %v839_v21, %v832_v20  ;;  %v129_v20 = vld [vmem:[#allocation5 + $0x1a8] sm:$0xff]  ;;  %v124_v21 = vld [vmem:[#allocation5 + $0x180] sm:$0xff] }
 0x110   :  { %1137 = vmatprep.mubr.f32.mxu0 %v6765_v42  ;;  %1421 = vmatprep.mubr.f32.mxu1 %v6765_v42  ;;  %v854_v26 = vld [vmem:[#allocation5 + $0x1850] sm:$0xff]  ;;  %v5410_v30 = vpack.c.bf16 %v841_v24, %v834_v22  ;;  %v5652_v22 = vpack.c.bf16 %v243_v15, %v236_v14  ;;  %v137_v24 = vld [vmem:[#allocation5 + $0x1e8] sm:$0xff] }
 0x111   :  { %v5188_v31 = vpack.c.bf16 %v854_v26, %v847_v25  ;;  %v144_v25 = vld [vmem:[#allocation5 + $0x220] sm:$0xff]  ;;  %v250_v26 = vld [vmem:[#allocation5 + $0x570] sm:$0xff] }
 0x112   :  { %5167 = vmatpush1.bf16.msra.mxu0 %v5166_v32  ;;  %5391 = vmatpush1.bf16.msra.mxu1 %v5390_v33  ;;  %v846_v32 = vld [vmem:[#allocation5 + $0x1810] sm:$0xff]  ;;  %v853_v33 = vld [vmem:[#allocation5 + $0x1848] sm:$0xff] }
 0x113   :  { %5169 = vmatprep.subr.bf16.mxu0 %v5168_v34  ;;  %5393 = vmatprep.subr.bf16.mxu1 %v5392_v38  ;;  %v848_v34 = vld [vmem:[#allocation5 + $0x1820] sm:$0xff]  ;;  %v5190_v41 = vpack.c.bf16 %v853_v33, %v846_v32  ;;  %v143_v32 = vld [vmem:[#allocation5 + $0x218] sm:$0xff]  ;;  %v138_v33 = vld [vmem:[#allocation5 + $0x1f0] sm:$0xff] }
 0x114   :  { %v88_v38 = vld [vmem:[#allocation5 + $0x60] sm:$0xff]  ;;  %v5414_v43 = vpack.c.bf16 %v855_v36, %v848_v34  ;;  %v5656_v34 = vpack.c.bf16 %v257_v27, %v250_v26  ;;  %v151_v36 = vld [vmem:[#allocation5 + $0x258] sm:$0xff] }
 0x115   :  { %v5416_v44 = vpack.c.bf16 %v88_v38, %v81_v37  ;;  %v158_v37 = vld [vmem:[#allocation5 + $0x290] sm:$0xff]  ;;  %v264_v38 = vld [vmem:[#allocation5 + $0x5e0] sm:$0xff] }
 0x116   :  { %5171 = vmatpush1.bf16.msra.mxu0 %v5170_v45  ;;  %5395 = vmatpush1.bf16.msra.mxu1 %v5394_v46  ;;  %v80_v45 = vld [vmem:[#allocation5 + $0x20] sm:$0xff]  ;;  %v87_v46 = vld [vmem:[#allocation5 + $0x58] sm:$0xff] }
 0x117   :  { %5173 = vmatprep.subr.bf16.mxu0 %v5172_v47  ;;  %5397 = vmatprep.subr.bf16.mxu1 %v5396_v51  ;;  %v82_v47 = vld [vmem:[#allocation5 + $0x30] sm:$0xff]  ;;  %v5418_v55 = vpack.c.bf16 %v87_v46, %v80_v45  ;;  %v157_v45 = vld [vmem:[#allocation5 + $0x288] sm:$0xff]  ;;  %v152_v46 = vld [vmem:[#allocation5 + $0x260] sm:$0xff] }
 0x118   :  { %v102_v51 = vld [vmem:[#allocation5 + $0xd0] sm:$0xff]  ;;  %v5642_v56 = vpack.c.bf16 %v89_v49, %v82_v47  ;;  %v5660_v47 = vpack.c.bf16 %v271_v39, %v264_v38  ;;  %v165_v49 = vld [vmem:[#allocation5 + $0x2c8] sm:$0xff] }
 0x119   :  { %v6855_v38 = vld [vmem:[#allocation2] sm:$0xff] }
 0x11a   :  { %5175 = vmatpush1.bf16.msra.mxu0 %v5174_v57  ;;  %5399 = vmatpush1.bf16.msra.mxu1 %v5398_v58  ;;  %v5420_v57 = vpack.c.bf16 %v102_v51, %v95_v50  ;;  %v94_v58 = vld [vmem:[#allocation5 + $0x90] sm:$0xff]  ;;  %v172_v50 = vld [vmem:[#allocation5 + $0x300] sm:$0xff] }
 0x11b   :  { %5177 = vmatprep.subr.bf16.mxu0 %v5176_v59  ;;  %5401 = vmatprep.subr.bf16.mxu1 %v5400_v63  ;;  %v101_v59 = vld [vmem:[#allocation5 + $0xc8] sm:$0xff]  ;;  %v278_v51 = vld [vmem:[#allocation5 + $0x650] sm:$0xff] }
 0x11c   :  { %v109_v63 = vld [vmem:[#allocation5 + $0x108] sm:$0xff]  ;;  %v5422_v3 = vpack.c.bf16 %v101_v59, %v94_v58  ;;  %v171_v58 = vld [vmem:[#allocation5 + $0x2f8] sm:$0xff]  ;;  %v166_v59 = vld [vmem:[#allocation5 + $0x2d0] sm:$0xff]  ;;  %v5664_v60 = vpack.c.bf16 %v285_v52, %v278_v51 }
 0x11d   :  { %v460_v51 = vld [vmem:[#allocation5 + $0xc00] sm:$0xff]  ;;  %v467_v52 = vld [vmem:[#allocation5 + $0xc38] sm:$0xff] }
 0x11e   :  { %5179 = vmatpush1.bf16.msra.mxu0 %v5178_v5  ;;  %5403 = vmatpush1.bf16.msra.mxu1 %v5402_v6  ;;  %v5424_v5 = vpack.c.bf16 %v116_v0, %v109_v63  ;;  %v108_v6 = vld [vmem:[#allocation5 + $0x100] sm:$0xff]  ;;  %v186_v63 = vld [vmem:[#allocation5 + $0x370] sm:$0xff] }
 0x11f   :  { %5181 = vmatprep.subr.bf16.mxu0 %v5180_v7  ;;  %5405 = vmatprep.subr.bf16.mxu1 %v5404_v11  ;;  %v115_v7 = vld [vmem:[#allocation5 + $0x138] sm:$0xff]  ;;  %v292_v0 = vld [vmem:[#allocation5 + $0x6c0] sm:$0xff] }
 0x120   :  { %v123_v11 = vld [vmem:[#allocation5 + $0x178] sm:$0xff]  ;;  %v5426_v16 = vpack.c.bf16 %v115_v7, %v108_v6  ;;  %v185_v6 = vld [vmem:[#allocation5 + $0x368] sm:$0xff]  ;;  %v180_v7 = vld [vmem:[#allocation5 + $0x340] sm:$0xff] }
 0x122   :  { %5183 = vmatpush1.bf16.msra.mxu0 %v5182_v17  ;;  %5407 = vmatpush1.bf16.msra.mxu1 %v5406_v18  ;;  %v5650_v17 = vpack.c.bf16 %v117_v10, %v110_v8  ;;  %v5428_v18 = vpack.c.bf16 %v130_v12, %v123_v11  ;;  %v5668_v8 = vpack.c.bf16 %v299_v1, %v292_v0  ;;  %v193_v10 = vld [vmem:[#allocation5 + $0x3a8] sm:$0xff]  ;;  %v200_v11 = vld [vmem:[#allocation5 + $0x3e0] sm:$0xff]  ;;  %v418_v12 = vld [vmem:[#allocation5 + $0xab0] sm:$0xff] }
 0x123   :  { %5185 = vmatprep.subr.bf16.mxu0 %v5184_v19  ;;  %5409 = vmatprep.subr.bf16.mxu1 %v5408_v23  ;;  %v122_v19 = vld [vmem:[#allocation5 + $0x170] sm:$0xff]  ;;  %v131_v23 = vld [vmem:[#allocation5 + $0x1b8] sm:$0xff]  ;;  %v481_v1 = vld [vmem:[#allocation5 + $0xca8] sm:$0xff] }
 0x124   :  { %v5430_v28 = vpack.c.bf16 %v129_v20, %v122_v19  ;;  %v306_v19 = vld [vmem:[#allocation5 + $0x730] sm:$0xff] }
 0x125   :  { %v474_v0 = vld [vmem:[#allocation5 + $0xc70] sm:$0xff] }
 0x126   :  { %5187 = vmatpush1.bf16.msra.mxu0 %v5186_v29  ;;  %5411 = vmatpush1.bf16.msra.mxu1 %v5410_v30  ;;  %v5654_v29 = vpack.c.bf16 %v131_v23, %v124_v21  ;;  %v5432_v30 = vpack.c.bf16 %v144_v25, %v137_v24  ;;  %v313_v21 = vld [vmem:[#allocation5 + $0x768] sm:$0xff]  ;;  %v214_v23 = vld [vmem:[#allocation5 + $0x450] sm:$0xff]  ;;  %v432_v24 = vld [vmem:[#allocation5 + $0xb20] sm:$0xff] }
 0x127   :  { %5189 = vmatprep.subr.bf16.mxu0 %v5188_v31  ;;  %5413 = vmatprep.subr.bf16.mxu1 %v5412_v35  ;;  %v136_v31 = vld [vmem:[#allocation5 + $0x1e0] sm:$0xff]  ;;  %v145_v35 = vld [vmem:[#allocation5 + $0x228] sm:$0xff]  ;;  %v439_v25 = vld [vmem:[#allocation5 + $0xb58] sm:$0xff]  ;;  %v5674_v27 = vpack.c.bf16 %v313_v21, %v306_v19 }
 0x128   :  { %v5434_v40 = vpack.c.bf16 %v143_v32, %v136_v31  ;;  %v320_v31 = vld [vmem:[#allocation5 + $0x7a0] sm:$0xff]  ;;  %v5676_v32 = vpack.c.bf16 %v439_v25, %v432_v24  ;;  %v383_v21 = vld [vmem:[#allocation5 + $0x998] sm:$0xff]  ;;  %v502_v24 = vld [vmem:[#allocation5 + $0xd50] sm:$0xff] }
 0x129   :  { %v376_v19 = vld [vmem:[#allocation5 + $0x960] sm:$0xff]  ;;  %v509_v25 = vld [vmem:[#allocation5 + $0xd88] sm:$0xff] }
 0x12a   :  { %5191 = vmatpush1.bf16.msra.mxu0 %v5190_v41  ;;  %5415 = vmatpush1.bf16.msra.mxu1 %v5414_v43  ;;  %v5658_v41 = vpack.c.bf16 %v145_v35, %v138_v33  ;;  %v5436_v43 = vpack.c.bf16 %v158_v37, %v151_v36  ;;  %v327_v33 = vld [vmem:[#allocation5 + $0x7d8] sm:$0xff]  ;;  %v228_v35 = vld [vmem:[#allocation5 + $0x4c0] sm:$0xff]  ;;  %v446_v36 = vld [vmem:[#allocation5 + $0xb90] sm:$0xff] }
 0x12b   :  { %5417 = vmatprep.subr.bf16.mxu0 %v5416_v44  ;;  %5641 = vmatprep.subr.bf16.mxu1 %v5640_v48  ;;  %v150_v44 = vld [vmem:[#allocation5 + $0x250] sm:$0xff]  ;;  %v159_v48 = vld [vmem:[#allocation5 + $0x298] sm:$0xff]  ;;  %v453_v37 = vld [vmem:[#allocation5 + $0xbc8] sm:$0xff] }
 0x12c   :  { %v5438_v53 = vpack.c.bf16 %v157_v45, %v150_v44  ;;  %v227_v44 = vld [vmem:[#allocation5 + $0x4b8] sm:$0xff]  ;;  %v334_v45 = vld [vmem:[#allocation5 + $0x810] sm:$0xff] }
 0x12d   :  { %1138 = vmatmul.mubr.f32.vlgmr.msra.gmra.mrb[0].mxu0 %v6851_v54  ;;  %1422 = vmatmul.mubr.f32.vlgmr.msra.gmra.mrb[0].mxu1 %v6851_v54 }
 0x12e   :  { %5419 = vmatpush1.bf16.msra.mxu0 %v5418_v55  ;;  %5643 = vmatpush3.bf16.msra.mxu1 %v5642_v56  ;;  %v5662_v55 = vpack.c.bf16 %v159_v48, %v152_v46  ;;  %v5440_v56 = vpack.c.bf16 %v172_v50, %v165_v49  ;;  %v5680_v46 = vpack.c.bf16 %v453_v37, %v446_v36  ;;  %v235_v48 = vld [vmem:[#allocation5 + $0x4f8] sm:$0xff]  ;;  %v242_v49 = vld [vmem:[#allocation5 + $0x530] sm:$0xff]  ;;  %v6858_v50 = vld [vmem:[#allocation2 + $0x18] sm:$0xff] }
 0x12f   :  { %5421 = vmatprep.subr.bf16.mxu0 %v5420_v57  ;;  %5645 = vmatprep.subr.bf16.mxu1 %v5644_v61  ;;  %v164_v57 = vld [vmem:[#allocation5 + $0x2c0] sm:$0xff]  ;;  %v173_v61 = vld [vmem:[#allocation5 + $0x308] sm:$0xff]  ;;  %v523_v37 = vld [vmem:[#allocation5 + $0xdf8] sm:$0xff] }
 0x130   :  { %1776 = vmatprep.mubr.f32.mxu1 %v6627_v13  ;;  %1492 = vmatprep.mubr.f32.mxu0 %v6627_v13  ;;  %v5442_v2 = vpack.c.bf16 %v171_v58, %v164_v57  ;;  %v425_v13 = vld [vmem:[#allocation5 + $0xae8] sm:$0xff]  ;;  %v234_v57 = vld [vmem:[#allocation5 + $0x4f0] sm:$0xff]  ;;  %v516_v36 = vld [vmem:[#allocation5 + $0xdc0] sm:$0xff] }
 0x131   :  { %v5672_v20 = vpack.c.bf16 %v425_v13, %v418_v12  ;;  %v241_v58 = vld [vmem:[#allocation5 + $0x528] sm:$0xff]  ;;  %v488_v12 = vld [vmem:[#allocation5 + $0xce0] sm:$0xff]  ;;  %v495_v13 = vld [vmem:[#allocation5 + $0xd18] sm:$0xff] }
 0x132   :  { %5423 = vmatpush1.bf16.msra.mxu0 %v5422_v3  ;;  %5647 = vmatpush3.bf16.msra.mxu1 %v5646_v4  ;;  %v5666_v3 = vpack.c.bf16 %v173_v61, %v166_v59  ;;  %v5444_v4 = vpack.c.bf16 %v186_v63, %v179_v62  ;;  %v348_v59 = vld [vmem:[#allocation5 + $0x880] sm:$0xff]  ;;  %v355_v61 = vld [vmem:[#allocation5 + $0x8b8] sm:$0xff]  ;;  %v249_v62 = vld [vmem:[#allocation5 + $0x568] sm:$0xff] }
 0x133   :  { %5425 = vmatprep.subr.bf16.mxu0 %v5424_v5  ;;  %5649 = vmatprep.subr.bf16.mxu1 %v5648_v9  ;;  %v178_v5 = vld [vmem:[#allocation5 + $0x330] sm:$0xff]  ;;  %v187_v9 = vld [vmem:[#allocation5 + $0x378] sm:$0xff]  ;;  %v256_v63 = vld [vmem:[#allocation5 + $0x5a0] sm:$0xff] }
 0x134   :  { %v5446_v14 = vpack.c.bf16 %v185_v6, %v178_v5  ;;  %v5670_v15 = vpack.c.bf16 %v187_v9, %v180_v7  ;;  %v248_v5 = vld [vmem:[#allocation5 + $0x560] sm:$0xff]  ;;  %v255_v6 = vld [vmem:[#allocation5 + $0x598] sm:$0xff]  ;;  %v362_v7 = vld [vmem:[#allocation5 + $0x8f0] sm:$0xff] }
 0x135   :  { %v369_v9 = vld [vmem:[#allocation5 + $0x928] sm:$0xff] }
 0x136   :  { %5427 = vmatpush1.bf16.msra.mxu0 %v5426_v16  ;;  %5651 = vmatpush3.bf16.msra.mxu1 %v5650_v17  ;;  %v5448_v16 = vpack.c.bf16 %v200_v11, %v193_v10  ;;  %v192_v17 = vld [vmem:[#allocation5 + $0x3a0] sm:$0xff]  ;;  %v263_v10 = vld [vmem:[#allocation5 + $0x5d8] sm:$0xff]  ;;  %v270_v11 = vld [vmem:[#allocation5 + $0x610] sm:$0xff] }
 0x137   :  { %5429 = vmatprep.subr.bf16.mxu0 %v5428_v18  ;;  %5653 = vmatprep.subr.bf16.mxu1 %v5652_v22  ;;  %v199_v18 = vld [vmem:[#allocation5 + $0x3d8] sm:$0xff] }
 0x138   :  { %v207_v22 = vld [vmem:[#allocation5 + $0x418] sm:$0xff]  ;;  %v5450_v26 = vpack.c.bf16 %v199_v18, %v192_v17  ;;  %v262_v17 = vld [vmem:[#allocation5 + $0x5d0] sm:$0xff]  ;;  %v269_v18 = vld [vmem:[#allocation5 + $0x608] sm:$0xff] }
 0x13a   :  { %5431 = vmatpush1.bf16.msra.mxu0 %v5430_v28  ;;  %5655 = vmatpush3.bf16.msra.mxu1 %v5654_v29  ;;  %v5452_v28 = vpack.c.bf16 %v214_v23, %v207_v22  ;;  %v206_v29 = vld [vmem:[#allocation5 + $0x410] sm:$0xff]  ;;  %v277_v22 = vld [vmem:[#allocation5 + $0x648] sm:$0xff]  ;;  %v284_v23 = vld [vmem:[#allocation5 + $0x680] sm:$0xff] }
 0x13b   :  { %5433 = vmatprep.subr.bf16.mxu0 %v5432_v30  ;;  %5657 = vmatprep.subr.bf16.mxu1 %v5656_v34  ;;  %v213_v30 = vld [vmem:[#allocation5 + $0x448] sm:$0xff] }
 0x13c   :  { %v221_v34 = vld [vmem:[#allocation5 + $0x488] sm:$0xff]  ;;  %v5454_v39 = vpack.c.bf16 %v213_v30, %v206_v29  ;;  %v276_v29 = vld [vmem:[#allocation5 + $0x640] sm:$0xff]  ;;  %v283_v30 = vld [vmem:[#allocation5 + $0x678] sm:$0xff] }
 0x13e   :  { %5435 = vmatpush1.bf16.msra.mxu0 %v5434_v40  ;;  %5659 = vmatpush3.bf16.msra.mxu1 %v5658_v41  ;;  %v5678_v40 = vpack.c.bf16 %v327_v33, %v320_v31  ;;  %v5456_v41 = vpack.c.bf16 %v228_v35, %v221_v34  ;;  %v390_v31 = vld [vmem:[#allocation5 + $0x9d0] sm:$0xff]  ;;  %v397_v33 = vld [vmem:[#allocation5 + $0xa08] sm:$0xff]  ;;  %v291_v34 = vld [vmem:[#allocation5 + $0x6b8] sm:$0xff] }
 0x13f   :  { %5437 = vmatprep.subr.bf16.mxu0 %v5436_v43  ;;  %5661 = vmatprep.subr.bf16.mxu1 %v5660_v47  ;;  %v220_v43 = vld [vmem:[#allocation5 + $0x480] sm:$0xff]  ;;  %v341_v47 = vld [vmem:[#allocation5 + $0x848] sm:$0xff]  ;;  %v298_v35 = vld [vmem:[#allocation5 + $0x6f0] sm:$0xff] }
 0x142   :  { %5439 = vmatpush1.bf16.msra.mxu0 %v5438_v53  ;;  %5663 = vmatpush3.bf16.msra.mxu1 %v5662_v55  ;;  %v5458_v53 = vpack.c.bf16 %v227_v44, %v220_v43  ;;  %v5682_v55 = vpack.c.bf16 %v341_v47, %v334_v45  ;;  %v290_v43 = vld [vmem:[#allocation5 + $0x6b0] sm:$0xff]  ;;  %v297_v44 = vld [vmem:[#allocation5 + $0x6e8] sm:$0xff]  ;;  %v404_v45 = vld [vmem:[#allocation5 + $0xa40] sm:$0xff] }
 0x143   :  { %5441 = vmatprep.subr.bf16.mxu0 %v5440_v56  ;;  %5665 = vmatprep.subr.bf16.mxu1 %v5664_v60  ;;  %v5460_v56 = vpack.c.bf16 %v242_v49, %v235_v48  ;;  %v5684_v60 = vpack.c.bf16 %v467_v52, %v460_v51  ;;  %v411_v47 = vld [vmem:[#allocation5 + $0xa78] sm:$0xff]  ;;  %v305_v48 = vld [vmem:[#allocation5 + $0x728] sm:$0xff]  ;;  %v312_v49 = vld [vmem:[#allocation5 + $0x760] sm:$0xff] }
 0x144   :  { %v642_v51 = vld [vmem:[#allocation5 + $0x11b0] sm:$0xff]  ;;  %v649_v52 = vld [vmem:[#allocation5 + $0x11e8] sm:$0xff] }
 0x146   :  { %5443 = vmatpush1.bf16.msra.mxu0 %v5442_v2  ;;  %5667 = vmatpush3.bf16.msra.mxu1 %v5666_v3  ;;  %v5462_v2 = vpack.c.bf16 %v241_v58, %v234_v57  ;;  %v5686_v3 = vpack.c.bf16 %v355_v61, %v348_v59  ;;  %v304_v57 = vld [vmem:[#allocation5 + $0x720] sm:$0xff]  ;;  %v311_v58 = vld [vmem:[#allocation5 + $0x758] sm:$0xff]  ;;  %v530_v59 = vld [vmem:[#allocation5 + $0xe30] sm:$0xff] }
 0x147   :  { %5445 = vmatprep.subr.bf16.mxu0 %v5444_v4  ;;  %5669 = vmatprep.subr.bf16.mxu1 %v5668_v8  ;;  %v5464_v4 = vpack.c.bf16 %v256_v63, %v249_v62  ;;  %v5688_v8 = vpack.c.bf16 %v481_v1, %v474_v0  ;;  %v537_v61 = vld [vmem:[#allocation5 + $0xe68] sm:$0xff]  ;;  %v319_v62 = vld [vmem:[#allocation5 + $0x798] sm:$0xff]  ;;  %v326_v63 = vld [vmem:[#allocation5 + $0x7d0] sm:$0xff] }
 0x148   :  { %v656_v0 = vld [vmem:[#allocation5 + $0x1220] sm:$0xff]  ;;  %v663_v1 = vld [vmem:[#allocation5 + $0x1258] sm:$0xff] }
 0x14a   :  { %5447 = vmatpush1.bf16.msra.mxu0 %v5446_v14  ;;  %5671 = vmatpush3.bf16.msra.mxu1 %v5670_v15  ;;  %v5466_v14 = vpack.c.bf16 %v255_v6, %v248_v5  ;;  %v5690_v15 = vpack.c.bf16 %v369_v9, %v362_v7  ;;  %v318_v5 = vld [vmem:[#allocation5 + $0x790] sm:$0xff]  ;;  %v325_v6 = vld [vmem:[#allocation5 + $0x7c8] sm:$0xff]  ;;  %v544_v7 = vld [vmem:[#allocation5 + $0xea0] sm:$0xff] }
 0x14b   :  { %5449 = vmatprep.subr.bf16.mxu0 %v5448_v16  ;;  %5673 = vmatprep.subr.bf16.mxu1 %v5672_v20  ;;  %v5468_v16 = vpack.c.bf16 %v270_v11, %v263_v10  ;;  %v5692_v20 = vpack.c.bf16 %v495_v13, %v488_v12  ;;  %v551_v9 = vld [vmem:[#allocation5 + $0xed8] sm:$0xff]  ;;  %v333_v10 = vld [vmem:[#allocation5 + $0x808] sm:$0xff]  ;;  %v340_v11 = vld [vmem:[#allocation5 + $0x840] sm:$0xff] }
 0x14c   :  { %v670_v12 = vld [vmem:[#allocation5 + $0x1290] sm:$0xff]  ;;  %v677_v13 = vld [vmem:[#allocation5 + $0x12c8] sm:$0xff] }
 0x14d   :  { %1777 = vmatmul.mubr.f32.vlgmr.msra.gmra.mrb[2].mxu1 %v6855_v38 }
 0x14e   :  { %5451 = vmatpush1.bf16.msra.mxu0 %v5450_v26  ;;  %5675 = vmatpush3.bf16.msra.mxu1 %v5674_v27  ;;  %v5470_v26 = vpack.c.bf16 %v269_v18, %v262_v17  ;;  %v5694_v27 = vpack.c.bf16 %v383_v21, %v376_v19  ;;  %v5488_v17 = vpack.c.bf16 %v340_v11, %v333_v10  ;;  %v332_v18 = vld [vmem:[#allocation5 + $0x800] sm:$0xff]  ;;  %v339_v19 = vld [vmem:[#allocation5 + $0x838] sm:$0xff]  ;;  %v410_v11 = vld [vmem:[#allocation5 + $0xa70] sm:$0xff] }
 0x14f   :  { %5453 = vmatprep.subr.bf16.mxu0 %v5452_v28  ;;  %5677 = vmatprep.subr.bf16.mxu1 %v5676_v32  ;;  %v5472_v28 = vpack.c.bf16 %v284_v23, %v277_v22  ;;  %v5696_v32 = vpack.c.bf16 %v509_v25, %v502_v24  ;;  %v5712_v21 = vpack.c.bf16 %v677_v13, %v670_v12  ;;  %v565_v22 = vld [vmem:[#allocation5 + $0xf48] sm:$0xff]  ;;  %v347_v23 = vld [vmem:[#allocation5 + $0x878] sm:$0xff]  ;;  %v6865_v24 = vld [vmem:[#allocation2 + $0x28] sm:$0xff] }
 0x150   :  { %1846 = vmatprep.mubr.f32.mxu1 %v6858_v50  ;;  %v684_v25 = vld [vmem:[#allocation5 + $0x1300] sm:$0xff]  ;;  %v403_v10 = vld [vmem:[#allocation5 + $0xa38] sm:$0xff] }
 0x151   :  { %v740_v12 = vld [vmem:[#allocation5 + $0x14c0] sm:$0xff]  ;;  %v747_v13 = vld [vmem:[#allocation5 + $0x14f8] sm:$0xff] }
 0x152   :  { %5455 = vmatpush1.bf16.msra.mxu0 %v5454_v39  ;;  %5679 = vmatpush3.bf16.msra.mxu1 %v5678_v40  ;;  %v5474_v39 = vpack.c.bf16 %v283_v30, %v276_v29  ;;  %v5698_v40 = vpack.c.bf16 %v397_v33, %v390_v31  ;;  %v346_v30 = vld [vmem:[#allocation5 + $0x870] sm:$0xff]  ;;  %v353_v31 = vld [vmem:[#allocation5 + $0x8a8] sm:$0xff] }
 0x153   :  { %5457 = vmatprep.subr.bf16.mxu0 %v5456_v41  ;;  %5681 = vmatprep.subr.bf16.mxu1 %v5680_v46  ;;  %v5476_v41 = vpack.c.bf16 %v298_v35, %v291_v34  ;;  %v5700_v46 = vpack.c.bf16 %v523_v37, %v516_v36  ;;  %v579_v34 = vld [vmem:[#allocation5 + $0xfb8] sm:$0xff]  ;;  %v361_v35 = vld [vmem:[#allocation5 + $0x8e8] sm:$0xff]  ;;  %v368_v36 = vld [vmem:[#allocation5 + $0x920] sm:$0xff] }
 0x154   :  { %v698_v37 = vld [vmem:[#allocation5 + $0x1370] sm:$0xff] }
 0x156   :  { %5459 = vmatpush1.bf16.msra.mxu0 %v5458_v53  ;;  %5683 = vmatpush3.bf16.msra.mxu1 %v5682_v55  ;;  %v5478_v53 = vpack.c.bf16 %v297_v44, %v290_v43  ;;  %v5702_v55 = vpack.c.bf16 %v411_v47, %v404_v45  ;;  %v360_v43 = vld [vmem:[#allocation5 + $0x8e0] sm:$0xff]  ;;  %v367_v44 = vld [vmem:[#allocation5 + $0x918] sm:$0xff]  ;;  %v586_v45 = vld [vmem:[#allocation5 + $0xff0] sm:$0xff] }
 0x157   :  { %5461 = vmatprep.subr.bf16.mxu0 %v5460_v56  ;;  %5685 = vmatprep.subr.bf16.mxu1 %v5684_v60  ;;  %v5480_v56 = vpack.c.bf16 %v312_v49, %v305_v48  ;;  %v5704_v60 = vpack.c.bf16 %v649_v52, %v642_v51  ;;  %v593_v47 = vld [vmem:[#allocation5 + $0x1028] sm:$0xff]  ;;  %v375_v48 = vld [vmem:[#allocation5 + $0x958] sm:$0xff]  ;;  %v382_v49 = vld [vmem:[#allocation5 + $0x990] sm:$0xff] }
 0x158   :  { %v712_v51 = vld [vmem:[#allocation5 + $0x13e0] sm:$0xff]  ;;  %v719_v52 = vld [vmem:[#allocation5 + $0x1418] sm:$0xff] }
 0x15a   :  { %5463 = vmatpush1.bf16.msra.mxu0 %v5462_v2  ;;  %5687 = vmatpush3.bf16.msra.mxu1 %v5686_v3  ;;  %v5482_v2 = vpack.c.bf16 %v311_v58, %v304_v57  ;;  %v5706_v3 = vpack.c.bf16 %v537_v61, %v530_v59  ;;  %v374_v57 = vld [vmem:[#allocation5 + $0x950] sm:$0xff]  ;;  %v381_v58 = vld [vmem:[#allocation5 + $0x988] sm:$0xff]  ;;  %v600_v59 = vld [vmem:[#allocation5 + $0x1060] sm:$0xff] }
 0x15b   :  { %5465 = vmatprep.subr.bf16.mxu0 %v5464_v4  ;;  %5689 = vmatprep.subr.bf16.mxu1 %v5688_v8  ;;  %v5484_v4 = vpack.c.bf16 %v326_v63, %v319_v62  ;;  %v5708_v8 = vpack.c.bf16 %v663_v1, %v656_v0  ;;  %v607_v61 = vld [vmem:[#allocation5 + $0x1098] sm:$0xff]  ;;  %v389_v62 = vld [vmem:[#allocation5 + $0x9c8] sm:$0xff]  ;;  %v396_v63 = vld [vmem:[#allocation5 + $0xa00] sm:$0xff] }
 0x15c   :  { %v726_v0 = vld [vmem:[#allocation5 + $0x1450] sm:$0xff]  ;;  %v733_v1 = vld [vmem:[#allocation5 + $0x1488] sm:$0xff] }
 0x15e   :  { %5467 = vmatpush1.bf16.msra.mxu0 %v5466_v14  ;;  %5691 = vmatpush3.bf16.msra.mxu1 %v5690_v15  ;;  %v6862_v14 = vld [vmem:[#allocation2 + $0x10] sm:$0xff]  ;;  %v5486_v15 = vpack.c.bf16 %v325_v6, %v318_v5  ;;  %v388_v5 = vld [vmem:[#allocation5 + $0x9c0] sm:$0xff] }
 0x15f   :  { %5469 = vmatprep.subr.bf16.mxu0 %v5468_v16  ;;  %5693 = vmatprep.subr.bf16.mxu1 %v5692_v20  ;;  %v5710_v16 = vpack.c.bf16 %v551_v9, %v544_v7  ;;  %v558_v20 = vld [vmem:[#allocation5 + $0xf10] sm:$0xff]  ;;  %v395_v6 = vld [vmem:[#allocation5 + $0x9f8] sm:$0xff]  ;;  %v621_v9 = vld [vmem:[#allocation5 + $0x1108] sm:$0xff] }
 0x160   :  { %v614_v7 = vld [vmem:[#allocation5 + $0x10d0] sm:$0xff] }
 0x162   :  { %5471 = vmatpush1.bf16.msra.mxu0 %v5470_v26  ;;  %5695 = vmatpush3.bf16.msra.mxu1 %v5694_v27  ;;  %v691_v26 = vld [vmem:[#allocation5 + $0x1338] sm:$0xff]  ;;  %v5490_v27 = vpack.c.bf16 %v339_v19, %v332_v18  ;;  %v402_v18 = vld [vmem:[#allocation5 + $0xa30] sm:$0xff]  ;;  %v409_v19 = vld [vmem:[#allocation5 + $0xa68] sm:$0xff] }
 0x163   :  { %5473 = vmatprep.subr.bf16.mxu0 %v5472_v28  ;;  %5697 = vmatprep.subr.bf16.mxu1 %v5696_v32  ;;  %v5714_v28 = vpack.c.bf16 %v565_v22, %v558_v20  ;;  %v572_v32 = vld [vmem:[#allocation5 + $0xf80] sm:$0xff]  ;;  %v5716_v33 = vpack.c.bf16 %v691_v26, %v684_v25  ;;  %v635_v22 = vld [vmem:[#allocation5 + $0x1178] sm:$0xff]  ;;  %v5510_v25 = vpack.c.bf16 %v409_v19, %v402_v18  ;;  %v501_v19 = vld [vmem:[#allocation5 + $0xd48] sm:$0xff] }
 0x164   :  { %v628_v20 = vld [vmem:[#allocation5 + $0x1140] sm:$0xff]  ;;  %v831_v18 = vld [vmem:[#allocation5 + $0x1798] sm:$0xff] }
 0x165   :  { %v5734_v26 = vpack.c.bf16 %v635_v22, %v628_v20  ;;  %v508_v20 = vld [vmem:[#allocation5 + $0xd80] sm:$0xff] }
 0x166   :  { %5475 = vmatpush1.bf16.msra.mxu0 %v5474_v39  ;;  %5699 = vmatpush3.bf16.msra.mxu1 %v5698_v40  ;;  %v705_v39 = vld [vmem:[#allocation5 + $0x13a8] sm:$0xff]  ;;  %v5494_v40 = vpack.c.bf16 %v353_v31, %v346_v30  ;;  %v754_v30 = vld [vmem:[#allocation5 + $0x1530] sm:$0xff] }
 0x167   :  { %5477 = vmatprep.subr.bf16.mxu0 %v5476_v41  ;;  %5701 = vmatprep.subr.bf16.mxu1 %v5700_v46  ;;  %v5496_v41 = vpack.c.bf16 %v368_v36, %v361_v35  ;;  %v5720_v46 = vpack.c.bf16 %v705_v39, %v698_v37  ;;  %v761_v31 = vld [vmem:[#allocation5 + $0x1568] sm:$0xff]  ;;  %v430_v37 = vld [vmem:[#allocation5 + $0xb10] sm:$0xff] }
 0x168   :  { %v5737_v35 = vpack.c.bf16 %v761_v31, %v754_v30  ;;  %v437_v39 = vld [vmem:[#allocation5 + $0xb48] sm:$0xff] }
 0x16a   :  { %5479 = vmatpush1.bf16.msra.mxu0 %v5478_v53  ;;  %5703 = vmatpush3.bf16.msra.mxu1 %v5702_v55  ;;  %v5498_v53 = vpack.c.bf16 %v367_v44, %v360_v43  ;;  %v5722_v55 = vpack.c.bf16 %v593_v47, %v586_v45  ;;  %v445_v43 = vld [vmem:[#allocation5 + $0xb88] sm:$0xff]  ;;  %v452_v44 = vld [vmem:[#allocation5 + $0xbc0] sm:$0xff] }
 0x16b   :  { %5481 = vmatprep.subr.bf16.mxu0 %v5480_v56  ;;  %5705 = vmatprep.subr.bf16.mxu1 %v5704_v60  ;;  %v5500_v56 = vpack.c.bf16 %v382_v49, %v375_v48  ;;  %v5724_v60 = vpack.c.bf16 %v719_v52, %v712_v51  ;;  %v6870_v45 = vld [vmem:[#allocation2 + $0x20] sm:$0xff]  ;;  %v5520_v48 = vpack.c.bf16 %v452_v44, %v445_v43  ;;  %v444_v49 = vld [vmem:[#allocation5 + $0xb80] sm:$0xff]  ;;  %v451_v51 = vld [vmem:[#allocation5 + $0xbb8] sm:$0xff] }
 0x16c   :  { %v782_v52 = vld [vmem:[#allocation5 + $0x1610] sm:$0xff]  ;;  %v528_v44 = vld [vmem:[#allocation5 + $0xe20] sm:$0xff] }
 0x16d   :  { %1493 = vmatmul.mubr.f32.vlgmr.msra.gmra.mrb[2].mxu0 %v6855_v38  ;;  %1847 = vmatmul.mubr.f32.vlgmr.msra.gmra.mrb[4].mxu1 %v6862_v14  ;;  %v354_v38 = vld [vmem:[#allocation5 + $0x8b0] sm:$0xff] }
 0x16e   :  { %5483 = vmatpush1.bf16.msra.mxu0 %v5482_v2  ;;  %5707 = vmatpush3.bf16.msra.mxu1 %v5706_v3  ;;  %v5492_v29 = vpack.c.bf16 %v354_v38, %v347_v23  ;;  %v5502_v2 = vpack.c.bf16 %v381_v58, %v374_v57  ;;  %v5726_v3 = vpack.c.bf16 %v607_v61, %v600_v59  ;;  %v417_v23 = vld [vmem:[#allocation5 + $0xaa8] sm:$0xff]  ;;  %v424_v38 = vld [vmem:[#allocation5 + $0xae0] sm:$0xff] }
 0x16f   :  { %5485 = vmatprep.subr.bf16.mxu0 %v5484_v4  ;;  %5709 = vmatprep.subr.bf16.mxu1 %v5708_v8  ;;  %v5504_v4 = vpack.c.bf16 %v396_v63, %v389_v62  ;;  %v5728_v8 = vpack.c.bf16 %v733_v1, %v726_v0  ;;  %v5522_v57 = vpack.c.bf16 %v451_v51, %v444_v49  ;;  %v465_v61 = vld [vmem:[#allocation5 + $0xc28] sm:$0xff]  ;;  %v796_v62 = vld [vmem:[#allocation5 + $0x1680] sm:$0xff]  ;;  %v803_v63 = vld [vmem:[#allocation5 + $0x16b8] sm:$0xff] }
 0x170   :  { %1916 = vmatprep.mubr.f32.mxu1 %v6865_v24  ;;  %1563 = vmatprep.mubr.f32.mxu0 %v6858_v50  ;;  %v5718_v50 = vpack.c.bf16 %v579_v34, %v572_v32  ;;  %v431_v32 = vld [vmem:[#allocation5 + $0xb18] sm:$0xff]  ;;  %v473_v0 = vld [vmem:[#allocation5 + $0xc68] sm:$0xff]  ;;  %v480_v1 = vld [vmem:[#allocation5 + $0xca0] sm:$0xff] }
 0x172   :  { %5487 = vmatpush1.bf16.msra.mxu0 %v5486_v15  ;;  %5711 = vmatpush3.bf16.msra.mxu1 %v5710_v16  ;;  %v5506_v15 = vpack.c.bf16 %v395_v6, %v388_v5  ;;  %v5730_v16 = vpack.c.bf16 %v621_v9, %v614_v7  ;;  %v472_v5 = vld [vmem:[#allocation5 + $0xc60] sm:$0xff]  ;;  %v479_v6 = vld [vmem:[#allocation5 + $0xc98] sm:$0xff]  ;;  %v810_v7 = vld [vmem:[#allocation5 + $0x16f0] sm:$0xff] }
 0x173   :  { %5489 = vmatprep.subr.bf16.mxu0 %v5488_v17  ;;  %5713 = vmatprep.subr.bf16.mxu1 %v5712_v21  ;;  %v5508_v17 = vpack.c.bf16 %v410_v11, %v403_v10  ;;  %v5732_v21 = vpack.c.bf16 %v747_v13, %v740_v12  ;;  %v487_v9 = vld [vmem:[#allocation5 + $0xcd8] sm:$0xff]  ;;  %v494_v10 = vld [vmem:[#allocation5 + $0xd10] sm:$0xff]  ;;  %v5530_v11 = vpack.c.bf16 %v479_v6, %v472_v5  ;;  %v584_v5 = vld [vmem:[#allocation5 + $0xfe0] sm:$0xff] }
 0x174   :  { %v5532_v13 = vpack.c.bf16 %v494_v10, %v487_v9  ;;  %v591_v6 = vld [vmem:[#allocation5 + $0x1018] sm:$0xff]  ;;  %v598_v10 = vld [vmem:[#allocation5 + $0x1050] sm:$0xff] }
 0x176   :  { %5491 = vmatpush1.bf16.msra.mxu0 %v5490_v27  ;;  %5715 = vmatpush3.bf16.msra.mxu1 %v5714_v28  ;;  %v5512_v27 = vpack.c.bf16 %v424_v38, %v417_v23  ;;  %v416_v28 = vld [vmem:[#allocation5 + $0xaa0] sm:$0xff]  ;;  %v5536_v23 = vpack.c.bf16 %v508_v20, %v501_v19  ;;  %v627_v19 = vld [vmem:[#allocation5 + $0x1138] sm:$0xff]  ;;  %v634_v20 = vld [vmem:[#allocation5 + $0x1170] sm:$0xff] }
 0x177   :  { %5493 = vmatprep.subr.bf16.mxu0 %v5492_v29  ;;  %5717 = vmatprep.subr.bf16.mxu1 %v5716_v33  ;;  %v423_v29 = vld [vmem:[#allocation5 + $0xad8] sm:$0xff]  ;;  %v438_v33 = vld [vmem:[#allocation5 + $0xb50] sm:$0xff]  ;;  %v500_v38 = vld [vmem:[#allocation5 + $0xd40] sm:$0xff] }
 0x178   :  { %v5514_v34 = vpack.c.bf16 %v423_v29, %v416_v28  ;;  %v5516_v36 = vpack.c.bf16 %v438_v33, %v431_v32  ;;  %v515_v28 = vld [vmem:[#allocation5 + $0xdb8] sm:$0xff]  ;;  %v522_v29 = vld [vmem:[#allocation5 + $0xdf0] sm:$0xff] }
 0x179   :  { %v5540_v32 = vpack.c.bf16 %v522_v29, %v515_v28  ;;  %v514_v33 = vld [vmem:[#allocation5 + $0xdb0] sm:$0xff]  ;;  %v640_v29 = vld [vmem:[#allocation5 + $0x11a0] sm:$0xff] }
 0x17a   :  { %5495 = vmatpush1.bf16.msra.mxu0 %v5494_v40  ;;  %5719 = vmatpush3.bf16.msra.mxu1 %v5718_v50  ;;  %v768_v40 = vld [vmem:[#allocation5 + $0x15a0] sm:$0xff]  ;;  %v6766_v50 = vmov 0.0|0.0  }
 0x17b   :  { %5497 = vmatprep.subr.bf16.mxu0 %v5496_v41  ;;  %5721 = vmatprep.subr.bf16.mxu1 %v5720_v46  ;;  %v775_v41 = vld [vmem:[#allocation5 + $0x15d8] sm:$0xff]  ;;  %v5518_v46 = vpack.c.bf16 %v437_v39, %v430_v37  ;;  %v529_v37 = vld [vmem:[#allocation5 + $0xe28] sm:$0xff]  ;;  %v536_v39 = vld [vmem:[#allocation5 + $0xe60] sm:$0xff] }
 0x17c   :  { %v5740_v47 = vpack.c.bf16 %v775_v41, %v768_v40  ;;  %v5544_v43 = vpack.c.bf16 %v536_v39, %v529_v37  ;;  %v669_v37 = vld [vmem:[#allocation5 + $0x1288] sm:$0xff]  ;;  %v676_v39 = vld [vmem:[#allocation5 + $0x12c0] sm:$0xff] }
 0x17e   :  { %5499 = vmatpush1.bf16.msra.mxu0 %v5498_v53  ;;  %5723 = vmatpush3.bf16.msra.mxu1 %v5722_v55  ;;  %v789_v53 = vld [vmem:[#allocation5 + $0x1648] sm:$0xff]  ;;  %v459_v55 = vld [vmem:[#allocation5 + $0xbf8] sm:$0xff] }
 0x17f   :  { %5501 = vmatprep.subr.bf16.mxu0 %v5500_v56  ;;  %5725 = vmatprep.subr.bf16.mxu1 %v5724_v60  ;;  %v466_v56 = vld [vmem:[#allocation5 + $0xc30] sm:$0xff]  ;;  %v5743_v58 = vpack.c.bf16 %v789_v53, %v782_v52  ;;  %v549_v53 = vld [vmem:[#allocation5 + $0xec8] sm:$0xff] }
 0x180   :  { %v5524_v59 = vpack.c.bf16 %v466_v56, %v459_v55  ;;  %v458_v60 = vld [vmem:[#allocation5 + $0xbf0] sm:$0xff]  ;;  %v557_v55 = vld [vmem:[#allocation5 + $0xf08] sm:$0xff]  ;;  %v564_v56 = vld [vmem:[#allocation5 + $0xf40] sm:$0xff] }
 0x181   :  { %v542_v52 = vld [vmem:[#allocation5 + $0xe90] sm:$0xff] }
 0x182   :  { %5503 = vmatpush1.bf16.msra.mxu0 %v5502_v2  ;;  %5727 = vmatpush3.bf16.msra.mxu1 %v5726_v3  ;;  %v5526_v2 = vpack.c.bf16 %v465_v61, %v458_v60  ;;  %v5746_v3 = vpack.c.bf16 %v803_v63, %v796_v62  ;;  %v563_v60 = vld [vmem:[#allocation5 + $0xf38] sm:$0xff]  ;;  %v578_v62 = vld [vmem:[#allocation5 + $0xfb0] sm:$0xff] }
 0x183   :  { %5505 = vmatprep.subr.bf16.mxu0 %v5504_v4  ;;  %5729 = vmatprep.subr.bf16.mxu1 %v5728_v8  ;;  %v5528_v4 = vpack.c.bf16 %v480_v1, %v473_v0  ;;  %v817_v8 = vld [vmem:[#allocation5 + $0x1728] sm:$0xff]  ;;  %v571_v61 = vld [vmem:[#allocation5 + $0xf78] sm:$0xff]  ;;  %v570_v1 = vld [vmem:[#allocation5 + $0xf70] sm:$0xff] }
 0x184   :  { %v5749_v12 = vpack.c.bf16 %v817_v8, %v810_v7  ;;  %v5556_v0 = vpack.c.bf16 %v578_v62, %v571_v61  ;;  %v599_v7 = vld [vmem:[#allocation5 + $0x1058] sm:$0xff]  ;;  %v606_v8 = vld [vmem:[#allocation5 + $0x1090] sm:$0xff] }
 0x185   :  { %v5564_v9 = vpack.c.bf16 %v606_v8, %v599_v7  ;;  %v718_v61 = vld [vmem:[#allocation5 + $0x1410] sm:$0xff] }
 0x186   :  { %5507 = vmatpush1.bf16.msra.mxu0 %v5506_v15  ;;  %5731 = vmatpush3.bf16.msra.mxu1 %v5730_v16  ;;  %v486_v15 = vld [vmem:[#allocation5 + $0xcd0] sm:$0xff]  ;;  %v493_v16 = vld [vmem:[#allocation5 + $0xd08] sm:$0xff] }
 0x187   :  { %5509 = vmatprep.subr.bf16.mxu0 %v5508_v17  ;;  %5733 = vmatprep.subr.bf16.mxu1 %v5732_v21  ;;  %v824_v17 = vld [vmem:[#allocation5 + $0x1760] sm:$0xff]  ;;  %v5534_v21 = vpack.c.bf16 %v493_v16, %v486_v15  ;;  %v746_v7 = vld [vmem:[#allocation5 + $0x14f0] sm:$0xff] }
 0x188   :  { %v5752_v22 = vpack.c.bf16 %v831_v18, %v824_v17  ;;  %v612_v17 = vld [vmem:[#allocation5 + $0x10c0] sm:$0xff]  ;;  %v619_v18 = vld [vmem:[#allocation5 + $0x10f8] sm:$0xff] }
 0x18a   :  { %5511 = vmatpush1.bf16.msra.mxu0 %v5510_v25  ;;  %5735 = vmatpush3.bf16.msra.mxu1 %v5734_v26  ;;  %v507_v25 = vld [vmem:[#allocation5 + $0xd78] sm:$0xff]  ;;  %v838_v26 = vld [vmem:[#allocation5 + $0x17d0] sm:$0xff] }
 0x18b   :  { %5513 = vmatprep.subr.bf16.mxu0 %v5512_v27  ;;  %5736 = vmatprep.subr.bf16.mxu1 %v6766_v50  ;;  %v845_v27 = vld [vmem:[#allocation5 + $0x1808] sm:$0xff]  ;;  %v5538_v30 = vpack.c.bf16 %v507_v25, %v500_v38 }
 0x18c   :  { %v5755_v31 = vpack.c.bf16 %v845_v27, %v838_v26  ;;  %v633_v38 = vld [vmem:[#allocation5 + $0x1168] sm:$0xff]  ;;  %v648_v26 = vld [vmem:[#allocation5 + $0x11e0] sm:$0xff] }
 0x18d   :  { %1917 = vmatmul.mubr.f32.vlgmr.msra.gmra.mrb[6].mxu1 %v6870_v45  ;;  %v641_v25 = vld [vmem:[#allocation5 + $0x11a8] sm:$0xff] }
 0x18e   :  { %5515 = vmatpush1.bf16.msra.mxu0 %v5514_v34  ;;  %5738 = vmatpush3.bf16.msra.mxu1 %v5737_v35  ;;  %v521_v34 = vld [vmem:[#allocation5 + $0xde8] sm:$0xff]  ;;  %v852_v35 = vld [vmem:[#allocation5 + $0x1840] sm:$0xff]  ;;  %v5576_v28 = vpack.c.bf16 %v648_v26, %v641_v25 }
 0x18f   :  { %5517 = vmatprep.subr.bf16.mxu0 %v5516_v36  ;;  %5739 = vmatprep.subr.bf16.mxu1 %v6766_v50  ;;  %v859_v36 = vld [vmem:[#allocation5 + $0x1878] sm:$0xff]  ;;  %v5542_v40 = vpack.c.bf16 %v521_v34, %v514_v33  ;;  %v788_v25 = vld [vmem:[#allocation5 + $0x1640] sm:$0xff] }
 0x190   :  { %4930 = vmatprep.mubr.msk.f32.mxu1 %vm6767_vm0, %v6765_v42  ;;  %v5758_v41 = vpack.c.bf16 %v859_v36, %v852_v35  ;;  %v654_v35 = vld [vmem:[#allocation5 + $0x1210] sm:$0xff]  ;;  %v661_v36 = vld [vmem:[#allocation5 + $0x1248] sm:$0xff] }
 0x192   :  { %5519 = vmatpush1.bf16.msra.mxu0 %v5518_v46  ;;  %5741 = vmatpush3.bf16.msra.mxu1 %v5740_v47  ;;  %v535_v46 = vld [vmem:[#allocation5 + $0xe58] sm:$0xff] }
 0x193   :  { %5521 = vmatprep.subr.bf16.mxu0 %v5520_v48  ;;  %5742 = vmatprep.subr.bf16.mxu1 %v6766_v50  ;;  %v543_v47 = vld [vmem:[#allocation5 + $0xe98] sm:$0xff]  ;;  %v550_v48 = vld [vmem:[#allocation5 + $0xed0] sm:$0xff]  ;;  %v5546_v49 = vpack.c.bf16 %v535_v46, %v528_v44 }
 0x194   :  { %v5548_v51 = vpack.c.bf16 %v550_v48, %v543_v47  ;;  %v675_v44 = vld [vmem:[#allocation5 + $0x12b8] sm:$0xff]  ;;  %v690_v47 = vld [vmem:[#allocation5 + $0x1330] sm:$0xff] }
 0x195   :  { %v683_v46 = vld [vmem:[#allocation5 + $0x12f8] sm:$0xff] }
 0x196   :  { %5523 = vmatpush1.bf16.msra.mxu0 %v5522_v57  ;;  %5744 = vmatpush3.bf16.msra.mxu1 %v5743_v58  ;;  %v5550_v57 = vpack.c.bf16 %v549_v53, %v542_v52  ;;  %v5552_v58 = vpack.c.bf16 %v564_v56, %v557_v55  ;;  %v689_v52 = vld [vmem:[#allocation5 + $0x1328] sm:$0xff]  ;;  %v704_v55 = vld [vmem:[#allocation5 + $0x13a0] sm:$0xff] }
 0x197   :  { %5525 = vmatprep.subr.bf16.mxu0 %v5524_v59  ;;  %5745 = vmatprep.subr.bf16.mxu1 %v6766_v50  ;;  %v556_v59 = vld [vmem:[#allocation5 + $0xf00] sm:$0xff]  ;;  %v697_v53 = vld [vmem:[#allocation5 + $0x1368] sm:$0xff] }
 0x198   :  { %v5554_v63 = vpack.c.bf16 %v563_v60, %v556_v59  ;;  %v703_v59 = vld [vmem:[#allocation5 + $0x1398] sm:$0xff] }
 0x199   :  { %v711_v60 = vld [vmem:[#allocation5 + $0x13d8] sm:$0xff] }
 0x19a   :  { %5527 = vmatpush1.bf16.msra.mxu0 %v5526_v2  ;;  %5747 = vmatpush3.bf16.msra.mxu1 %v5746_v3  ;;  %v577_v2 = vld [vmem:[#allocation5 + $0xfa8] sm:$0xff] }
 0x19b   :  { %5529 = vmatprep.subr.bf16.mxu0 %v5528_v4  ;;  %5748 = vmatprep.subr.bf16.mxu1 %v6766_v50  ;;  %v585_v3 = vld [vmem:[#allocation5 + $0xfe8] sm:$0xff]  ;;  %v5558_v4 = vpack.c.bf16 %v577_v2, %v570_v1 }
 0x19c   :  { %v717_v1 = vld [vmem:[#allocation5 + $0x1408] sm:$0xff] }
 0x19d   :  { %v725_v2 = vld [vmem:[#allocation5 + $0x1448] sm:$0xff] }
 0x19e   :  { %5531 = vmatpush1.bf16.msra.mxu0 %v5530_v11  ;;  %5750 = vmatpush3.bf16.msra.mxu1 %v5749_v12  ;;  %v605_v11 = vld [vmem:[#allocation5 + $0x1088] sm:$0xff] }
 0x19f   :  { %5533 = vmatprep.subr.bf16.mxu0 %v5532_v13  ;;  %5751 = vmatprep.subr.bf16.mxu1 %v6766_v50  ;;  %v613_v12 = vld [vmem:[#allocation5 + $0x10c8] sm:$0xff]  ;;  %v620_v13 = vld [vmem:[#allocation5 + $0x1100] sm:$0xff]  ;;  %v5566_v15 = vpack.c.bf16 %v605_v11, %v598_v10 }
 0x1a0   :  { %v5568_v16 = vpack.c.bf16 %v620_v13, %v613_v12  ;;  %v745_v10 = vld [vmem:[#allocation5 + $0x14e8] sm:$0xff]  ;;  %v760_v12 = vld [vmem:[#allocation5 + $0x1560] sm:$0xff] }
 0x1a1   :  { %v753_v11 = vld [vmem:[#allocation5 + $0x1528] sm:$0xff] }
 0x1a2   :  { %5535 = vmatpush1.bf16.msra.mxu0 %v5534_v21  ;;  %5753 = vmatpush3.bf16.msra.mxu1 %v5752_v22  ;;  %v5570_v21 = vpack.c.bf16 %v619_v18, %v612_v17  ;;  %v5572_v22 = vpack.c.bf16 %v634_v20, %v627_v19  ;;  %v759_v17 = vld [vmem:[#allocation5 + $0x1558] sm:$0xff]  ;;  %v774_v19 = vld [vmem:[#allocation5 + $0x15d0] sm:$0xff] }
 0x1a3   :  { %5537 = vmatprep.subr.bf16.mxu0 %v5536_v23  ;;  %5754 = vmatprep.subr.bf16.mxu1 %v6766_v50  ;;  %v626_v23 = vld [vmem:[#allocation5 + $0x1130] sm:$0xff]  ;;  %v767_v18 = vld [vmem:[#allocation5 + $0x1598] sm:$0xff] }
 0x1a4   :  { %v5574_v27 = vpack.c.bf16 %v633_v38, %v626_v23  ;;  %v773_v23 = vld [vmem:[#allocation5 + $0x15c8] sm:$0xff] }
 0x1a5   :  { %v781_v38 = vld [vmem:[#allocation5 + $0x1608] sm:$0xff] }
 0x1a6   :  { %5539 = vmatpush1.bf16.msra.mxu0 %v5538_v30  ;;  %5756 = vmatpush3.bf16.msra.mxu1 %v5755_v31  ;;  %v647_v30 = vld [vmem:[#allocation5 + $0x11d8] sm:$0xff] }
 0x1a7   :  { %5541 = vmatprep.subr.bf16.mxu0 %v5540_v32  ;;  %5757 = vmatprep.subr.bf16.mxu1 %v6766_v50  ;;  %v655_v31 = vld [vmem:[#allocation5 + $0x1218] sm:$0xff]  ;;  %v662_v32 = vld [vmem:[#allocation5 + $0x1250] sm:$0xff]  ;;  %v5578_v33 = vpack.c.bf16 %v647_v30, %v640_v29 }
 0x1a8   :  { %v5580_v34 = vpack.c.bf16 %v662_v32, %v655_v31  ;;  %v787_v29 = vld [vmem:[#allocation5 + $0x1638] sm:$0xff]  ;;  %v802_v31 = vld [vmem:[#allocation5 + $0x16b0] sm:$0xff] }
 0x1a9   :  { %v795_v30 = vld [vmem:[#allocation5 + $0x1678] sm:$0xff] }
 0x1aa   :  { %5543 = vmatpush1.bf16.msra.mxu0 %v5542_v40  ;;  %5759 = vmatpush3.bf16.msra.mxu1 %v5758_v41  ;;  %v5582_v40 = vpack.c.bf16 %v661_v36, %v654_v35  ;;  %v5584_v41 = vpack.c.bf16 %v676_v39, %v669_v37  ;;  %v801_v35 = vld [vmem:[#allocation5 + $0x16a8] sm:$0xff]  ;;  %v816_v37 = vld [vmem:[#allocation5 + $0x1720] sm:$0xff] }
 0x1ab   :  { %5545 = vmatprep.subr.bf16.mxu0 %v5544_v43  ;;  %v668_v43 = vld [vmem:[#allocation5 + $0x1280] sm:$0xff]  ;;  %v809_v36 = vld [vmem:[#allocation5 + $0x16e8] sm:$0xff] }
 0x1ac   :  { %v5586_v48 = vpack.c.bf16 %v675_v44, %v668_v43  ;;  %v5624_v39 = vpack.c.bf16 %v816_v37, %v809_v36  ;;  %v823_v43 = vld [vmem:[#allocation5 + $0x1758] sm:$0xff]  ;;  %v830_v44 = vld [vmem:[#allocation5 + $0x1790] sm:$0xff] }
 0x1ad   :  { %1564 = vmatmul.mubr.f32.vlgmr.msra.gmra.mrb[2].mxu0 %v6862_v14  ;;  %4931 = vmatmul.mubr.f32.vlgmr.msra.gmra.mrb[8].mxu1 %v6851_v54  ;;  %v592_v14 = vld [vmem:[#allocation5 + $0x1020] sm:$0xff] }
 0x1ae   :  { %5547 = vmatpush1.bf16.msra.mxu0 %v5546_v49  ;;  %1634 = vmatprep.mubr.f32.mxu0 %v6865_v24  ;;  %v5560_v54 = vpack.c.bf16 %v592_v14, %v585_v3  ;;  %v5562_v24 = vpack.c.bf16 %v591_v6, %v584_v5  ;;  %v5588_v49 = vpack.c.bf16 %v690_v47, %v683_v46  ;;  %v732_v3 = vld [vmem:[#allocation5 + $0x1480] sm:$0xff]  ;;  %v731_v5 = vld [vmem:[#allocation5 + $0x1478] sm:$0xff] }
 0x1af   :  { %5549 = vmatprep.subr.bf16.mxu0 %v5548_v51  ;;  %v682_v51 = vld [vmem:[#allocation5 + $0x12f0] sm:$0xff]  ;;  %v739_v6 = vld [vmem:[#allocation5 + $0x14b8] sm:$0xff]  ;;  %v5628_v47 = vpack.c.bf16 %v830_v44, %v823_v43 }
 0x1b0   :  { %v5590_v56 = vpack.c.bf16 %v689_v52, %v682_v51  ;;  %v837_v51 = vld [vmem:[#allocation5 + $0x17c8] sm:$0xff]  ;;  %v844_v52 = vld [vmem:[#allocation5 + $0x1800] sm:$0xff] }
 0x1b2   :  { %5551 = vmatpush1.bf16.msra.mxu0 %v5550_v57  ;;  %v5592_v57 = vpack.c.bf16 %v704_v55, %v697_v53  ;;  %v836_v53 = vld [vmem:[#allocation5 + $0x17c0] sm:$0xff]  ;;  %v843_v55 = vld [vmem:[#allocation5 + $0x17f8] sm:$0xff] }
 0x1b3   :  { %5553 = vmatprep.subr.bf16.mxu0 %v5552_v58  ;;  %v696_v58 = vld [vmem:[#allocation5 + $0x1360] sm:$0xff] }
 0x1b4   :  { %v5594_v62 = vpack.c.bf16 %v703_v59, %v696_v58  ;;  %v858_v58 = vld [vmem:[#allocation5 + $0x1870] sm:$0xff] }
 0x1b5   :  { %v850_v59 = vld [vmem:[#allocation5 + $0x1830] sm:$0xff] }
 0x1b6   :  { %5555 = vmatpush1.bf16.msra.mxu0 %v5554_v63  ;;  %v5596_v63 = vpack.c.bf16 %v718_v61, %v711_v60  ;;  %v857_v60 = vld [vmem:[#allocation5 + $0x1868] sm:$0xff]  ;;  %v5632_v61 = vpack.c.bf16 %v844_v52, %v837_v51 }
 0x1b7   :  { %5557 = vmatprep.subr.bf16.mxu0 %v5556_v0  ;;  %v710_v0 = vld [vmem:[#allocation5 + $0x13d0] sm:$0xff] }
 0x1b8   :  { %v5598_v14 = vpack.c.bf16 %v717_v1, %v710_v0 }
 0x1ba   :  { %5559 = vmatpush1.bf16.msra.mxu0 %v5558_v4  ;;  %v5600_v4 = vpack.c.bf16 %v732_v3, %v725_v2 }
 0x1bb   :  { %5561 = vmatprep.subr.bf16.mxu0 %v5560_v54  ;;  %v724_v54 = vld [vmem:[#allocation5 + $0x1440] sm:$0xff] }
 0x1bc   :  { %v5602_v8 = vpack.c.bf16 %v731_v5, %v724_v54 }
 0x1be   :  { %5563 = vmatpush1.bf16.msra.mxu0 %v5562_v24  ;;  %v5604_v24 = vpack.c.bf16 %v746_v7, %v739_v6 }
 0x1bf   :  { %5565 = vmatprep.subr.bf16.mxu0 %v5564_v9  ;;  %v738_v9 = vld [vmem:[#allocation5 + $0x14b0] sm:$0xff] }
 0x1c0   :  { %v5606_v13 = vpack.c.bf16 %v745_v10, %v738_v9 }
 0x1c2   :  { %5567 = vmatpush1.bf16.msra.mxu0 %v5566_v15  ;;  %v5608_v15 = vpack.c.bf16 %v760_v12, %v753_v11 }
 0x1c3   :  { %5569 = vmatprep.subr.bf16.mxu0 %v5568_v16  ;;  %v752_v16 = vld [vmem:[#allocation5 + $0x1520] sm:$0xff] }
 0x1c4   :  { %v5610_v20 = vpack.c.bf16 %v759_v17, %v752_v16 }
 0x1c6   :  { %5571 = vmatpush1.bf16.msra.mxu0 %v5570_v21  ;;  %v5612_v21 = vpack.c.bf16 %v774_v19, %v767_v18 }
 0x1c7   :  { %5573 = vmatprep.subr.bf16.mxu0 %v5572_v22  ;;  %v766_v22 = vld [vmem:[#allocation5 + $0x1590] sm:$0xff] }
 0x1c8   :  { %v5614_v26 = vpack.c.bf16 %v773_v23, %v766_v22 }
 0x1ca   :  { %5575 = vmatpush1.bf16.msra.mxu0 %v5574_v27  ;;  %v5616_v27 = vpack.c.bf16 %v788_v25, %v781_v38 }
 0x1cb   :  { %5577 = vmatprep.subr.bf16.mxu0 %v5576_v28  ;;  %v780_v28 = vld [vmem:[#allocation5 + $0x1600] sm:$0xff] }
 0x1cc   :  { %v5618_v32 = vpack.c.bf16 %v787_v29, %v780_v28 }
 0x1ce   :  { %5579 = vmatpush1.bf16.msra.mxu0 %v5578_v33  ;;  %v5620_v33 = vpack.c.bf16 %v802_v31, %v795_v30 }
 0x1cf   :  { %5581 = vmatprep.subr.bf16.mxu0 %v5580_v34  ;;  %v794_v34 = vld [vmem:[#allocation5 + $0x1670] sm:$0xff] }
 0x1d2   :  { %5583 = vmatpush1.bf16.msra.mxu0 %v5582_v40  ;;  %v808_v40 = vld [vmem:[#allocation5 + $0x16e0] sm:$0xff] }
 0x1d3   :  { %5585 = vmatprep.subr.bf16.mxu0 %v5584_v41  ;;  %v815_v41 = vld [vmem:[#allocation5 + $0x1718] sm:$0xff] }
 0x1d4   :  { %v5626_v46 = vpack.c.bf16 %v815_v41, %v808_v40 }
 0x1d6   :  { %5587 = vmatpush1.bf16.msra.mxu0 %v5586_v48  ;;  %v822_v48 = vld [vmem:[#allocation5 + $0x1750] sm:$0xff] }
 0x1d7   :  { %5589 = vmatprep.subr.bf16.mxu0 %v5588_v49  ;;  %v829_v49 = vld [vmem:[#allocation5 + $0x1788] sm:$0xff] }
 0x1da   :  { %5591 = vmatpush1.bf16.msra.mxu0 %v5590_v56  ;;  %v851_v56 = vld [vmem:[#allocation5 + $0x1838] sm:$0xff] }
 0x1db   :  { %5593 = vmatprep.subr.bf16.mxu0 %v5592_v57  ;;  %v5630_v57 = vpack.c.bf16 %v829_v49, %v822_v48 }
 0x1de   :  { %5595 = vmatpush1.bf16.msra.mxu0 %v5594_v62 }
 0x1df   :  { %5597 = vmatprep.subr.bf16.mxu0 %v5596_v63  ;;  %v5634_v63 = vpack.c.bf16 %v843_v55, %v836_v53 }
 0x1e2   :  { %5599 = vmatpush1.bf16.msra.mxu0 %v5598_v14  ;;  %v5636_v14 = vpack.c.bf16 %v858_v58, %v851_v56 }
 0x1e3   :  { %5601 = vmatprep.subr.bf16.mxu0 %v5600_v4  ;;  %v5638_v4 = vpack.c.bf16 %v857_v60, %v850_v59 }
 0x1e6   :  { %5603 = vmatpush1.bf16.msra.mxu0 %v5602_v8 }
 0x1e7   :  { %5605 = vmatprep.subr.bf16.mxu0 %v5604_v24 }
 0x1ea   :  { %5607 = vmatpush1.bf16.msra.mxu0 %v5606_v13 }
 0x1eb   :  { %5609 = vmatprep.subr.bf16.mxu0 %v5608_v15 }
 0x1ed   :  { %1635 = vmatmul.mubr.f32.vlgmr.msra.gmra.mrb[2].mxu0 %v6870_v45  ;;  %v5622_v45 = vpack.c.bf16 %v801_v35, %v794_v34 }
 0x1ee   :  { %5611 = vmatpush1.bf16.msra.mxu0 %v5610_v20  ;;  %1705 = vmatprep.mubr.f32.mxu0 %v6765_v42 }
 0x1ef   :  { %5613 = vmatprep.subr.bf16.mxu0 %v5612_v21 }
 0x1f2   :  { %5615 = vmatpush1.bf16.msra.mxu0 %v5614_v26 }
 0x1f3   :  { %5617 = vmatprep.subr.bf16.mxu0 %v5616_v27 }
 0x1f6   :  { %5619 = vmatpush1.bf16.msra.mxu0 %v5618_v32 }
 0x1f7   :  { %5621 = vmatprep.subr.bf16.mxu0 %v5620_v33 }
 0x1fa   :  { %5623 = vmatpush1.bf16.msra.mxu0 %v5622_v45 }
 0x1fb   :  { %5625 = vmatprep.subr.bf16.mxu0 %v5624_v39 }
 0x1fe   :  { %5627 = vmatpush1.bf16.msra.mxu0 %v5626_v46 }
 0x1ff   :  { %5629 = vmatprep.subr.bf16.mxu0 %v5628_v47 }
 0x200   :  { %v6887_v62 = vpop.f32.mrb[0].mxu0  ;;  %v6892_v2 = vpop.f32.mrb[0].mxu1 }
 0x201   :  { %v1992_v0 = vrot.slane %v6887_v62, 4  ;;  %v2041_v1 = vmul.f32 %v6887_v62, %v6887_v62  ;;  %v6894_v3 = vpop.f32.mrb[1].mxu0  ;;  %v2004_v54 = vrot.slane %v6892_v2, 4  ;;  %v2043_v5 = vmul.f32 %v6892_v2, %v6892_v2  ;;  %v6902_v8 = vpop.f32.mrb[1].mxu1 }
 0x202   :  { %v1998_v6 = vrot.slane %v6894_v3, 4  ;;  %v2042_v7 = vmul.f32 %v6894_v3, %v6894_v3  ;;  %5631 = vmatpush1.bf16.msra.mxu0 %v5630_v57  ;;  %v2010_v10 = vrot.slane %v6902_v8, 4  ;;  %v2044_v11 = vmul.f32 %v6902_v8, %v6902_v8  ;;  %v6633_v57 = vld [vmem:[#allocation2 + $0x30] sm:$0xff] }
 0x203   :  { %v1993_v24 = vadd.f32 %v1992_v0, %v6887_v62  ;;  %v2048_v9 = vrot.slane %v2041_v1, 4  ;;  %5633 = vmatprep.subr.bf16.mxu0 %v5632_v61  ;;  %v2005_v12 = vadd.f32 %v2004_v54, %v6892_v2  ;;  %v2060_v13 = vrot.slane %v2043_v5, 4 }
 0x204   :  { %v1999_v15 = vadd.f32 %v1998_v6, %v6894_v3  ;;  %v2054_v16 = vrot.slane %v2042_v7, 4  ;;  %v2011_v19 = vadd.f32 %v2010_v10, %v6902_v8  ;;  %v2066_v20 = vrot.slane %v2044_v11, 4 }
 0x205   :  { %v1994_v17 = vrot.slane %v1993_v24, 2  ;;  %v2049_v18 = vadd.f32 %v2048_v9, %v2041_v1  ;;  %v2006_v21 = vrot.slane %v2005_v12, 2  ;;  %v2061_v22 = vadd.f32 %v2060_v13, %v2043_v5 }
 0x206   :  { %v2000_v23 = vrot.slane %v1999_v15, 2  ;;  %v2055_v38 = vadd.f32 %v2054_v16, %v2042_v7  ;;  %5635 = vmatpush1.bf16.msra.mxu0 %v5634_v63  ;;  %v2012_v27 = vrot.slane %v2011_v19, 2  ;;  %v2067_v28 = vadd.f32 %v2066_v20, %v2044_v11 }
 0x207   :  { %v1995_v25 = vadd.f32 %v1994_v17, %v1993_v24  ;;  %v2050_v26 = vrot.slane %v2049_v18, 2  ;;  %5637 = vmatprep.subr.bf16.mxu0 %v5636_v14  ;;  %v2007_v29 = vadd.f32 %v2006_v21, %v2005_v12  ;;  %v2062_v30 = vrot.slane %v2061_v22, 2 }
 0x208   :  { %v2001_v31 = vadd.f32 %v2000_v23, %v1999_v15  ;;  %v2056_v32 = vrot.slane %v2055_v38, 2  ;;  %v2013_v35 = vadd.f32 %v2012_v27, %v2011_v19  ;;  %v2068_v36 = vrot.slane %v2067_v28, 2 }
 0x209   :  { %v1996_v33 = vrot.slane %v1995_v25, 1  ;;  %v2051_v34 = vadd.f32 %v2050_v26, %v2049_v18  ;;  %v2008_v37 = vrot.slane %v2007_v29, 1  ;;  %v2063_v45 = vadd.f32 %v2062_v30, %v2061_v22 }
 0x20a   :  { %v2002_v39 = vrot.slane %v2001_v31, 1  ;;  %v2057_v40 = vadd.f32 %v2056_v32, %v2055_v38  ;;  %5639 = vmatpush1.bf16.msra.mxu0 %v5638_v4  ;;  %v2014_v44 = vrot.slane %v2013_v35, 1  ;;  %v2069_v46 = vadd.f32 %v2068_v36, %v2067_v28 }
 0x20b   :  { %v1997_v41 = vadd.f32 %v1996_v33, %v1995_v25  ;;  %v2052_v43 = vrot.slane %v2051_v34, 1  ;;  %v2009_v47 = vadd.f32 %v2008_v37, %v2007_v29  ;;  %v2064_v48 = vrot.slane %v2063_v45, 1 }
 0x20c   :  { %v2003_v49 = vadd.f32 %v2002_v39, %v2001_v31  ;;  %v2058_v51 = vrot.slane %v2057_v40, 1  ;;  %v2015_v55 = vadd.f32 %v2014_v44, %v2013_v35  ;;  %v2070_v56 = vrot.slane %v2069_v46, 1 }
 0x20d   :  { %v6911_v52 = vmul.f32 0.125, %v1997_v41  ;;  %v2053_v53 = vadd.f32 %v2052_v43, %v2051_v34  ;;  %1706 = vmatmul.mubr.f32.vlgmr.msra.gmra.mrb[2].mxu0 %v6633_v57  ;;  %v6913_v58 = vmul.f32 0.125, %v2009_v47  ;;  %v2065_v59 = vadd.f32 %v2064_v48, %v2063_v45  ;;  %v2359_v57 = vld [vmem:[#allocation7 + $0x50] sm:$0xff] }
 0x20e   :  { %v6915_v60 = vmul.f32 0.125, %v2003_v49  ;;  %v2059_v61 = vadd.f32 %v2058_v51, %v2057_v40  ;;  %v6919_v1 = vmul.f32 0.125, %v2015_v55  ;;  %v2071_v14 = vadd.f32 %v2070_v56, %v2069_v46  ;;  %v2350_v49 = vld [vmem:[#allocation7 + $0x8] sm:$0xff]  ;;  %v2357_v51 = vld [vmem:[#allocation7 + $0x40] sm:$0xff] }
 0x20f   :  { %v2090_v63 = vmul.f32 0.125, %v2053_v53  ;;  %v2097_v0 = vmul.f32 %v6911_v52, %v6911_v52  ;;  %v2092_v4 = vmul.f32 0.125, %v2065_v59  ;;  %v2099_v54 = vmul.f32 %v6913_v58, %v6913_v58  ;;  %v2352_v53 = vld [vmem:[#allocation7 + $0x18] sm:$0xff]  ;;  %v2349_v59 = vld [vmem:[#allocation7] sm:$0xff] }
 0x210   :  { %v2091_v5 = vmul.f32 0.125, %v2059_v61  ;;  %v2098_v6 = vmul.f32 %v6915_v60, %v6915_v60  ;;  %v2093_v24 = vmul.f32 0.125, %v2071_v14  ;;  %v2100_v9 = vmul.f32 %v6919_v1, %v6919_v1  ;;  %v2356_v61 = vld [vmem:[#allocation7 + $0x38] sm:$0xff]  ;;  %v2351_v14 = vld [vmem:[#allocation7 + $0x10] sm:$0xff] }
 0x211   :  { %v2104_v7 = vsub.f32 %v2090_v63, %v2097_v0  ;;  %v2106_v10 = vsub.f32 %v2092_v4, %v2099_v54  ;;  %v6768_v22 = vmov 1966171168   ;;  %v2146_v38 = vlaneseq  ;;  %v2358_v4 = vld [vmem:[#allocation7 + $0x48] sm:$0xff] }
 0x212   :  { %v2105_v11 = vsub.f32 %v2091_v5, %v2098_v6  ;;  %v2107_v13 = vsub.f32 %v2093_v24, %v2100_v9  ;;  %v2144_v23 = vunpack.c.l.s4 %v6768_v22  ;;  %v5760_v56 = vpack.c.bf16 %v2357_v51, %v2350_v49  ;;  %v2364_v5 = vld [vmem:[#allocation7 + $0x78] sm:$0xff]  ;;  %v2371_v6 = vld [vmem:[#allocation7 + $0xb0] sm:$0xff]  ;;  %v2373_v9 = vld [vmem:[#allocation7 + $0xc0] sm:$0xff] }
 0x213   :  { %v2111_v12 = vmax.f32 %v2104_v7, 0.0  ;;  %v2113_v15 = vmax.f32 %v2106_v10, 0.0  ;;  %v6927_v26 = vshrl.u32 %v2146_v38, 7  ;;  %v5984_v63 = vpack.c.bf16 %v2359_v57, %v2352_v53  ;;  %v2366_v7 = vld [vmem:[#allocation7 + $0x88] sm:$0xff]  ;;  %v2363_v10 = vld [vmem:[#allocation7 + $0x70] sm:$0xff]  ;;  %v2384_v38 = vld [vmem:[#allocation7 + $0x118] sm:$0xff] }
 0x214   :  { %v2112_v16 = vmax.f32 %v2105_v11, 0.0  ;;  %v2114_v18 = vmax.f32 %v2107_v13, 0.0  ;;  %v2145_v25 = vunpack.c.0.s8 %v2144_v23  ;;  %v5762_v0 = vpack.c.bf16 %v2356_v61, %v2349_v59  ;;  %5761 = vmatprep.subr.bf16.mxu1 %v5760_v56  ;;  %v2370_v11 = vld [vmem:[#allocation7 + $0xa8] sm:$0xff]  ;;  %v2387_v22 = vld [vmem:[#allocation7 + $0x130] sm:$0xff]  ;;  %v2377_v23 = vld [vmem:[#allocation7 + $0xe0] sm:$0xff] }
 0x215   :  { %v2119_v17 = vadd.f32 1e-05, %v2111_v12  ;;  %v2121_v19 = vadd.f32 1e-05, %v2113_v15  ;;  %v5986_v54 = vpack.c.bf16 %v2358_v4, %v2351_v14  ;;  %5985 = vmatprep.subr.bf16.mxu0 %v5984_v63  ;;  %v5764_v24 = vpack.c.bf16 %v2371_v6, %v2364_v5  ;;  %v2365_v15 = vld [vmem:[#allocation7 + $0x80] sm:$0xff]  ;;  %v2406_v49 = vld [vmem:[#allocation7 + $0x1c8] sm:$0xff] }
 0x216   :  { %v2120_v20 = vadd.f32 1e-05, %v2112_v16  ;;  %v2122_v21 = vadd.f32 1e-05, %v2114_v18  ;;  %v6930_v30 = vsub.s32 %v2145_v25, %v6927_v26  ;;  %5763 = vmatpush1.bf16.msra.mxu1 %v5762_v0  ;;  %v5988_v12 = vpack.c.bf16 %v2373_v9, %v2366_v7  ;;  %v2372_v16 = vld [vmem:[#allocation7 + $0xb8] sm:$0xff]  ;;  %v2378_v18 = vld [vmem:[#allocation7 + $0xe8] sm:$0xff] }
 0x217   :  { %6599 = vrsqrt.f32 %v2119_v17  ;;  %5987 = vmatpush1.bf16.msra.mxu0 %v5986_v54  ;;  %v5766_v13 = vpack.c.bf16 %v2370_v11, %v2363_v10  ;;  %5765 = vmatprep.subr.bf16.mxu1 %v5764_v24  ;;  %v5990_v17 = vpack.c.bf16 %v2372_v16, %v2365_v15  ;;  %v2413_v51 = vld [vmem:[#allocation7 + $0x200] sm:$0xff]  ;;  %v2408_v53 = vld [vmem:[#allocation7 + $0x1d8] sm:$0xff]  ;;  %v2415_v57 = vld [vmem:[#allocation7 + $0x210] sm:$0xff] }
 0x218   :  { %6601 = vrsqrt.f32 %v2121_v19  ;;  %5989 = vmatprep.subr.bf16.mxu0 %v5988_v12  ;;  %v2385_v19 = vld [vmem:[#allocation7 + $0x120] sm:$0xff]  ;;  %v5776_v56 = vpack.c.bf16 %v2413_v51, %v2406_v49  ;;  %v2412_v61 = vld [vmem:[#allocation7 + $0x1f8] sm:$0xff]  ;;  %v6000_v63 = vpack.c.bf16 %v2415_v57, %v2408_v53  ;;  %v2407_v14 = vld [vmem:[#allocation7 + $0x1d0] sm:$0xff] }
 0x219   :  { %6603 = vrsqrt.f32 %v2120_v20  ;;  %v2380_v20 = vld [vmem:[#allocation7 + $0xf8] sm:$0xff]  ;;  %v2405_v59 = vld [vmem:[#allocation7 + $0x1c0] sm:$0xff]  ;;  %v2414_v4 = vld [vmem:[#allocation7 + $0x208] sm:$0xff] }
 0x21a   :  { %6605 = vrsqrt.f32 %v2122_v21  ;;  %5767 = vmatpush1.bf16.msra.mxu1 %v5766_v13  ;;  %v5768_v21 = vpack.c.bf16 %v2385_v19, %v2378_v18  ;;  %v5992_v25 = vpack.c.bf16 %v2387_v22, %v2380_v20  ;;  %v5778_v0 = vpack.c.bf16 %v2412_v61, %v2405_v59  ;;  %v2420_v5 = vld [vmem:[#allocation7 + $0x238] sm:$0xff]  ;;  %v2427_v6 = vld [vmem:[#allocation7 + $0x270] sm:$0xff]  ;;  %v2422_v7 = vld [vmem:[#allocation7 + $0x248] sm:$0xff] }
 0x21b   :  { %5991 = vmatpush1.bf16.msra.mxu0 %v5990_v17  ;;  %v6002_v54 = vpack.c.bf16 %v2414_v4, %v2407_v14  ;;  %v5780_v24 = vpack.c.bf16 %v2427_v6, %v2420_v5  ;;  %v2429_v9 = vld [vmem:[#allocation7 + $0x280] sm:$0xff]  ;;  %v2419_v10 = vld [vmem:[#allocation7 + $0x230] sm:$0xff]  ;;  %v2426_v11 = vld [vmem:[#allocation7 + $0x268] sm:$0xff] }
 0x21c   :  { %5769 = vmatprep.subr.bf16.mxu1 %v5768_v21  ;;  %5993 = vmatprep.subr.bf16.mxu0 %v5992_v25  ;;  %v6004_v12 = vpack.c.bf16 %v2429_v9, %v2422_v7  ;;  %v5782_v13 = vpack.c.bf16 %v2426_v11, %v2419_v10  ;;  %v2421_v15 = vld [vmem:[#allocation7 + $0x240] sm:$0xff]  ;;  %v2428_v16 = vld [vmem:[#allocation7 + $0x278] sm:$0xff]  ;;  %v2434_v18 = vld [vmem:[#allocation7 + $0x2a8] sm:$0xff] }
 0x21d   :  { %v6006_v17 = vpack.c.bf16 %v2428_v16, %v2421_v15  ;;  %v2441_v19 = vld [vmem:[#allocation7 + $0x2e0] sm:$0xff]  ;;  %v2436_v20 = vld [vmem:[#allocation7 + $0x2b8] sm:$0xff]  ;;  %v2443_v22 = vld [vmem:[#allocation7 + $0x2f0] sm:$0xff] }
 0x21e   :  { %v5784_v21 = vpack.c.bf16 %v2441_v19, %v2434_v18  ;;  %v6008_v25 = vpack.c.bf16 %v2443_v22, %v2436_v20  ;;  %v2449_v49 = vld [vmem:[#allocation7 + $0x320] sm:$0xff]  ;;  %v2456_v51 = vld [vmem:[#allocation7 + $0x358] sm:$0xff]  ;;  %v2470_v5 = vld [vmem:[#allocation7 + $0x3c8] sm:$0xff] }
 0x21f   :  { %v6014_v53 = vpack.c.bf16 %v2456_v51, %v2449_v49  ;;  %v2469_v57 = vld [vmem:[#allocation7 + $0x3c0] sm:$0xff]  ;;  %v2464_v59 = vld [vmem:[#allocation7 + $0x398] sm:$0xff]  ;;  %v2478_v9 = vld [vmem:[#allocation7 + $0x408] sm:$0xff] }
 0x220   :  { %v4686_v28 = vpop.f32.mrb[2].mxu1  ;;  %v2468_v14 = vld [vmem:[#allocation7 + $0x3b8] sm:$0xff]  ;;  %v2485_v11 = vld [vmem:[#allocation7 + $0x440] sm:$0xff]  ;;  %v2490_v20 = vld [vmem:[#allocation7 + $0x468] sm:$0xff] }
 0x221   :  { %v6600_v27 = vpop.eup %6599  ;;  %v4687_v31 = vpop.f32.mrb[3].mxu1  ;;  %v2476_v7 = vld [vmem:[#allocation7 + $0x3f8] sm:$0xff]  ;;  %v6020_v15 = vpack.c.bf16 %v2485_v11, %v2478_v9  ;;  %v2534_v9 = vld [vmem:[#allocation7 + $0x5c8] sm:$0xff]  ;;  %v2541_v11 = vld [vmem:[#allocation7 + $0x600] sm:$0xff] }
 0x222   :  { %v6602_v29 = vpop.eup %6601  ;;  %v4688_v33 = vadd.f32 %v4687_v31, %v4686_v28  ;;  %v2379_v28 = vld [vmem:[#allocation7 + $0xf0] sm:$0xff]  ;;  %v2484_v18 = vld [vmem:[#allocation7 + $0x438] sm:$0xff] }
 0x223   :  { %v6604_v32 = vpop.eup %6603  ;;  %v2492_v22 = vld [vmem:[#allocation7 + $0x478] sm:$0xff] }
 0x224   :  { %v6606_v34 = vpop.eup %6605  ;;  %v2140_v35 = vcombine.low %v6600_v27, %v6604_v32  ;;  %v5770_v27 = vpack.c.bf16 %v2384_v38, %v2377_v23  ;;  %v2392_v32 = vld [vmem:[#allocation7 + $0x158] sm:$0xff]  ;;  %v2433_v23 = vld [vmem:[#allocation7 + $0x2a0] sm:$0xff] }
 0x225   :  { %v2141_v36 = vcombine.low %v6602_v29, %v6606_v34  ;;  %v2386_v29 = vld [vmem:[#allocation7 + $0x128] sm:$0xff]  ;;  %v2440_v38 = vld [vmem:[#allocation7 + $0x2d8] sm:$0xff] }
 0x226   :  { %v6933_v37 = vrot.slane %v2140_v35, %v6930_v30  ;;  %v5994_v31 = vpack.c.bf16 %v2386_v29, %v2379_v28  ;;  %5771 = vmatpush1.bf16.msra.mxu1 %v5770_v27  ;;  %v2394_v34 = vld [vmem:[#allocation7 + $0x168] sm:$0xff]  ;;  %v5786_v27 = vpack.c.bf16 %v2440_v38, %v2433_v23  ;;  %v2435_v28 = vld [vmem:[#allocation7 + $0x2b0] sm:$0xff]  ;;  %v2512_v49 = vld [vmem:[#allocation7 + $0x518] sm:$0xff] }
 0x227   :  { %v6936_v45 = vrot.slane %v2141_v36, %v6930_v30  ;;  %v2401_v36 = vld [vmem:[#allocation7 + $0x1a0] sm:$0xff]  ;;  %v2442_v29 = vld [vmem:[#allocation7 + $0x2e8] sm:$0xff]  ;;  %v2499_v38 = vld [vmem:[#allocation7 + $0x4b0] sm:$0xff] }
 0x228   :  { %5995 = vmatpush1.bf16.msra.mxu0 %v5994_v31  ;;  %v6010_v31 = vpack.c.bf16 %v2442_v29, %v2435_v28  ;;  %v2496_v28 = vld [vmem:[#allocation7 + $0x498] sm:$0xff]  ;;  %v2491_v29 = vld [vmem:[#allocation7 + $0x470] sm:$0xff] }
 0x229   :  { %v2171_v39 = vcombine.low %v6933_v37, %v6936_v45  ;;  %v6988_v37 = vsub.s32 5, %v6927_v26  ;;  %v6991_v45 = vsub.s32 6, %v6927_v26 }
 0x240   :  { %v4721_v40 = vpop.f32.mrb[4].mxu1 }
 0x241   :  { %v4722_v41 = vpop.f32.mrb[5].mxu1 }
 0x242   :  { %v4723_v43 = vadd.f32 %v4722_v41, %v4721_v40  ;;  %v2391_v40 = vld [vmem:[#allocation7 + $0x150] sm:$0xff]  ;;  %v2398_v41 = vld [vmem:[#allocation7 + $0x188] sm:$0xff] }
 0x244   :  { %v1849_v44 = vadd.f32 %v4723_v43, %v4688_v33  ;;  %v2399_v33 = vld [vmem:[#allocation7 + $0x190] sm:$0xff]  ;;  %v5996_v43 = vpack.c.bf16 %v2401_v36, %v2394_v34  ;;  %v2450_v34 = vld [vmem:[#allocation7 + $0x328] sm:$0xff] }
 0x245   :  { %v5772_v35 = vpack.c.bf16 %v2399_v33, %v2392_v32  ;;  %v2448_v32 = vld [vmem:[#allocation7 + $0x318] sm:$0xff]  ;;  %v2455_v33 = vld [vmem:[#allocation7 + $0x350] sm:$0xff] }
 0x246   :  { %5997 = vmatprep.subr.bf16.mxu0 %v5996_v43  ;;  %v5788_v36 = vpack.c.bf16 %v2455_v33, %v2448_v32  ;;  %v2454_v43 = vld [vmem:[#allocation7 + $0x348] sm:$0xff]  ;;  %v2504_v32 = vld [vmem:[#allocation7 + $0x4d8] sm:$0xff]  ;;  %v2511_v33 = vld [vmem:[#allocation7 + $0x510] sm:$0xff] }
 0x247   :  { %5773 = vmatprep.subr.bf16.mxu1 %v5772_v35 }
 0x260   :  { %v4756_v46 = vpop.f32.mrb[6].mxu1 }
 0x261   :  { %v4757_v47 = vpop.f32.mrb[7].mxu1 }
 0x262   :  { %v4758_v48 = vadd.f32 %v4757_v47, %v4756_v46  ;;  %v2393_v46 = vld [vmem:[#allocation7 + $0x160] sm:$0xff]  ;;  %v2400_v47 = vld [vmem:[#allocation7 + $0x198] sm:$0xff] }
 0x264   :  { %v6940_v55 = vadd.f32 %v4758_v48, %v1849_v44  ;;  %v5774_v44 = vpack.c.bf16 %v2398_v41, %v2391_v40  ;;  %v5998_v48 = vpack.c.bf16 %v2400_v47, %v2393_v46  ;;  %v2457_v40 = vld [vmem:[#allocation7 + $0x360] sm:$0xff]  ;;  %v2447_v41 = vld [vmem:[#allocation7 + $0x310] sm:$0xff] }
 0x265   :  { %v6012_v47 = vpack.c.bf16 %v2457_v40, %v2450_v34  ;;  %v2506_v34 = vld [vmem:[#allocation7 + $0x4e8] sm:$0xff]  ;;  %v5804_v40 = vpack.c.bf16 %v2511_v33, %v2504_v32 }
 0x266   :  { %5775 = vmatpush1.bf16.msra.mxu1 %v5774_v44  ;;  %5999 = vmatpush1.bf16.msra.mxu0 %v5998_v48  ;;  %v5790_v48 = vpack.c.bf16 %v2454_v43, %v2447_v41  ;;  %v2513_v41 = vld [vmem:[#allocation7 + $0x520] sm:$0xff]  ;;  %v2503_v43 = vld [vmem:[#allocation7 + $0x4d0] sm:$0xff] }
 0x267   :  { %5777 = vmatprep.subr.bf16.mxu1 %v5776_v56  ;;  %6001 = vmatprep.subr.bf16.mxu0 %v6000_v63  ;;  %v2462_v56 = vld [vmem:[#allocation7 + $0x388] sm:$0xff]  ;;  %v2471_v63 = vld [vmem:[#allocation7 + $0x3d0] sm:$0xff] }
 0x268   :  { %v5792_v61 = vpack.c.bf16 %v2469_v57, %v2462_v56  ;;  %v6016_v4 = vpack.c.bf16 %v2471_v63, %v2464_v59  ;;  %v2518_v56 = vld [vmem:[#allocation7 + $0x548] sm:$0xff]  ;;  %v2525_v57 = vld [vmem:[#allocation7 + $0x580] sm:$0xff]  ;;  %v2520_v59 = vld [vmem:[#allocation7 + $0x558] sm:$0xff] }
 0x269   :  { %v2527_v63 = vld [vmem:[#allocation7 + $0x590] sm:$0xff] }
 0x26a   :  { %5779 = vmatpush1.bf16.msra.mxu1 %v5778_v0  ;;  %6003 = vmatpush1.bf16.msra.mxu0 %v6002_v54  ;;  %v2461_v0 = vld [vmem:[#allocation7 + $0x380] sm:$0xff]  ;;  %v2463_v54 = vld [vmem:[#allocation7 + $0x390] sm:$0xff] }
 0x26b   :  { %5781 = vmatprep.subr.bf16.mxu1 %v5780_v24  ;;  %6005 = vmatprep.subr.bf16.mxu0 %v6004_v12  ;;  %v6018_v6 = vpack.c.bf16 %v2470_v5, %v2463_v54  ;;  %v2483_v24 = vld [vmem:[#allocation7 + $0x430] sm:$0xff]  ;;  %v2526_v54 = vld [vmem:[#allocation7 + $0x588] sm:$0xff] }
 0x26c   :  { %v5796_v10 = vpack.c.bf16 %v2483_v24, %v2476_v7  ;;  %v2475_v12 = vld [vmem:[#allocation7 + $0x3f0] sm:$0xff]  ;;  %v2532_v7 = vld [vmem:[#allocation7 + $0x5b8] sm:$0xff] }
 0x26d   :  { %v2539_v24 = vld [vmem:[#allocation7 + $0x5f0] sm:$0xff] }
 0x26e   :  { %5783 = vmatpush1.bf16.msra.mxu1 %v5782_v13  ;;  %6007 = vmatpush1.bf16.msra.mxu0 %v6006_v17  ;;  %v2482_v13 = vld [vmem:[#allocation7 + $0x428] sm:$0xff]  ;;  %v2477_v17 = vld [vmem:[#allocation7 + $0x400] sm:$0xff] }
 0x26f   :  { %5785 = vmatprep.subr.bf16.mxu1 %v5784_v21  ;;  %6009 = vmatprep.subr.bf16.mxu0 %v6008_v25  ;;  %v5798_v16 = vpack.c.bf16 %v2482_v13, %v2475_v12  ;;  %v6022_v19 = vpack.c.bf16 %v2484_v18, %v2477_v17  ;;  %v2497_v21 = vld [vmem:[#allocation7 + $0x4a0] sm:$0xff]  ;;  %v2531_v12 = vld [vmem:[#allocation7 + $0x5b0] sm:$0xff]  ;;  %v2538_v13 = vld [vmem:[#allocation7 + $0x5e8] sm:$0xff] }
 0x270   :  { %v5800_v23 = vpack.c.bf16 %v2497_v21, %v2490_v20  ;;  %v2489_v25 = vld [vmem:[#allocation7 + $0x460] sm:$0xff]  ;;  %v2540_v17 = vld [vmem:[#allocation7 + $0x5f8] sm:$0xff]  ;;  %v5814_v18 = vpack.c.bf16 %v2538_v13, %v2531_v12  ;;  %v2546_v20 = vld [vmem:[#allocation7 + $0x628] sm:$0xff] }
 0x271   :  { %v2553_v21 = vld [vmem:[#allocation7 + $0x660] sm:$0xff] }
 0x272   :  { %5787 = vmatpush1.bf16.msra.mxu1 %v5786_v27  ;;  %6011 = vmatpush1.bf16.msra.mxu0 %v6010_v31  ;;  %v6024_v27 = vpack.c.bf16 %v2499_v38, %v2492_v22  ;;  %v2498_v31 = vld [vmem:[#allocation7 + $0x4a8] sm:$0xff]  ;;  %v2548_v22 = vld [vmem:[#allocation7 + $0x638] sm:$0xff]  ;;  %v2555_v38 = vld [vmem:[#allocation7 + $0x670] sm:$0xff] }
 0x273   :  { %5789 = vmatprep.subr.bf16.mxu1 %v5788_v36  ;;  %6013 = vmatprep.subr.bf16.mxu0 %v6012_v47  ;;  %v6026_v36 = vpack.c.bf16 %v2498_v31, %v2491_v29  ;;  %v6028_v47 = vpack.c.bf16 %v2513_v41, %v2506_v34  ;;  %v2547_v29 = vld [vmem:[#allocation7 + $0x630] sm:$0xff]  ;;  %v2554_v31 = vld [vmem:[#allocation7 + $0x668] sm:$0xff]  ;;  %v2560_v34 = vld [vmem:[#allocation7 + $0x698] sm:$0xff] }
 0x274   :  { %v6042_v33 = vpack.c.bf16 %v2554_v31, %v2547_v29  ;;  %v2569_v41 = vld [vmem:[#allocation7 + $0x6e0] sm:$0xff] }
 0x276   :  { %5791 = vmatpush1.bf16.msra.mxu1 %v5790_v48  ;;  %6015 = vmatpush1.bf16.msra.mxu0 %v6014_v53  ;;  %v2505_v48 = vld [vmem:[#allocation7 + $0x4e0] sm:$0xff] }
 0x277   :  { %5793 = vmatprep.subr.bf16.mxu1 %v5792_v61  ;;  %6017 = vmatprep.subr.bf16.mxu0 %v6016_v4  ;;  %v6030_v53 = vpack.c.bf16 %v2512_v49, %v2505_v48  ;;  %v5808_v61 = vpack.c.bf16 %v2525_v57, %v2518_v56  ;;  %v6032_v4 = vpack.c.bf16 %v2527_v63, %v2520_v59  ;;  %v2561_v48 = vld [vmem:[#allocation7 + $0x6a0] sm:$0xff]  ;;  %v2568_v49 = vld [vmem:[#allocation7 + $0x6d8] sm:$0xff]  ;;  %v2574_v56 = vld [vmem:[#allocation7 + $0x708] sm:$0xff] }
 0x278   :  { %v2581_v57 = vld [vmem:[#allocation7 + $0x740] sm:$0xff]  ;;  %v2576_v59 = vld [vmem:[#allocation7 + $0x718] sm:$0xff]  ;;  %v2583_v63 = vld [vmem:[#allocation7 + $0x750] sm:$0xff] }
 0x27a   :  { %6019 = vmatpush1.bf16.msra.mxu0 %v6018_v6 }
 0x27b   :  { %6021 = vmatprep.subr.bf16.mxu0 %v6020_v15  ;;  %v6036_v15 = vpack.c.bf16 %v2541_v11, %v2534_v9 }
 0x27e   :  { %6023 = vmatpush1.bf16.msra.mxu0 %v6022_v19 }
 0x27f   :  { %6025 = vmatprep.subr.bf16.mxu0 %v6024_v27  ;;  %v2552_v27 = vld [vmem:[#allocation7 + $0x658] sm:$0xff] }
 0x280   :  { %v1988_v35 = vpop.f32.mrb[8].mxu1 }
 0x281   :  { %v6943_v44 = vadd.f32 %v1988_v35, %v6940_v55  ;;  %v4932_v46 = vpop.f32.mrb[9].mxu1  ;;  %v5794_v55 = vpack.c.bf16 %v2468_v14, %v2461_v0  ;;  %v5802_v35 = vpack.c.bf16 %v2496_v28, %v2489_v25  ;;  %v2517_v0 = vld [vmem:[#allocation7 + $0x540] sm:$0xff]  ;;  %v2524_v14 = vld [vmem:[#allocation7 + $0x578] sm:$0xff]  ;;  %v6040_v28 = vpack.c.bf16 %v2555_v38, %v2548_v22 }
 0x282   :  { %v2510_v46 = vld [vmem:[#allocation7 + $0x508] sm:$0xff]  ;;  %6027 = vmatpush1.bf16.msra.mxu0 %v6026_v36  ;;  %v5810_v5 = vpack.c.bf16 %v2524_v14, %v2517_v0  ;;  %v2545_v25 = vld [vmem:[#allocation7 + $0x620] sm:$0xff]  ;;  %v6048_v0 = vpack.c.bf16 %v2583_v63, %v2576_v59 }
 0x283   :  { %5795 = vmatpush1.bf16.msra.mxu1 %v5794_v55  ;;  %v5806_v51 = vpack.c.bf16 %v2510_v46, %v2503_v43  ;;  %6029 = vmatprep.subr.bf16.mxu0 %v6028_v47  ;;  %v2519_v55 = vld [vmem:[#allocation7 + $0x550] sm:$0xff]  ;;  %v5818_v32 = vpack.c.bf16 %v2552_v27, %v2545_v25  ;;  %v2562_v36 = vld [vmem:[#allocation7 + $0x6a8] sm:$0xff]  ;;  %v2028_v14 = vrot.slane %v6943_v44, 4 }
 0x284   :  { %5797 = vmatprep.subr.bf16.mxu1 %v5796_v10  ;;  %v6034_v6 = vpack.c.bf16 %v2526_v54, %v2519_v55  ;;  %v5812_v10 = vpack.c.bf16 %v2539_v24, %v2532_v7  ;;  %v2559_v43 = vld [vmem:[#allocation7 + $0x690] sm:$0xff]  ;;  %v2566_v46 = vld [vmem:[#allocation7 + $0x6c8] sm:$0xff]  ;;  %v6044_v47 = vpack.c.bf16 %v2569_v41, %v2562_v36 }
 0x285   :  { %v2029_v55 = vadd.f32 %v2028_v14, %v6943_v44 }
 0x286   :  { %6031 = vmatpush1.bf16.msra.mxu0 %v6030_v53  ;;  %v6046_v53 = vpack.c.bf16 %v2568_v49, %v2561_v48 }
 0x287   :  { %5799 = vmatpush1.bf16.msra.mxu1 %v5798_v16  ;;  %6033 = vmatprep.subr.bf16.mxu0 %v6032_v4  ;;  %v2533_v16 = vld [vmem:[#allocation7 + $0x5c0] sm:$0xff]  ;;  %v2047_v4 = vmul.f32 %v6943_v44, %v6943_v44 }
 0x288   :  { %5801 = vmatprep.subr.bf16.mxu1 %v5800_v23  ;;  %v6038_v19 = vpack.c.bf16 %v2540_v17, %v2533_v16  ;;  %v5816_v23 = vpack.c.bf16 %v2553_v21, %v2546_v20 }
 0x289   :  { %v2084_v54 = vrot.slane %v2047_v4, 4 }
 0x28a   :  { %6035 = vmatpush1.bf16.msra.mxu0 %v6034_v6 }
 0x28b   :  { %5803 = vmatpush1.bf16.msra.mxu1 %v5802_v35  ;;  %6037 = vmatprep.subr.bf16.mxu0 %v6036_v15  ;;  %v2567_v35 = vld [vmem:[#allocation7 + $0x6d0] sm:$0xff]  ;;  %v2085_v6 = vadd.f32 %v2084_v54, %v2047_v4 }
 0x28c   :  { %5805 = vmatprep.subr.bf16.mxu1 %v5804_v40  ;;  %v5820_v40 = vpack.c.bf16 %v2567_v35, %v2560_v34 }
 0x28d   :  { %v2086_v24 = vrot.slane %v2085_v6, 2 }
 0x28e   :  { %6039 = vmatpush1.bf16.msra.mxu0 %v6038_v19 }
 0x28f   :  { %5807 = vmatpush1.bf16.msra.mxu1 %v5806_v51  ;;  %6041 = vmatprep.subr.bf16.mxu0 %v6040_v28  ;;  %v5822_v51 = vpack.c.bf16 %v2566_v46, %v2559_v43 }
 0x290   :  { %5809 = vmatprep.subr.bf16.mxu1 %v5808_v61  ;;  %v5824_v61 = vpack.c.bf16 %v2581_v57, %v2574_v56 }
 0x292   :  { %6043 = vmatpush1.bf16.msra.mxu0 %v6042_v33 }
 0x293   :  { %5811 = vmatpush1.bf16.msra.mxu1 %v5810_v5  ;;  %6045 = vmatprep.subr.bf16.mxu0 %v6044_v47  ;;  %v2030_v5 = vrot.slane %v2029_v55, 2 }
 0x294   :  { %5813 = vmatprep.subr.bf16.mxu1 %v5812_v10  ;;  %v2087_v10 = vadd.f32 %v2086_v24, %v2085_v6 }
 0x295   :  { %v2031_v7 = vadd.f32 %v2030_v5, %v2029_v55 }
 0x296   :  { %6047 = vmatpush1.bf16.msra.mxu0 %v6046_v53  ;;  %v2088_v12 = vrot.slane %v2087_v10, 1 }
 0x297   :  { %5815 = vmatpush1.bf16.msra.mxu1 %v5814_v18  ;;  %6049 = vmatprep.subr.bf16.mxu0 %v6048_v0  ;;  %v2032_v9 = vrot.slane %v2031_v7, 1 }
 0x298   :  { %5817 = vmatprep.subr.bf16.mxu1 %v5816_v23  ;;  %v2089_v19 = vadd.f32 %v2088_v12, %v2087_v10 }
 0x299   :  { %v2033_v11 = vadd.f32 %v2032_v9, %v2031_v7 }
 0x29a   :  { %v2096_v29 = vmul.f32 0.125, %v2089_v19 }
 0x29b   :  { %5819 = vmatpush1.bf16.msra.mxu1 %v5818_v32  ;;  %v6956_v18 = vmul.f32 0.125, %v2033_v11 }
 0x29c   :  { %5821 = vmatprep.subr.bf16.mxu1 %v5820_v40 }
 0x29d   :  { %v2103_v31 = vmul.f32 %v6956_v18, %v6956_v18 }
 0x29f   :  { %5823 = vmatpush1.bf16.msra.mxu1 %v5822_v51  ;;  %v2110_v46 = vsub.f32 %v2096_v29, %v2103_v31  ;;  %v6976_v29 = vsub.s32 1, %v6927_v26  ;;  %v6979_v31 = vsub.s32 2, %v6927_v26 }
 0x2a0   :  { %5825 = vmatprep.subr.bf16.mxu1 %v5824_v61 }
 0x2a1   :  { %v2117_v61 = vmax.f32 %v2110_v46, 0.0 }
 0x2a3   :  { %v2125_v6 = vadd.f32 1e-05, %v2117_v61 }
 0x2a5   :  { %6607 = vrsqrt.f32 %v2125_v6 }
 0x2af   :  { %v6608_v12 = vpop.eup %6607 }
 0x2e0   :  { %v6949_v13 = vpop.f32.mrb[2].mxu0 }
 0x2e1   :  { %v2016_v15 = vrot.slane %v6949_v13, 4  ;;  %v2045_v16 = vmul.f32 %v6949_v13, %v6949_v13  ;;  %v6954_v17 = vpop.f32.mrb[3].mxu0 }
 0x2e2   :  { %v2022_v20 = vrot.slane %v6954_v17, 4  ;;  %v2046_v21 = vmul.f32 %v6954_v17, %v6954_v17 }
 0x2e3   :  { %v2017_v22 = vadd.f32 %v2016_v15, %v6949_v13  ;;  %v2072_v23 = vrot.slane %v2045_v16, 4 }
 0x2e4   :  { %v2023_v38 = vadd.f32 %v2022_v20, %v6954_v17  ;;  %v2078_v25 = vrot.slane %v2046_v21, 4  ;;  %v2170_v20 = vrot.slane %v6608_v12, %v6930_v30  ;;  %v2575_v12 = vld [vmem:[#allocation7 + $0x710] sm:$0xff] }
 0x2e5   :  { %v2018_v27 = vrot.slane %v2017_v22, 2  ;;  %v2073_v28 = vadd.f32 %v2072_v23, %v2045_v16  ;;  %v2179_v23 = vrot.slane %v2171_v39, %v6930_v30 }
 0x2e6   :  { %v2024_v32 = vrot.slane %v2023_v38, 2  ;;  %v2079_v33 = vadd.f32 %v2078_v25, %v2046_v21  ;;  %v2118_v25 = vld [vmem:[#allocation8] ss:$4 sm:$0xff] }
 0x2e7   :  { %v2019_v34 = vadd.f32 %v2018_v27, %v2017_v22  ;;  %v2074_v35 = vrot.slane %v2073_v28, 2  ;;  %v6973_v27 = vsub.s32 0, %v6927_v26 }
 0x2e8   :  { %v2025_v36 = vadd.f32 %v2024_v32, %v2023_v38  ;;  %v2080_v40 = vrot.slane %v2079_v33, 2  ;;  %v6982_v32 = vsub.s32 3, %v6927_v26 }
 0x2e9   :  { %v2020_v41 = vrot.slane %v2019_v34, 1  ;;  %v2075_v43 = vadd.f32 %v2074_v35, %v2073_v28 }
 0x2ea   :  { %v2026_v47 = vrot.slane %v2025_v36, 1  ;;  %v2081_v48 = vadd.f32 %v2080_v40, %v2079_v33  ;;  %v6985_v33 = vsub.s32 4, %v6927_v26 }
 0x2eb   :  { %v2021_v49 = vadd.f32 %v2020_v41, %v2019_v34  ;;  %v2076_v51 = vrot.slane %v2075_v43, 1 }
 0x2ec   :  { %v2027_v53 = vadd.f32 %v2026_v47, %v2025_v36  ;;  %v2082_v56 = vrot.slane %v2081_v48, 1 }
 0x2ed   :  { %v2038_v57 = vmul.f32 0.125, %v2021_v49  ;;  %v2077_v59 = vadd.f32 %v2076_v51, %v2075_v43 }
 0x2ee   :  { %v2039_v63 = vmul.f32 0.125, %v2027_v53  ;;  %v2083_v0 = vadd.f32 %v2082_v56, %v2081_v48 }
 0x2ef   :  { %v2094_v14 = vmul.f32 0.125, %v2077_v59  ;;  %v2101_v4 = vmul.f32 %v2038_v57, %v2038_v57 }
 0x2f0   :  { %v2095_v55 = vmul.f32 0.125, %v2083_v0  ;;  %v2102_v54 = vmul.f32 %v2039_v63, %v2039_v63 }
 0x2f1   :  { %v2108_v5 = vsub.f32 %v2094_v14, %v2101_v4 }
 0x2f2   :  { %v2109_v7 = vsub.f32 %v2095_v55, %v2102_v54 }
 0x2f3   :  { %v2115_v24 = vmax.f32 %v2108_v5, 0.0  ;;  %v2191_v5 = vld [vmem:[#allocation8 + $0x1] ss:$4 sm:$0xff] }
 0x2f4   :  { %v2116_v9 = vmax.f32 %v2109_v7, 0.0 }
 0x2f5   :  { %v2123_v10 = vadd.f32 1e-05, %v2115_v24 }
 0x2f6   :  { %v2124_v11 = vadd.f32 1e-05, %v2116_v9  ;;  %v2573_v9 = vld [vmem:[#allocation7 + $0x700] sm:$0xff] }
 0x2f7   :  { %6609 = vrsqrt.f32 %v2123_v10 }
 0x2f8   :  { %6611 = vrsqrt.f32 %v2124_v11  ;;  %v2580_v11 = vld [vmem:[#allocation7 + $0x738] sm:$0xff] }
 0x301   :  { %v6610_v15 = vpop.eup %6609 }
 0x302   :  { %v6612_v16 = vpop.eup %6611 }
 0x303   :  { %v2142_v19 = vcombine.low %v6610_v15, %v6612_v16  ;;  %v2582_v15 = vld [vmem:[#allocation7 + $0x748] sm:$0xff] }
 0x305   :  { %v2163_v21 = vrot.slane %v2142_v19, %v6930_v30 }
 0x307   :  { %v2172_v22 = vcombine.low %v2163_v21, %v2170_v20 }
 0x309   :  { %v2186_v38 = vrot.slane %v2172_v22, %v6930_v30 }
 0x30b   :  { %v2187_v28 = vcombine.low %v2179_v23, %v2186_v38  ;;  %v2588_v38 = vld [vmem:[#allocation7 + $0x778] sm:$0xff] }
 0x30d   :  { %v2189_v39 = vmul.f32 %v2187_v28, %v2118_v25  ;;  %v2595_v25 = vld [vmem:[#allocation7 + $0x7b0] sm:$0xff]  ;;  %v2590_v28 = vld [vmem:[#allocation7 + $0x788] sm:$0xff] }
 0x30f   :  { %v2196_v34 = vrot.slane %v2189_v39, %v6973_v27  ;;  %v2200_v35 = vrot.slane %v2189_v39, %v6976_v29  ;;  %v2204_v36 = vrot.slane %v2189_v39, %v6979_v31  ;;  %v2208_v40 = vrot.slane %v2189_v39, %v6982_v32 }
 0x310   :  { %v2212_v41 = vrot.slane %v2189_v39, %v6985_v33  ;;  %v2216_v43 = vrot.slane %v2189_v39, %v6988_v37  ;;  %v2220_v46 = vrot.slane %v2189_v39, %v6991_v45  ;;  %v2597_v39 = vld [vmem:[#allocation7 + $0x7c0] sm:$0xff] }
 0x311   :  { %v2228_v47 = vmul.f32 %v2196_v34, %v6911_v52  ;;  %v2229_v26 = vmul.f32 %v2200_v35, %v6915_v60  ;;  %v2230_v48 = vmul.f32 %v2204_v36, %v6913_v58  ;;  %v2231_v49 = vmul.f32 %v2208_v40, %v6919_v1 }
 0x312   :  { %v2232_v51 = vmul.f32 %v2212_v41, %v2038_v57  ;;  %v2233_v53 = vmul.f32 %v2216_v43, %v2039_v63  ;;  %v2234_v56 = vmul.f32 %v2220_v46, %v6956_v18  ;;  %v2297_v59 = vmul.f32 %v2216_v43, %v6954_v17 }
 0x313   :  { %v2242_v61 = vcombine.low %v2228_v47, %v2229_v26  ;;  %v2243_v0 = vcombine.low %v2230_v48, %v2231_v49  ;;  %v2293_v14 = vmul.f32 %v2200_v35, %v6894_v3  ;;  %v2292_v4 = vmul.f32 %v2196_v34, %v6887_v62  ;;  %v2587_v47 = vld [vmem:[#allocation7 + $0x770] sm:$0xff]  ;;  %v2594_v26 = vld [vmem:[#allocation7 + $0x7a8] sm:$0xff]  ;;  %v2589_v48 = vld [vmem:[#allocation7 + $0x780] sm:$0xff] }
 0x314   :  { %v2244_v55 = vcombine.low %v2232_v51, %v2233_v53  ;;  %v2295_v52 = vmul.f32 %v2208_v40, %v6902_v8  ;;  %v2294_v60 = vmul.f32 %v2204_v36, %v6892_v2  ;;  %v2272_v18 = vrot.slane %v2234_v56, %v6930_v30  ;;  %v2596_v49 = vld [vmem:[#allocation7 + $0x7b8] sm:$0xff]  ;;  %v2602_v51 = vld [vmem:[#allocation7 + $0x7e8] sm:$0xff] }
 0x315   :  { %v2251_v58 = vrot.slane %v2242_v61, %v6930_v30  ;;  %v2258_v1 = vrot.slane %v2243_v0, %v6930_v30  ;;  %v2296_v54 = vmul.f32 %v2212_v41, %v6949_v13  ;;  %v2298_v35 = vmul.f32 %v2220_v46, %v6943_v44  ;;  %v2604_v61 = vld [vmem:[#allocation7 + $0x7f8] sm:$0xff]  ;;  %v2611_v0 = vld [vmem:[#allocation7 + $0x830] sm:$0xff] }
 0x316   :  { %v2265_v57 = vrot.slane %v2244_v55, %v6930_v30  ;;  %v5826_v41 = vpack.c.bf16 %v2580_v11, %v2573_v9  ;;  %v6050_v43 = vpack.c.bf16 %v2582_v15, %v2575_v12  ;;  %v5828_v44 = vpack.c.bf16 %v2595_v25, %v2588_v38  ;;  %v2624_v9 = vld [vmem:[#allocation7 + $0x898] sm:$0xff]  ;;  %v2637_v11 = vld [vmem:[#allocation7 + $0x900] sm:$0xff]  ;;  %v2639_v15 = vld [vmem:[#allocation7 + $0x910] sm:$0xff] }
 0x317   :  { %v2273_v17 = vcombine.low %v2251_v58, %v2258_v1  ;;  %v6052_v46 = vpack.c.bf16 %v2597_v39, %v2590_v28  ;;  %v6054_v55 = vpack.c.bf16 %v2596_v49, %v2589_v48  ;;  %v6056_v1 = vpack.c.bf16 %v2611_v0, %v2604_v61  ;;  %v2632_v12 = vld [vmem:[#allocation7 + $0x8d8] sm:$0xff]  ;;  %v2631_v38 = vld [vmem:[#allocation7 + $0x8d0] sm:$0xff]  ;;  %v2638_v25 = vld [vmem:[#allocation7 + $0x908] sm:$0xff] }
 0x318   :  { %v2274_v63 = vcombine.low %v2265_v57, %v2272_v18  ;;  %v2603_v57 = vld [vmem:[#allocation7 + $0x7f0] sm:$0xff]  ;;  %v2610_v18 = vld [vmem:[#allocation7 + $0x828] sm:$0xff]  ;;  %v2644_v28 = vld [vmem:[#allocation7 + $0x938] sm:$0xff] }
 0x319   :  { %v2281_v3 = vrot.slane %v2273_v17, %v6930_v30  ;;  %v2616_v17 = vld [vmem:[#allocation7 + $0x858] sm:$0xff]  ;;  %v2651_v39 = vld [vmem:[#allocation7 + $0x970] sm:$0xff]  ;;  %v2650_v48 = vld [vmem:[#allocation7 + $0x968] sm:$0xff] }
 0x31a   :  { %v2288_v62 = vrot.slane %v2274_v63, %v6930_v30  ;;  %v2623_v63 = vld [vmem:[#allocation7 + $0x890] sm:$0xff]  ;;  %v5844_v49 = vpack.c.bf16 %v2651_v39, %v2644_v28  ;;  %v2665_v61 = vld [vmem:[#allocation7 + $0x9e0] sm:$0xff]  ;;  %v2660_v0 = vld [vmem:[#allocation7 + $0x9b8] sm:$0xff] }
 0x31b   :  { %v2694_v28 = vld [vmem:[#allocation7 + $0xac8] sm:$0xff]  ;;  %v2700_v39 = vld [vmem:[#allocation7 + $0xaf8] sm:$0xff] }
 0x31c   :  { %v2289_v8 = vcombine.low %v2281_v3, %v2288_v62  ;;  %v2625_v3 = vld [vmem:[#allocation7 + $0x8a0] sm:$0xff] }
 0x31e   :  { %v2291_v6 = vsub.f32 %v2191_v5, %v2289_v8  ;;  %v6058_v5 = vpack.c.bf16 %v2610_v18, %v2603_v57  ;;  %v2615_v8 = vld [vmem:[#allocation7 + $0x850] sm:$0xff] }
 0x31f   :  { %v2659_v18 = vld [vmem:[#allocation7 + $0x9b0] sm:$0xff] }
 0x320   :  { %v2323_v2 = vrot.slane %v2291_v6, %v6988_v37  ;;  %v2307_v7 = vrot.slane %v2291_v6, %v6976_v29  ;;  %v2303_v24 = vrot.slane %v2291_v6, %v6973_v27  ;;  %v2315_v10 = vrot.slane %v2291_v6, %v6982_v32 }
 0x321   :  { %v2311_v13 = vrot.slane %v2291_v6, %v6979_v31  ;;  %v2319_v16 = vrot.slane %v2291_v6, %v6985_v33  ;;  %v2327_v19 = vrot.slane %v2291_v6, %v6991_v45  ;;  %v2622_v6 = vld [vmem:[#allocation7 + $0x888] sm:$0xff] }
 0x322   :  { %v7024_v20 = vadd.f32 %v2323_v2, %v2297_v59  ;;  %v2336_v21 = vadd.f32 %v2307_v7, %v2293_v14  ;;  %v2335_v22 = vadd.f32 %v2303_v24, %v2292_v4  ;;  %v2338_v23 = vadd.f32 %v2315_v10, %v2295_v52  ;;  %v2609_v59 = vld [vmem:[#allocation7 + $0x820] sm:$0xff]  ;;  %v2630_v10 = vld [vmem:[#allocation7 + $0x8c8] sm:$0xff] }
 0x323   :  { %v7026_v34 = vadd.f32 %v2311_v13, %v2294_v60  ;;  %v7033_v53 = vadd.f32 %v2319_v16, %v2296_v54  ;;  %v7035_v56 = vadd.f32 %v2327_v19, %v2298_v35  ;;  %v5830_v4 = vpack.c.bf16 %v2594_v26, %v2587_v47  ;;  %v2601_v52 = vld [vmem:[#allocation7 + $0x7e0] sm:$0xff]  ;;  %v2608_v60 = vld [vmem:[#allocation7 + $0x818] sm:$0xff]  ;;  %v2618_v54 = vld [vmem:[#allocation7 + $0x868] sm:$0xff] }
 0x324   :  { %v7029_v36 = vmax.f32 %v2336_v21, 0.0  ;;  %v7031_v40 = vmax.f32 %v2335_v22, 0.0  ;;  %v7041_v14 = vmax.f32 %v2338_v23, 0.0  ;;  %v5832_v58 = vpack.c.bf16 %v2609_v59, %v2602_v51  ;;  %v2617_v24 = vld [vmem:[#allocation7 + $0x860] sm:$0xff]  ;;  %v2636_v21 = vld [vmem:[#allocation7 + $0x8f8] sm:$0xff]  ;;  %v2646_v35 = vld [vmem:[#allocation7 + $0x948] sm:$0xff] }
 0x325   :  { %v5834_v62 = vpack.c.bf16 %v2608_v60, %v2601_v52  ;;  %v5836_v2 = vpack.c.bf16 %v2623_v63, %v2616_v17  ;;  %v6060_v7 = vpack.c.bf16 %v2625_v3, %v2618_v54  ;;  %v5838_v13 = vpack.c.bf16 %v2622_v6, %v2615_v8  ;;  %v2629_v19 = vld [vmem:[#allocation7 + $0x8c0] sm:$0xff]  ;;  %v2643_v26 = vld [vmem:[#allocation7 + $0x930] sm:$0xff]  ;;  %v2658_v59 = vld [vmem:[#allocation7 + $0x9a8] sm:$0xff] }
 0x326   :  { %3197 = vmatprep.mubr.f32.mxu1 %v7029_v36  ;;  %3481 = vmatprep.mubr.f32.mxu0 %v7029_v36  ;;  %v6062_v16 = vpack.c.bf16 %v2624_v9, %v2617_v24  ;;  %v5840_v22 = vpack.c.bf16 %v2637_v11, %v2630_v10  ;;  %v6064_v23 = vpack.c.bf16 %v2639_v15, %v2632_v12  ;;  %v2657_v60 = vld [vmem:[#allocation7 + $0x9a0] sm:$0xff]  ;;  %v2666_v17 = vld [vmem:[#allocation7 + $0x9e8] sm:$0xff]  ;;  %v2672_v63 = vld [vmem:[#allocation7 + $0xa18] sm:$0xff] }
 0x327   :  { %3198 = vmatmul.mubr.f32.vlgmr.msra.gmra.mrb[10].mxu1 %v7031_v40  ;;  %3482 = vmatmul.mubr.f32.vlgmr.msra.gmra.mrb[4].mxu0 %v7031_v40  ;;  %v6066_v47 = vpack.c.bf16 %v2638_v25, %v2631_v38  ;;  %v2679_v54 = vld [vmem:[#allocation7 + $0xa50] sm:$0xff]  ;;  %v2674_v3 = vld [vmem:[#allocation7 + $0xa28] sm:$0xff]  ;;  %v6074_v8 = vpack.c.bf16 %v2666_v17, %v2659_v18  ;;  %v2673_v9 = vld [vmem:[#allocation7 + $0xa20] sm:$0xff] }
 0x328   :  { %5827 = vmatpush1.bf16.msra.mxu1 %v5826_v41  ;;  %6051 = vmatpush1.bf16.msra.mxu0 %v6050_v43  ;;  %v2653_v41 = vld [vmem:[#allocation7 + $0x980] sm:$0xff]  ;;  %v5842_v43 = vpack.c.bf16 %v2636_v21, %v2629_v19  ;;  %v2671_v6 = vld [vmem:[#allocation7 + $0xa10] sm:$0xff]  ;;  %v2680_v10 = vld [vmem:[#allocation7 + $0xa58] sm:$0xff] }
 0x329   :  { %3268 = vmatprep.mubr.f32.mxu1 %v7041_v14  ;;  %3552 = vmatprep.mubr.f32.mxu0 %v7041_v14  ;;  %v6068_v51 = vpack.c.bf16 %v2653_v41, %v2646_v35  ;;  %v2686_v11 = vld [vmem:[#allocation7 + $0xa88] sm:$0xff]  ;;  %v2693_v12 = vld [vmem:[#allocation7 + $0xac0] sm:$0xff]  ;;  %v2688_v15 = vld [vmem:[#allocation7 + $0xa98] sm:$0xff]  ;;  %v6078_v19 = vpack.c.bf16 %v2680_v10, %v2673_v9 }
 0x32a   :  { %5829 = vmatprep.subr.bf16.mxu1 %v5828_v44  ;;  %6053 = vmatprep.subr.bf16.mxu0 %v6052_v46  ;;  %v2645_v44 = vld [vmem:[#allocation7 + $0x940] sm:$0xff]  ;;  %v2652_v46 = vld [vmem:[#allocation7 + $0x978] sm:$0xff]  ;;  %v2687_v25 = vld [vmem:[#allocation7 + $0xa90] sm:$0xff] }
 0x32b   :  { %v6070_v52 = vpack.c.bf16 %v2652_v46, %v2645_v44  ;;  %v2685_v21 = vld [vmem:[#allocation7 + $0xa80] sm:$0xff]  ;;  %v2707_v35 = vld [vmem:[#allocation7 + $0xb30] sm:$0xff]  ;;  %v2702_v41 = vld [vmem:[#allocation7 + $0xb08] sm:$0xff] }
 0x32c   :  { %5831 = vmatpush1.bf16.msra.mxu1 %v5830_v4  ;;  %6055 = vmatpush1.bf16.msra.mxu0 %v6054_v55  ;;  %v2667_v4 = vld [vmem:[#allocation7 + $0x9f0] sm:$0xff]  ;;  %v5846_v55 = vpack.c.bf16 %v2650_v48, %v2643_v26  ;;  %v6082_v26 = vpack.c.bf16 %v2694_v28, %v2687_v25  ;;  %v2701_v46 = vld [vmem:[#allocation7 + $0xb00] sm:$0xff] }
 0x32d   :  { %5833 = vmatprep.subr.bf16.mxu1 %v5832_v58  ;;  %6057 = vmatprep.subr.bf16.mxu0 %v6056_v1  ;;  %v2664_v58 = vld [vmem:[#allocation7 + $0x9d8] sm:$0xff]  ;;  %v5848_v1 = vpack.c.bf16 %v2665_v61, %v2658_v59  ;;  %v6072_v57 = vpack.c.bf16 %v2667_v4, %v2660_v0  ;;  %v2699_v48 = vld [vmem:[#allocation7 + $0xaf0] sm:$0xff]  ;;  %v2714_v61 = vld [vmem:[#allocation7 + $0xb68] sm:$0xff] }
 0x32e   :  { %v2708_v59 = vld [vmem:[#allocation7 + $0xb38] sm:$0xff]  ;;  %v2721_v0 = vld [vmem:[#allocation7 + $0xba0] sm:$0xff]  ;;  %v2715_v17 = vld [vmem:[#allocation7 + $0xb70] sm:$0xff] }
 0x32f   :  { %v2716_v4 = vld [vmem:[#allocation7 + $0xb78] sm:$0xff]  ;;  %v2729_v10 = vld [vmem:[#allocation7 + $0xbe0] sm:$0xff]  ;;  %v2743_v28 = vld [vmem:[#allocation7 + $0xc50] sm:$0xff] }
 0x330   :  { %5835 = vmatpush1.bf16.msra.mxu1 %v5834_v62  ;;  %6059 = vmatpush1.bf16.msra.mxu0 %v6058_v5  ;;  %v2681_v62 = vld [vmem:[#allocation7 + $0xa60] sm:$0xff]  ;;  %v5850_v5 = vpack.c.bf16 %v2664_v58, %v2657_v60  ;;  %v6086_v60 = vpack.c.bf16 %v2708_v59, %v2701_v46 }
 0x331   :  { %5837 = vmatprep.subr.bf16.mxu1 %v5836_v2  ;;  %6061 = vmatprep.subr.bf16.mxu0 %v6060_v7  ;;  %v2678_v2 = vld [vmem:[#allocation7 + $0xa48] sm:$0xff]  ;;  %v5852_v7 = vpack.c.bf16 %v2679_v54, %v2672_v63  ;;  %v6076_v24 = vpack.c.bf16 %v2681_v62, %v2674_v3  ;;  %v2713_v58 = vld [vmem:[#allocation7 + $0xb60] sm:$0xff]  ;;  %v2728_v54 = vld [vmem:[#allocation7 + $0xbd8] sm:$0xff] }
 0x332   :  { %v2722_v63 = vld [vmem:[#allocation7 + $0xba8] sm:$0xff]  ;;  %v2735_v3 = vld [vmem:[#allocation7 + $0xc10] sm:$0xff]  ;;  %v2757_v59 = vld [vmem:[#allocation7 + $0xcc0] sm:$0xff] }
 0x333   :  { %v2730_v62 = vld [vmem:[#allocation7 + $0xbe8] sm:$0xff] }
 0x334   :  { %5839 = vmatpush1.bf16.msra.mxu1 %v5838_v13  ;;  %6063 = vmatpush1.bf16.msra.mxu0 %v6062_v16  ;;  %v2695_v13 = vld [vmem:[#allocation7 + $0xad0] sm:$0xff]  ;;  %v5854_v16 = vpack.c.bf16 %v2678_v2, %v2671_v6  ;;  %v6090_v6 = vpack.c.bf16 %v2722_v63, %v2715_v17 }
 0x335   :  { %5841 = vmatprep.subr.bf16.mxu1 %v5840_v22  ;;  %6065 = vmatprep.subr.bf16.mxu0 %v6064_v23  ;;  %v2692_v22 = vld [vmem:[#allocation7 + $0xab8] sm:$0xff]  ;;  %v5856_v23 = vpack.c.bf16 %v2693_v12, %v2686_v11  ;;  %v6080_v38 = vpack.c.bf16 %v2695_v13, %v2688_v15  ;;  %v2727_v2 = vld [vmem:[#allocation7 + $0xbd0] sm:$0xff]  ;;  %v2742_v12 = vld [vmem:[#allocation7 + $0xc48] sm:$0xff] }
 0x336   :  { %v2736_v11 = vld [vmem:[#allocation7 + $0xc18] sm:$0xff]  ;;  %v2749_v15 = vld [vmem:[#allocation7 + $0xc80] sm:$0xff]  ;;  %v2771_v63 = vld [vmem:[#allocation7 + $0xd30] sm:$0xff] }
 0x337   :  { %v2744_v13 = vld [vmem:[#allocation7 + $0xc58] sm:$0xff] }
 0x338   :  { %5843 = vmatpush1.bf16.msra.mxu1 %v5842_v43  ;;  %6067 = vmatpush1.bf16.msra.mxu0 %v6066_v47  ;;  %v2709_v43 = vld [vmem:[#allocation7 + $0xb40] sm:$0xff]  ;;  %v5858_v47 = vpack.c.bf16 %v2692_v22, %v2685_v21  ;;  %v6094_v21 = vpack.c.bf16 %v2736_v11, %v2729_v10 }
 0x339   :  { %5845 = vmatprep.subr.bf16.mxu1 %v5844_v49  ;;  %6069 = vmatprep.subr.bf16.mxu0 %v6068_v51  ;;  %v2706_v49 = vld [vmem:[#allocation7 + $0xb28] sm:$0xff]  ;;  %v5860_v51 = vpack.c.bf16 %v2707_v35, %v2700_v39  ;;  %v6084_v44 = vpack.c.bf16 %v2709_v43, %v2702_v41  ;;  %v2741_v22 = vld [vmem:[#allocation7 + $0xc40] sm:$0xff]  ;;  %v2756_v35 = vld [vmem:[#allocation7 + $0xcb8] sm:$0xff] }
 0x33a   :  { %v2750_v39 = vld [vmem:[#allocation7 + $0xc88] sm:$0xff]  ;;  %v2763_v41 = vld [vmem:[#allocation7 + $0xcf0] sm:$0xff]  ;;  %v2785_v11 = vld [vmem:[#allocation7 + $0xda0] sm:$0xff] }
 0x33b   :  { %v2758_v43 = vld [vmem:[#allocation7 + $0xcc8] sm:$0xff] }
 0x33c   :  { %5847 = vmatpush1.bf16.msra.mxu1 %v5846_v55  ;;  %6071 = vmatpush1.bf16.msra.mxu0 %v6070_v52  ;;  %v2723_v55 = vld [vmem:[#allocation7 + $0xbb0] sm:$0xff]  ;;  %v5862_v52 = vpack.c.bf16 %v2706_v49, %v2699_v48  ;;  %v6098_v48 = vpack.c.bf16 %v2750_v39, %v2743_v28  ;;  %v2804_v28 = vld [vmem:[#allocation7 + $0xe38] sm:$0xff] }
 0x33d   :  { %5849 = vmatprep.subr.bf16.mxu1 %v5848_v1  ;;  %6073 = vmatprep.subr.bf16.mxu0 %v6072_v57  ;;  %v2720_v1 = vld [vmem:[#allocation7 + $0xb98] sm:$0xff]  ;;  %v5864_v57 = vpack.c.bf16 %v2721_v0, %v2714_v61  ;;  %v6088_v18 = vpack.c.bf16 %v2723_v55, %v2716_v4  ;;  %v2755_v49 = vld [vmem:[#allocation7 + $0xcb0] sm:$0xff]  ;;  %v2770_v0 = vld [vmem:[#allocation7 + $0xd28] sm:$0xff] }
 0x33e   :  { %v2764_v61 = vld [vmem:[#allocation7 + $0xcf8] sm:$0xff]  ;;  %v2777_v4 = vld [vmem:[#allocation7 + $0xd60] sm:$0xff]  ;;  %v2799_v39 = vld [vmem:[#allocation7 + $0xe10] sm:$0xff] }
 0x33f   :  { %v2772_v55 = vld [vmem:[#allocation7 + $0xd38] sm:$0xff] }
 0x340   :  { %5851 = vmatpush1.bf16.msra.mxu1 %v5850_v5  ;;  %6075 = vmatpush1.bf16.msra.mxu0 %v6074_v8  ;;  %v2737_v5 = vld [vmem:[#allocation7 + $0xc20] sm:$0xff]  ;;  %v5866_v8 = vpack.c.bf16 %v2720_v1, %v2713_v58  ;;  %v6102_v58 = vpack.c.bf16 %v2764_v61, %v2757_v59  ;;  %v7049_v61 = vmax.f32 %v7024_v20, 0.0 }
 0x341   :  { %5853 = vmatprep.subr.bf16.mxu1 %v5852_v7  ;;  %6077 = vmatprep.subr.bf16.mxu0 %v6076_v24  ;;  %v2734_v7 = vld [vmem:[#allocation7 + $0xc08] sm:$0xff]  ;;  %v5868_v24 = vpack.c.bf16 %v2735_v3, %v2728_v54  ;;  %v6092_v9 = vpack.c.bf16 %v2737_v5, %v2730_v62  ;;  %v2769_v1 = vld [vmem:[#allocation7 + $0xd20] sm:$0xff]  ;;  %v2784_v3 = vld [vmem:[#allocation7 + $0xd98] sm:$0xff] }
 0x342   :  { %v2778_v54 = vld [vmem:[#allocation7 + $0xd68] sm:$0xff]  ;;  %v2791_v62 = vld [vmem:[#allocation7 + $0xdd0] sm:$0xff]  ;;  %v2813_v59 = vld [vmem:[#allocation7 + $0xe80] sm:$0xff] }
 0x343   :  { %v2786_v5 = vld [vmem:[#allocation7 + $0xda8] sm:$0xff] }
 0x344   :  { %5855 = vmatpush1.bf16.msra.mxu1 %v5854_v16  ;;  %6079 = vmatpush1.bf16.msra.mxu0 %v6078_v19  ;;  %v2751_v16 = vld [vmem:[#allocation7 + $0xc90] sm:$0xff]  ;;  %v5870_v19 = vpack.c.bf16 %v2734_v7, %v2727_v2  ;;  %v6106_v2 = vpack.c.bf16 %v2778_v54, %v2771_v63 }
 0x345   :  { %5857 = vmatprep.subr.bf16.mxu1 %v5856_v23  ;;  %6081 = vmatprep.subr.bf16.mxu0 %v6080_v38  ;;  %v2748_v23 = vld [vmem:[#allocation7 + $0xc78] sm:$0xff]  ;;  %v5872_v38 = vpack.c.bf16 %v2749_v15, %v2742_v12  ;;  %v6096_v25 = vpack.c.bf16 %v2751_v16, %v2744_v13  ;;  %v2783_v7 = vld [vmem:[#allocation7 + $0xd90] sm:$0xff]  ;;  %v2798_v15 = vld [vmem:[#allocation7 + $0xe08] sm:$0xff] }
 0x346   :  { %v2792_v12 = vld [vmem:[#allocation7 + $0xdd8] sm:$0xff]  ;;  %v2805_v13 = vld [vmem:[#allocation7 + $0xe40] sm:$0xff]  ;;  %v2827_v63 = vld [vmem:[#allocation7 + $0xef0] sm:$0xff] }
 0x347   :  { %v2800_v16 = vld [vmem:[#allocation7 + $0xe18] sm:$0xff] }
 0x348   :  { %5859 = vmatpush1.bf16.msra.mxu1 %v5858_v47  ;;  %6083 = vmatpush1.bf16.msra.mxu0 %v6082_v26  ;;  %v2765_v47 = vld [vmem:[#allocation7 + $0xd00] sm:$0xff]  ;;  %v5874_v26 = vpack.c.bf16 %v2748_v23, %v2741_v22  ;;  %v6110_v22 = vpack.c.bf16 %v2792_v12, %v2785_v11  ;;  %v5888_v23 = vpack.c.bf16 %v2805_v13, %v2798_v15  ;;  %v2848_v15 = vld [vmem:[#allocation7 + $0xf98] sm:$0xff]  ;;  %v2854_v13 = vld [vmem:[#allocation7 + $0xfc8] sm:$0xff] }
 0x349   :  { %5861 = vmatprep.subr.bf16.mxu1 %v5860_v51  ;;  %6085 = vmatprep.subr.bf16.mxu0 %v6084_v44  ;;  %v2762_v51 = vld [vmem:[#allocation7 + $0xce8] sm:$0xff]  ;;  %v5876_v44 = vpack.c.bf16 %v2763_v41, %v2756_v35  ;;  %v6100_v46 = vpack.c.bf16 %v2765_v47, %v2758_v43  ;;  %v2812_v41 = vld [vmem:[#allocation7 + $0xe78] sm:$0xff]  ;;  %v2819_v43 = vld [vmem:[#allocation7 + $0xeb0] sm:$0xff] }
 0x34a   :  { %v2806_v35 = vld [vmem:[#allocation7 + $0xe48] sm:$0xff]  ;;  %v2841_v11 = vld [vmem:[#allocation7 + $0xf60] sm:$0xff] }
 0x34b   :  { %v2814_v47 = vld [vmem:[#allocation7 + $0xe88] sm:$0xff] }
 0x34c   :  { %5863 = vmatpush1.bf16.msra.mxu1 %v5862_v52  ;;  %6087 = vmatpush1.bf16.msra.mxu0 %v6086_v60  ;;  %v2779_v52 = vld [vmem:[#allocation7 + $0xd70] sm:$0xff]  ;;  %v5878_v60 = vpack.c.bf16 %v2762_v51, %v2755_v49  ;;  %v7046_v49 = vmax.f32 %v7026_v34, 0.0  ;;  %v6114_v51 = vpack.c.bf16 %v2806_v35, %v2799_v39  ;;  %v2828_v34 = vld [vmem:[#allocation7 + $0xef8] sm:$0xff] }
 0x34d   :  { %5865 = vmatprep.subr.bf16.mxu1 %v5864_v57  ;;  %6089 = vmatprep.subr.bf16.mxu0 %v6088_v18  ;;  %v2776_v57 = vld [vmem:[#allocation7 + $0xd58] sm:$0xff]  ;;  %v5880_v18 = vpack.c.bf16 %v2777_v4, %v2770_v0  ;;  %v6104_v17 = vpack.c.bf16 %v2779_v52, %v2772_v55  ;;  %v5892_v0 = vpack.c.bf16 %v2819_v43, %v2812_v41  ;;  %v2826_v52 = vld [vmem:[#allocation7 + $0xee8] sm:$0xff]  ;;  %v2855_v39 = vld [vmem:[#allocation7 + $0xfd0] sm:$0xff] }
 0x34e   :  { %v2820_v55 = vld [vmem:[#allocation7 + $0xeb8] sm:$0xff]  ;;  %v2862_v41 = vld [vmem:[#allocation7 + $0x1008] sm:$0xff] }
 0x34f   :  { %v6118_v20 = vpack.c.bf16 %v2820_v55, %v2813_v59  ;;  %v2868_v43 = vld [vmem:[#allocation7 + $0x1038] sm:$0xff]  ;;  %v2867_v59 = vld [vmem:[#allocation7 + $0x1030] sm:$0xff] }
 0x350   :  { %5867 = vmatpush1.bf16.msra.mxu1 %v5866_v8  ;;  %6091 = vmatpush1.bf16.msra.mxu0 %v6090_v6  ;;  %v2793_v8 = vld [vmem:[#allocation7 + $0xde0] sm:$0xff]  ;;  %v5882_v6 = vpack.c.bf16 %v2776_v57, %v2769_v1 }
 0x351   :  { %5869 = vmatprep.subr.bf16.mxu1 %v5868_v24  ;;  %6093 = vmatprep.subr.bf16.mxu0 %v6092_v9  ;;  %v2790_v24 = vld [vmem:[#allocation7 + $0xdc8] sm:$0xff]  ;;  %v5884_v9 = vpack.c.bf16 %v2791_v62, %v2784_v3  ;;  %v6108_v10 = vpack.c.bf16 %v2793_v8, %v2786_v5  ;;  %v2840_v62 = vld [vmem:[#allocation7 + $0xf58] sm:$0xff]  ;;  %v2847_v5 = vld [vmem:[#allocation7 + $0xf90] sm:$0xff] }
 0x352   :  { %v2834_v3 = vld [vmem:[#allocation7 + $0xf28] sm:$0xff] }
 0x353   :  { %v2842_v8 = vld [vmem:[#allocation7 + $0xf68] sm:$0xff] }
 0x354   :  { %5871 = vmatpush1.bf16.msra.mxu1 %v5870_v19  ;;  %6095 = vmatpush1.bf16.msra.mxu0 %v6094_v21  ;;  %v2807_v19 = vld [vmem:[#allocation7 + $0xe50] sm:$0xff]  ;;  %v5886_v21 = vpack.c.bf16 %v2790_v24, %v2783_v7  ;;  %v6122_v7 = vpack.c.bf16 %v2834_v3, %v2827_v63  ;;  %v5900_v24 = vpack.c.bf16 %v2847_v5, %v2840_v62  ;;  %v2888_v63 = vld [vmem:[#allocation7 + $0x10d8] sm:$0xff]  ;;  %v2890_v62 = vld [vmem:[#allocation7 + $0x10e8] sm:$0xff] }
 0x355   :  { %5873 = vmatprep.subr.bf16.mxu1 %v5872_v38  ;;  %6097 = vmatprep.subr.bf16.mxu0 %v6096_v25  ;;  %v6112_v38 = vpack.c.bf16 %v2807_v19, %v2800_v16  ;;  %v2797_v25 = vld [vmem:[#allocation7 + $0xe00] sm:$0xff]  ;;  %v2856_v19 = vld [vmem:[#allocation7 + $0xfd8] sm:$0xff] }
 0x356   :  { %v2861_v16 = vld [vmem:[#allocation7 + $0x1000] sm:$0xff]  ;;  %v2896_v5 = vld [vmem:[#allocation7 + $0x1118] sm:$0xff] }
 0x358   :  { %5875 = vmatpush1.bf16.msra.mxu1 %v5874_v26  ;;  %6099 = vmatpush1.bf16.msra.mxu0 %v6098_v48  ;;  %v2821_v26 = vld [vmem:[#allocation7 + $0xec0] sm:$0xff]  ;;  %v5890_v48 = vpack.c.bf16 %v2804_v28, %v2797_v25  ;;  %v2860_v28 = vld [vmem:[#allocation7 + $0xff8] sm:$0xff] }
 0x359   :  { %5877 = vmatprep.subr.bf16.mxu1 %v5876_v44  ;;  %6101 = vmatprep.subr.bf16.mxu0 %v6100_v46  ;;  %v2811_v44 = vld [vmem:[#allocation7 + $0xe70] sm:$0xff]  ;;  %v2818_v46 = vld [vmem:[#allocation7 + $0xea8] sm:$0xff]  ;;  %v6116_v4 = vpack.c.bf16 %v2821_v26, %v2814_v47  ;;  %v2853_v25 = vld [vmem:[#allocation7 + $0xfc0] sm:$0xff] }
 0x35a   :  { %v5894_v1 = vpack.c.bf16 %v2818_v46, %v2811_v44  ;;  %v2875_v47 = vld [vmem:[#allocation7 + $0x1070] sm:$0xff]  ;;  %v2870_v26 = vld [vmem:[#allocation7 + $0x1048] sm:$0xff]  ;;  %v6130_v44 = vpack.c.bf16 %v2862_v41, %v2855_v39  ;;  %v2916_v39 = vld [vmem:[#allocation7 + $0x11b8] sm:$0xff] }
 0x35b   :  { %v5908_v46 = vpack.c.bf16 %v2875_v47, %v2868_v43  ;;  %v2918_v43 = vld [vmem:[#allocation7 + $0x11c8] sm:$0xff]  ;;  %v2924_v47 = vld [vmem:[#allocation7 + $0x11f8] sm:$0xff] }
 0x35c   :  { %5879 = vmatpush1.bf16.msra.mxu1 %v5878_v60  ;;  %6103 = vmatpush1.bf16.msra.mxu0 %v6102_v58  ;;  %v2833_v60 = vld [vmem:[#allocation7 + $0xf20] sm:$0xff]  ;;  %v2835_v58 = vld [vmem:[#allocation7 + $0xf30] sm:$0xff] }
 0x35d   :  { %5881 = vmatprep.subr.bf16.mxu1 %v5880_v18  ;;  %6105 = vmatprep.subr.bf16.mxu0 %v6104_v17  ;;  %v5896_v57 = vpack.c.bf16 %v2833_v60, %v2826_v52  ;;  %v2825_v18 = vld [vmem:[#allocation7 + $0xee0] sm:$0xff]  ;;  %v2832_v17 = vld [vmem:[#allocation7 + $0xf18] sm:$0xff]  ;;  %v6120_v54 = vpack.c.bf16 %v2835_v58, %v2828_v34  ;;  %v2882_v60 = vld [vmem:[#allocation7 + $0x10a8] sm:$0xff] }
 0x35e   :  { %v2876_v52 = vld [vmem:[#allocation7 + $0x1078] sm:$0xff]  ;;  %v2889_v34 = vld [vmem:[#allocation7 + $0x10e0] sm:$0xff] }
 0x35f   :  { %v2884_v58 = vld [vmem:[#allocation7 + $0x10b8] sm:$0xff] }
 0x360   :  { %5883 = vmatpush1.bf16.msra.mxu1 %v5882_v6  ;;  %6107 = vmatpush1.bf16.msra.mxu0 %v6106_v2  ;;  %v2849_v6 = vld [vmem:[#allocation7 + $0xfa0] sm:$0xff]  ;;  %v5898_v2 = vpack.c.bf16 %v2832_v17, %v2825_v18  ;;  %v5912_v18 = vpack.c.bf16 %v2889_v34, %v2882_v60  ;;  %v2932_v60 = vld [vmem:[#allocation7 + $0x1238] sm:$0xff]  ;;  %v2938_v34 = vld [vmem:[#allocation7 + $0x1268] sm:$0xff] }
 0x361   :  { %5885 = vmatprep.subr.bf16.mxu1 %v5884_v9  ;;  %6109 = vmatprep.subr.bf16.mxu0 %v6108_v10  ;;  %v2839_v9 = vld [vmem:[#allocation7 + $0xf50] sm:$0xff]  ;;  %v2846_v10 = vld [vmem:[#allocation7 + $0xf88] sm:$0xff]  ;;  %v6124_v12 = vpack.c.bf16 %v2849_v6, %v2842_v8  ;;  %v2881_v17 = vld [vmem:[#allocation7 + $0x10a0] sm:$0xff] }
 0x362   :  { %v2903_v8 = vld [vmem:[#allocation7 + $0x1150] sm:$0xff]  ;;  %v2898_v6 = vld [vmem:[#allocation7 + $0x1128] sm:$0xff] }
 0x364   :  { %5887 = vmatpush1.bf16.msra.mxu1 %v5886_v21  ;;  %6111 = vmatpush1.bf16.msra.mxu0 %v6110_v22  ;;  %v2863_v21 = vld [vmem:[#allocation7 + $0x1010] sm:$0xff]  ;;  %v5902_v22 = vpack.c.bf16 %v2846_v10, %v2839_v9  ;;  %v5916_v9 = vpack.c.bf16 %v2903_v8, %v2896_v5  ;;  %v2946_v5 = vld [vmem:[#allocation7 + $0x12a8] sm:$0xff]  ;;  %v2952_v8 = vld [vmem:[#allocation7 + $0x12d8] sm:$0xff] }
 0x365   :  { %5889 = vmatprep.subr.bf16.mxu1 %v5888_v23  ;;  %6113 = vmatprep.subr.bf16.mxu0 %v6112_v38  ;;  %v6126_v23 = vpack.c.bf16 %v2848_v15, %v2841_v11  ;;  %v5904_v38 = vpack.c.bf16 %v2861_v16, %v2854_v13  ;;  %v6128_v35 = vpack.c.bf16 %v2863_v21, %v2856_v19  ;;  %v2895_v10 = vld [vmem:[#allocation7 + $0x1110] sm:$0xff]  ;;  %v2902_v11 = vld [vmem:[#allocation7 + $0x1148] sm:$0xff]  ;;  %v2904_v13 = vld [vmem:[#allocation7 + $0x1158] sm:$0xff] }
 0x366   :  { %v2910_v16 = vld [vmem:[#allocation7 + $0x1188] sm:$0xff]  ;;  %v2917_v19 = vld [vmem:[#allocation7 + $0x11c0] sm:$0xff]  ;;  %v2912_v21 = vld [vmem:[#allocation7 + $0x1198] sm:$0xff] }
 0x367   :  { %3269 = vmatmul.mubr.f32.vlgmr.msra.gmra.mrb[10].mxu1 %v7046_v49  ;;  %3553 = vmatmul.mubr.f32.vlgmr.msra.gmra.mrb[4].mxu0 %v7046_v49 }
 0x368   :  { %5891 = vmatpush1.bf16.msra.mxu1 %v5890_v48  ;;  %3339 = vmatprep.mubr.f32.mxu1 %v7049_v61  ;;  %v2877_v48 = vld [vmem:[#allocation7 + $0x1080] sm:$0xff] }
 0x369   :  { %6115 = vmatpush1.bf16.msra.mxu0 %v6114_v51  ;;  %3623 = vmatprep.mubr.f32.mxu0 %v7049_v61  ;;  %v5906_v51 = vpack.c.bf16 %v2860_v28, %v2853_v25  ;;  %v6132_v55 = vpack.c.bf16 %v2877_v48, %v2870_v26  ;;  %v5920_v25 = vpack.c.bf16 %v2917_v19, %v2910_v16  ;;  %v2909_v28 = vld [vmem:[#allocation7 + $0x1180] sm:$0xff]  ;;  %v2931_v26 = vld [vmem:[#allocation7 + $0x1230] sm:$0xff]  ;;  %v2926_v48 = vld [vmem:[#allocation7 + $0x1208] sm:$0xff] }
 0x36a   :  { %5893 = vmatprep.subr.bf16.mxu1 %v5892_v0  ;;  %6117 = vmatprep.subr.bf16.mxu0 %v6116_v4  ;;  %v2874_v0 = vld [vmem:[#allocation7 + $0x1068] sm:$0xff]  ;;  %v2869_v4 = vld [vmem:[#allocation7 + $0x1040] sm:$0xff]  ;;  %v2960_v16 = vld [vmem:[#allocation7 + $0x1318] sm:$0xff] }
 0x36b   :  { %v2966_v19 = vld [vmem:[#allocation7 + $0x1348] sm:$0xff] }
 0x36c   :  { %5895 = vmatpush1.bf16.msra.mxu1 %v5894_v1  ;;  %v2891_v1 = vld [vmem:[#allocation7 + $0x10f0] sm:$0xff] }
 0x36d   :  { %6119 = vmatpush1.bf16.msra.mxu0 %v6118_v20  ;;  %5897 = vmatprep.subr.bf16.mxu1 %v5896_v57  ;;  %v5910_v20 = vpack.c.bf16 %v2874_v0, %v2867_v59  ;;  %v6134_v57 = vpack.c.bf16 %v2876_v52, %v2869_v4  ;;  %v6136_v3 = vpack.c.bf16 %v2891_v1, %v2884_v58  ;;  %v2923_v0 = vld [vmem:[#allocation7 + $0x11f0] sm:$0xff]  ;;  %v2930_v4 = vld [vmem:[#allocation7 + $0x1228] sm:$0xff]  ;;  %v2945_v58 = vld [vmem:[#allocation7 + $0x12a0] sm:$0xff] }
 0x36e   :  { %6121 = vmatprep.subr.bf16.mxu0 %v6120_v54  ;;  %v2883_v54 = vld [vmem:[#allocation7 + $0x10b0] sm:$0xff]  ;;  %v5924_v59 = vpack.c.bf16 %v2931_v26, %v2924_v47  ;;  %v2940_v1 = vld [vmem:[#allocation7 + $0x1278] sm:$0xff]  ;;  %v2974_v47 = vld [vmem:[#allocation7 + $0x1388] sm:$0xff] }
 0x36f   :  { %v2980_v26 = vld [vmem:[#allocation7 + $0x13b8] sm:$0xff] }
 0x370   :  { %5899 = vmatpush1.bf16.msra.mxu1 %v5898_v2  ;;  %v2905_v2 = vld [vmem:[#allocation7 + $0x1160] sm:$0xff] }
 0x371   :  { %6123 = vmatpush1.bf16.msra.mxu0 %v6122_v7  ;;  %5901 = vmatprep.subr.bf16.mxu1 %v5900_v24  ;;  %v5914_v7 = vpack.c.bf16 %v2888_v63, %v2881_v17  ;;  %v6138_v24 = vpack.c.bf16 %v2890_v62, %v2883_v54  ;;  %v6140_v15 = vpack.c.bf16 %v2905_v2, %v2898_v6  ;;  %v2937_v63 = vld [vmem:[#allocation7 + $0x1260] sm:$0xff]  ;;  %v2944_v54 = vld [vmem:[#allocation7 + $0x1298] sm:$0xff]  ;;  %v2959_v6 = vld [vmem:[#allocation7 + $0x1310] sm:$0xff] }
 0x372   :  { %6125 = vmatprep.subr.bf16.mxu0 %v6124_v12  ;;  %v2897_v12 = vld [vmem:[#allocation7 + $0x1120] sm:$0xff]  ;;  %v5928_v17 = vpack.c.bf16 %v2945_v58, %v2938_v34  ;;  %v2954_v2 = vld [vmem:[#allocation7 + $0x12e8] sm:$0xff]  ;;  %v2988_v34 = vld [vmem:[#allocation7 + $0x13f8] sm:$0xff] }
 0x373   :  { %v2994_v58 = vld [vmem:[#allocation7 + $0x1428] sm:$0xff] }
 0x374   :  { %5903 = vmatpush1.bf16.msra.mxu1 %v5902_v22  ;;  %v2919_v22 = vld [vmem:[#allocation7 + $0x11d0] sm:$0xff] }
 0x375   :  { %6127 = vmatpush1.bf16.msra.mxu0 %v6126_v23  ;;  %5905 = vmatprep.subr.bf16.mxu1 %v5904_v38  ;;  %v5918_v23 = vpack.c.bf16 %v2902_v11, %v2895_v10  ;;  %v6142_v38 = vpack.c.bf16 %v2904_v13, %v2897_v12  ;;  %v6144_v41 = vpack.c.bf16 %v2919_v22, %v2912_v21  ;;  %v2951_v11 = vld [vmem:[#allocation7 + $0x12d0] sm:$0xff]  ;;  %v2958_v12 = vld [vmem:[#allocation7 + $0x1308] sm:$0xff]  ;;  %v2973_v21 = vld [vmem:[#allocation7 + $0x1380] sm:$0xff] }
 0x376   :  { %6129 = vmatprep.subr.bf16.mxu0 %v6128_v35  ;;  %v2911_v35 = vld [vmem:[#allocation7 + $0x1190] sm:$0xff]  ;;  %v5932_v10 = vpack.c.bf16 %v2959_v6, %v2952_v8  ;;  %v2968_v22 = vld [vmem:[#allocation7 + $0x1358] sm:$0xff]  ;;  %v3002_v8 = vld [vmem:[#allocation7 + $0x1468] sm:$0xff] }
 0x377   :  { %v3008_v6 = vld [vmem:[#allocation7 + $0x1498] sm:$0xff] }
 0x378   :  { %5907 = vmatpush1.bf16.msra.mxu1 %v5906_v51  ;;  %v2933_v51 = vld [vmem:[#allocation7 + $0x1240] sm:$0xff] }
 0x379   :  { %6131 = vmatpush1.bf16.msra.mxu0 %v6130_v44  ;;  %5909 = vmatprep.subr.bf16.mxu1 %v5908_v46  ;;  %v5922_v44 = vpack.c.bf16 %v2916_v39, %v2909_v28  ;;  %v6146_v46 = vpack.c.bf16 %v2918_v43, %v2911_v35  ;;  %v6148_v52 = vpack.c.bf16 %v2933_v51, %v2926_v48  ;;  %v2965_v39 = vld [vmem:[#allocation7 + $0x1340] sm:$0xff]  ;;  %v2972_v35 = vld [vmem:[#allocation7 + $0x1378] sm:$0xff]  ;;  %v2987_v48 = vld [vmem:[#allocation7 + $0x13f0] sm:$0xff] }
 0x37a   :  { %6133 = vmatprep.subr.bf16.mxu0 %v6132_v55  ;;  %v2925_v55 = vld [vmem:[#allocation7 + $0x1200] sm:$0xff]  ;;  %v5936_v28 = vpack.c.bf16 %v2973_v21, %v2966_v19  ;;  %v2982_v51 = vld [vmem:[#allocation7 + $0x13c8] sm:$0xff]  ;;  %v3016_v19 = vld [vmem:[#allocation7 + $0x14d8] sm:$0xff] }
 0x37b   :  { %v3022_v21 = vld [vmem:[#allocation7 + $0x1508] sm:$0xff] }
 0x37c   :  { %5911 = vmatpush1.bf16.msra.mxu1 %v5910_v20  ;;  %v2947_v20 = vld [vmem:[#allocation7 + $0x12b0] sm:$0xff] }
 0x37d   :  { %6135 = vmatpush1.bf16.msra.mxu0 %v6134_v57  ;;  %5913 = vmatprep.subr.bf16.mxu1 %v5912_v18  ;;  %v5926_v57 = vpack.c.bf16 %v2930_v4, %v2923_v0  ;;  %v6150_v18 = vpack.c.bf16 %v2932_v60, %v2925_v55  ;;  %v6152_v62 = vpack.c.bf16 %v2947_v20, %v2940_v1  ;;  %v2979_v4 = vld [vmem:[#allocation7 + $0x13b0] sm:$0xff]  ;;  %v2986_v55 = vld [vmem:[#allocation7 + $0x13e8] sm:$0xff]  ;;  %v3001_v1 = vld [vmem:[#allocation7 + $0x1460] sm:$0xff] }
 0x37e   :  { %6137 = vmatprep.subr.bf16.mxu0 %v6136_v3  ;;  %v2939_v3 = vld [vmem:[#allocation7 + $0x1270] sm:$0xff]  ;;  %v5940_v0 = vpack.c.bf16 %v2987_v48, %v2980_v26  ;;  %v2996_v20 = vld [vmem:[#allocation7 + $0x1438] sm:$0xff]  ;;  %v3030_v26 = vld [vmem:[#allocation7 + $0x1548] sm:$0xff] }
 0x37f   :  { %v3036_v48 = vld [vmem:[#allocation7 + $0x1578] sm:$0xff] }
 0x380   :  { %5915 = vmatpush1.bf16.msra.mxu1 %v5914_v7  ;;  %v2961_v7 = vld [vmem:[#allocation7 + $0x1320] sm:$0xff] }
 0x381   :  { %6139 = vmatpush1.bf16.msra.mxu0 %v6138_v24  ;;  %5917 = vmatprep.subr.bf16.mxu1 %v5916_v9  ;;  %v5930_v24 = vpack.c.bf16 %v2944_v54, %v2937_v63  ;;  %v6154_v9 = vpack.c.bf16 %v2946_v5, %v2939_v3  ;;  %v6156_v13 = vpack.c.bf16 %v2961_v7, %v2954_v2  ;;  %v2993_v54 = vld [vmem:[#allocation7 + $0x1420] sm:$0xff]  ;;  %v3000_v3 = vld [vmem:[#allocation7 + $0x1458] sm:$0xff]  ;;  %v3015_v2 = vld [vmem:[#allocation7 + $0x14d0] sm:$0xff] }
 0x382   :  { %6141 = vmatprep.subr.bf16.mxu0 %v6140_v15  ;;  %v2953_v15 = vld [vmem:[#allocation7 + $0x12e0] sm:$0xff]  ;;  %v5944_v63 = vpack.c.bf16 %v3001_v1, %v2994_v58  ;;  %v3010_v7 = vld [vmem:[#allocation7 + $0x14a8] sm:$0xff]  ;;  %v3044_v1 = vld [vmem:[#allocation7 + $0x15b8] sm:$0xff] }
 0x384   :  { %5919 = vmatpush1.bf16.msra.mxu1 %v5918_v23  ;;  %v2975_v23 = vld [vmem:[#allocation7 + $0x1390] sm:$0xff] }
 0x385   :  { %6143 = vmatpush1.bf16.msra.mxu0 %v6142_v38  ;;  %5921 = vmatprep.subr.bf16.mxu1 %v5920_v25  ;;  %v5934_v38 = vpack.c.bf16 %v2958_v12, %v2951_v11  ;;  %v6158_v25 = vpack.c.bf16 %v2960_v16, %v2953_v15  ;;  %v6160_v43 = vpack.c.bf16 %v2975_v23, %v2968_v22  ;;  %v3007_v12 = vld [vmem:[#allocation7 + $0x1490] sm:$0xff]  ;;  %v3014_v15 = vld [vmem:[#allocation7 + $0x14c8] sm:$0xff]  ;;  %v3029_v22 = vld [vmem:[#allocation7 + $0x1540] sm:$0xff] }
 0x386   :  { %6145 = vmatprep.subr.bf16.mxu0 %v6144_v41  ;;  %v2967_v41 = vld [vmem:[#allocation7 + $0x1350] sm:$0xff]  ;;  %v5948_v11 = vpack.c.bf16 %v3015_v2, %v3008_v6  ;;  %v3024_v23 = vld [vmem:[#allocation7 + $0x1518] sm:$0xff]  ;;  %v3058_v6 = vld [vmem:[#allocation7 + $0x1628] sm:$0xff] }
 0x387   :  { %v3064_v2 = vld [vmem:[#allocation7 + $0x1658] sm:$0xff] }
 0x388   :  { %5923 = vmatpush1.bf16.msra.mxu1 %v5922_v44  ;;  %v2989_v44 = vld [vmem:[#allocation7 + $0x1400] sm:$0xff] }
 0x389   :  { %6147 = vmatpush1.bf16.msra.mxu0 %v6146_v46  ;;  %5925 = vmatprep.subr.bf16.mxu1 %v5924_v59  ;;  %v5938_v46 = vpack.c.bf16 %v2972_v35, %v2965_v39  ;;  %v6162_v59 = vpack.c.bf16 %v2974_v47, %v2967_v41  ;;  %v6164_v60 = vpack.c.bf16 %v2989_v44, %v2982_v51  ;;  %v3021_v35 = vld [vmem:[#allocation7 + $0x1500] sm:$0xff]  ;;  %v3028_v41 = vld [vmem:[#allocation7 + $0x1538] sm:$0xff]  ;;  %v3043_v51 = vld [vmem:[#allocation7 + $0x15b0] sm:$0xff] }
 0x38a   :  { %6149 = vmatprep.subr.bf16.mxu0 %v6148_v52  ;;  %v2981_v52 = vld [vmem:[#allocation7 + $0x13c0] sm:$0xff]  ;;  %v5952_v39 = vpack.c.bf16 %v3029_v22, %v3022_v21  ;;  %v3038_v44 = vld [vmem:[#allocation7 + $0x1588] sm:$0xff]  ;;  %v3072_v21 = vld [vmem:[#allocation7 + $0x1698] sm:$0xff] }
 0x38b   :  { %v3078_v22 = vld [vmem:[#allocation7 + $0x16c8] sm:$0xff] }
 0x38c   :  { %5927 = vmatpush1.bf16.msra.mxu1 %v5926_v57  ;;  %v3003_v57 = vld [vmem:[#allocation7 + $0x1470] sm:$0xff] }
 0x38d   :  { %6151 = vmatpush1.bf16.msra.mxu0 %v6150_v18  ;;  %5929 = vmatprep.subr.bf16.mxu1 %v5928_v17  ;;  %v5942_v18 = vpack.c.bf16 %v2986_v55, %v2979_v4  ;;  %v6166_v17 = vpack.c.bf16 %v2988_v34, %v2981_v52  ;;  %v6168_v5 = vpack.c.bf16 %v3003_v57, %v2996_v20  ;;  %v3035_v52 = vld [vmem:[#allocation7 + $0x1570] sm:$0xff]  ;;  %v3037_v34 = vld [vmem:[#allocation7 + $0x1580] sm:$0xff]  ;;  %v3050_v20 = vld [vmem:[#allocation7 + $0x15e8] sm:$0xff] }
 0x38e   :  { %6153 = vmatprep.subr.bf16.mxu0 %v6152_v62  ;;  %v2995_v62 = vld [vmem:[#allocation7 + $0x1430] sm:$0xff]  ;;  %v5956_v55 = vpack.c.bf16 %v3043_v51, %v3036_v48  ;;  %v3057_v57 = vld [vmem:[#allocation7 + $0x1620] sm:$0xff]  ;;  %v3086_v48 = vld [vmem:[#allocation7 + $0x1708] sm:$0xff] }
 0x38f   :  { %v3092_v51 = vld [vmem:[#allocation7 + $0x1738] sm:$0xff] }
 0x390   :  { %5931 = vmatpush1.bf16.msra.mxu1 %v5930_v24  ;;  %v3017_v24 = vld [vmem:[#allocation7 + $0x14e0] sm:$0xff] }
 0x391   :  { %6155 = vmatpush1.bf16.msra.mxu0 %v6154_v9  ;;  %5933 = vmatprep.subr.bf16.mxu1 %v5932_v10  ;;  %v5946_v9 = vpack.c.bf16 %v3000_v3, %v2993_v54  ;;  %v6170_v10 = vpack.c.bf16 %v3002_v8, %v2995_v62  ;;  %v6172_v16 = vpack.c.bf16 %v3017_v24, %v3010_v7  ;;  %v3049_v3 = vld [vmem:[#allocation7 + $0x15e0] sm:$0xff]  ;;  %v3056_v62 = vld [vmem:[#allocation7 + $0x1618] sm:$0xff]  ;;  %v3071_v7 = vld [vmem:[#allocation7 + $0x1690] sm:$0xff] }
 0x392   :  { %6157 = vmatprep.subr.bf16.mxu0 %v6156_v13  ;;  %v3009_v13 = vld [vmem:[#allocation7 + $0x14a0] sm:$0xff]  ;;  %v5960_v54 = vpack.c.bf16 %v3057_v57, %v3050_v20  ;;  %v3066_v24 = vld [vmem:[#allocation7 + $0x1668] sm:$0xff]  ;;  %v3100_v20 = vld [vmem:[#allocation7 + $0x1778] sm:$0xff] }
 0x393   :  { %v3106_v57 = vld [vmem:[#allocation7 + $0x17a8] sm:$0xff] }
 0x394   :  { %5935 = vmatpush1.bf16.msra.mxu1 %v5934_v38  ;;  %v3031_v38 = vld [vmem:[#allocation7 + $0x1550] sm:$0xff] }
 0x395   :  { %6159 = vmatpush1.bf16.msra.mxu0 %v6158_v25  ;;  %5937 = vmatprep.subr.bf16.mxu1 %v5936_v28  ;;  %v5950_v25 = vpack.c.bf16 %v3014_v15, %v3007_v12  ;;  %v6174_v28 = vpack.c.bf16 %v3016_v19, %v3009_v13  ;;  %v6176_v47 = vpack.c.bf16 %v3031_v38, %v3024_v23  ;;  %v3063_v15 = vld [vmem:[#allocation7 + $0x1650] sm:$0xff]  ;;  %v3070_v13 = vld [vmem:[#allocation7 + $0x1688] sm:$0xff]  ;;  %v3085_v23 = vld [vmem:[#allocation7 + $0x1700] sm:$0xff] }
 0x396   :  { %6161 = vmatprep.subr.bf16.mxu0 %v6160_v43  ;;  %v3023_v43 = vld [vmem:[#allocation7 + $0x1510] sm:$0xff]  ;;  %v5964_v12 = vpack.c.bf16 %v3071_v7, %v3064_v2  ;;  %v3080_v38 = vld [vmem:[#allocation7 + $0x16d8] sm:$0xff]  ;;  %v3114_v2 = vld [vmem:[#allocation7 + $0x17e8] sm:$0xff] }
 0x397   :  { %v6178_v4 = vpack.c.bf16 %v3030_v26, %v3023_v43  ;;  %v3084_v43 = vld [vmem:[#allocation7 + $0x16f8] sm:$0xff] }
 0x398   :  { %5939 = vmatpush1.bf16.msra.mxu1 %v5938_v46  ;;  %v3045_v46 = vld [vmem:[#allocation7 + $0x15c0] sm:$0xff]  ;;  %v3120_v7 = vld [vmem:[#allocation7 + $0x1818] sm:$0xff] }
 0x399   :  { %6163 = vmatpush1.bf16.msra.mxu0 %v6162_v59  ;;  %5941 = vmatprep.subr.bf16.mxu1 %v5940_v0  ;;  %v5954_v59 = vpack.c.bf16 %v3028_v41, %v3021_v35  ;;  %v7056_v0 = vmax.f32 %v7033_v53, 0.0  ;;  %v6180_v58 = vpack.c.bf16 %v3045_v46, %v3038_v44  ;;  %v5968_v35 = vpack.c.bf16 %v3085_v23, %v3078_v22  ;;  %v3077_v41 = vld [vmem:[#allocation7 + $0x16c0] sm:$0xff]  ;;  %v3099_v44 = vld [vmem:[#allocation7 + $0x1770] sm:$0xff]  ;;  %v3094_v46 = vld [vmem:[#allocation7 + $0x1748] sm:$0xff] }
 0x39a   :  { %6165 = vmatprep.subr.bf16.mxu0 %v6164_v60  ;;  %v3042_v60 = vld [vmem:[#allocation7 + $0x15a8] sm:$0xff]  ;;  %v3128_v22 = vld [vmem:[#allocation7 + $0x1858] sm:$0xff] }
 0x39b   :  { %v5958_v53 = vpack.c.bf16 %v3042_v60, %v3035_v52  ;;  %v5972_v52 = vpack.c.bf16 %v3099_v44, %v3092_v51  ;;  %v3091_v60 = vld [vmem:[#allocation7 + $0x1730] sm:$0xff]  ;;  %v2354_v23 = vld [vmem:[#allocation7 + $0x28] sm:$0xff]  ;;  %v2368_v44 = vld [vmem:[#allocation7 + $0x98] sm:$0xff] }
 0x39c   :  { %5943 = vmatpush1.bf16.msra.mxu1 %v5942_v18  ;;  %v3052_v18 = vld [vmem:[#allocation7 + $0x15f8] sm:$0xff]  ;;  %v2362_v51 = vld [vmem:[#allocation7 + $0x68] sm:$0xff] }
 0x39d   :  { %6167 = vmatpush1.bf16.msra.mxu0 %v6166_v17  ;;  %5945 = vmatprep.subr.bf16.mxu1 %v5944_v63  ;;  %v3059_v17 = vld [vmem:[#allocation7 + $0x1630] sm:$0xff]  ;;  %v6182_v63 = vpack.c.bf16 %v3044_v1, %v3037_v34  ;;  %v3098_v34 = vld [vmem:[#allocation7 + $0x1768] sm:$0xff] }
 0x39e   :  { %6169 = vmatprep.subr.bf16.mxu0 %v6168_v5  ;;  %v3051_v5 = vld [vmem:[#allocation7 + $0x15f0] sm:$0xff]  ;;  %v6184_v8 = vpack.c.bf16 %v3059_v17, %v3052_v18  ;;  %v3113_v18 = vld [vmem:[#allocation7 + $0x17e0] sm:$0xff]  ;;  %v3108_v17 = vld [vmem:[#allocation7 + $0x17b8] sm:$0xff] }
 0x3a0   :  { %5947 = vmatpush1.bf16.msra.mxu1 %v5946_v9  ;;  %v3073_v9 = vld [vmem:[#allocation7 + $0x16a0] sm:$0xff] }
 0x3a1   :  { %6171 = vmatpush1.bf16.msra.mxu0 %v6170_v10  ;;  %5949 = vmatprep.subr.bf16.mxu1 %v5948_v11  ;;  %v5962_v10 = vpack.c.bf16 %v3056_v62, %v3049_v3  ;;  %v6186_v11 = vpack.c.bf16 %v3058_v6, %v3051_v5  ;;  %v6188_v19 = vpack.c.bf16 %v3073_v9, %v3066_v24  ;;  %v3105_v62 = vld [vmem:[#allocation7 + $0x17a0] sm:$0xff]  ;;  %v3112_v5 = vld [vmem:[#allocation7 + $0x17d8] sm:$0xff]  ;;  %v3127_v24 = vld [vmem:[#allocation7 + $0x1850] sm:$0xff] }
 0x3a2   :  { %6173 = vmatprep.subr.bf16.mxu0 %v6172_v16  ;;  %v3065_v16 = vld [vmem:[#allocation7 + $0x1660] sm:$0xff]  ;;  %v5976_v3 = vpack.c.bf16 %v3113_v18, %v3106_v57  ;;  %v3122_v9 = vld [vmem:[#allocation7 + $0x1828] sm:$0xff]  ;;  %v2376_v57 = vld [vmem:[#allocation7 + $0xd8] sm:$0xff] }
 0x3a3   :  { %v2382_v18 = vld [vmem:[#allocation7 + $0x108] sm:$0xff] }
 0x3a4   :  { %5951 = vmatpush1.bf16.msra.mxu1 %v5950_v25  ;;  %v3087_v25 = vld [vmem:[#allocation7 + $0x1710] sm:$0xff] }
 0x3a5   :  { %6175 = vmatpush1.bf16.msra.mxu0 %v6174_v28  ;;  %5953 = vmatprep.subr.bf16.mxu1 %v5952_v39  ;;  %v5966_v28 = vpack.c.bf16 %v3070_v13, %v3063_v15  ;;  %v6190_v39 = vpack.c.bf16 %v3072_v21, %v3065_v16  ;;  %v6192_v26 = vpack.c.bf16 %v3087_v25, %v3080_v38  ;;  %v3119_v13 = vld [vmem:[#allocation7 + $0x1810] sm:$0xff]  ;;  %v3126_v16 = vld [vmem:[#allocation7 + $0x1848] sm:$0xff]  ;;  %v2361_v38 = vld [vmem:[#allocation7 + $0x60] sm:$0xff] }
 0x3a6   :  { %6177 = vmatprep.subr.bf16.mxu0 %v6176_v47  ;;  %v3079_v47 = vld [vmem:[#allocation7 + $0x16d0] sm:$0xff]  ;;  %v5980_v15 = vpack.c.bf16 %v3127_v24, %v3120_v7  ;;  %v2390_v7 = vld [vmem:[#allocation7 + $0x148] sm:$0xff]  ;;  %v2396_v24 = vld [vmem:[#allocation7 + $0x178] sm:$0xff] }
 0x3a7   :  { %3340 = vmatmul.mubr.f32.vlgmr.msra.gmra.mrb[10].mxu1 %v7056_v0  ;;  %v2467_v25 = vld [vmem:[#allocation7 + $0x3b0] sm:$0xff] }
 0x3a8   :  { %3624 = vmatmul.mubr.f32.vlgmr.msra.gmra.mrb[4].mxu0 %v7056_v0  ;;  %5955 = vmatpush1.bf16.msra.mxu1 %v5954_v59  ;;  %v3101_v59 = vld [vmem:[#allocation7 + $0x1780] sm:$0xff] }
 0x3a9   :  { %6179 = vmatpush1.bf16.msra.mxu0 %v6178_v4  ;;  %5957 = vmatprep.subr.bf16.mxu1 %v5956_v55  ;;  %v5970_v4 = vpack.c.bf16 %v3084_v43, %v3077_v41  ;;  %v6194_v55 = vpack.c.bf16 %v3086_v48, %v3079_v47  ;;  %v6196_v1 = vpack.c.bf16 %v3101_v59, %v3094_v46  ;;  %v2353_v43 = vld [vmem:[#allocation7 + $0x20] sm:$0xff]  ;;  %v2360_v47 = vld [vmem:[#allocation7 + $0x58] sm:$0xff]  ;;  %v2355_v48 = vld [vmem:[#allocation7 + $0x30] sm:$0xff] }
 0x3aa   :  { %6181 = vmatprep.subr.bf16.mxu0 %v6180_v58  ;;  %3410 = vmatprep.mubr.f32.mxu1 %v6765_v42  ;;  %v3093_v58 = vld [vmem:[#allocation7 + $0x1740] sm:$0xff]  ;;  %v6208_v41 = vpack.c.bf16 %v2361_v38, %v2354_v23  ;;  %v2375_v46 = vld [vmem:[#allocation7 + $0xd0] sm:$0xff]  ;;  %v6210_v59 = vpack.c.bf16 %v2360_v47, %v2353_v43  ;;  %v2410_v23 = vld [vmem:[#allocation7 + $0x1e8] sm:$0xff] }
 0x3ab   :  { %3694 = vmatprep.mubr.f32.mxu0 %v6765_v42  ;;  %v2417_v38 = vld [vmem:[#allocation7 + $0x220] sm:$0xff]  ;;  %v2416_v47 = vld [vmem:[#allocation7 + $0x218] sm:$0xff] }
 0x3ac   :  { %5959 = vmatpush1.bf16.msra.mxu1 %v5958_v53  ;;  %v3115_v53 = vld [vmem:[#allocation7 + $0x17f0] sm:$0xff]  ;;  %v2409_v43 = vld [vmem:[#allocation7 + $0x1e0] sm:$0xff] }
 0x3ad   :  { %6183 = vmatpush1.bf16.msra.mxu0 %v6182_v63  ;;  %5961 = vmatprep.subr.bf16.mxu1 %v5960_v54  ;;  %v5974_v63 = vpack.c.bf16 %v3098_v34, %v3091_v60  ;;  %v6198_v54 = vpack.c.bf16 %v3100_v20, %v3093_v58  ;;  %v6200_v6 = vpack.c.bf16 %v3115_v53, %v3108_v17  ;;  %v2367_v34 = vld [vmem:[#allocation7 + $0x90] sm:$0xff]  ;;  %v2374_v58 = vld [vmem:[#allocation7 + $0xc8] sm:$0xff]  ;;  %v2389_v17 = vld [vmem:[#allocation7 + $0x140] sm:$0xff] }
 0x3ae   :  { %6185 = vmatprep.subr.bf16.mxu0 %v6184_v8  ;;  %v3107_v8 = vld [vmem:[#allocation7 + $0x17b0] sm:$0xff]  ;;  %v6434_v60 = vpack.c.bf16 %v2362_v51, %v2355_v48  ;;  %v6212_v20 = vpack.c.bf16 %v2375_v46, %v2368_v44  ;;  %v2418_v51 = vld [vmem:[#allocation7 + $0x228] sm:$0xff]  ;;  %v2424_v44 = vld [vmem:[#allocation7 + $0x258] sm:$0xff] }
 0x3af   :  { %v2431_v46 = vld [vmem:[#allocation7 + $0x290] sm:$0xff] }
 0x3b0   :  { %5963 = vmatpush1.bf16.msra.mxu1 %v5962_v10  ;;  %v3129_v10 = vld [vmem:[#allocation7 + $0x1860] sm:$0xff] }
 0x3b1   :  { %6187 = vmatpush1.bf16.msra.mxu0 %v6186_v11  ;;  %5965 = vmatprep.subr.bf16.mxu1 %v5964_v12  ;;  %v5978_v11 = vpack.c.bf16 %v3112_v5, %v3105_v62  ;;  %v6202_v12 = vpack.c.bf16 %v3114_v2, %v3107_v8  ;;  %v6204_v21 = vpack.c.bf16 %v3129_v10, %v3122_v9  ;;  %v2381_v5 = vld [vmem:[#allocation7 + $0x100] sm:$0xff]  ;;  %v2388_v8 = vld [vmem:[#allocation7 + $0x138] sm:$0xff]  ;;  %v2403_v9 = vld [vmem:[#allocation7 + $0x1b0] sm:$0xff] }
 0x3b2   :  { %6189 = vmatprep.subr.bf16.mxu0 %v6188_v19  ;;  %v3121_v19 = vld [vmem:[#allocation7 + $0x1820] sm:$0xff]  ;;  %v6216_v62 = vpack.c.bf16 %v2389_v17, %v2382_v18  ;;  %v2432_v18 = vld [vmem:[#allocation7 + $0x298] sm:$0xff]  ;;  %v2438_v17 = vld [vmem:[#allocation7 + $0x2c8] sm:$0xff] }
 0x3b3   :  { %v2509_v10 = vld [vmem:[#allocation7 + $0x500] sm:$0xff] }
 0x3b4   :  { %5967 = vmatpush1.bf16.msra.mxu1 %v5966_v28  ;;  %v2474_v28 = vld [vmem:[#allocation7 + $0x3e8] sm:$0xff] }
 0x3b5   :  { %6191 = vmatpush1.bf16.msra.mxu0 %v6190_v39  ;;  %5969 = vmatprep.subr.bf16.mxu1 %v5968_v35  ;;  %v5982_v39 = vpack.c.bf16 %v3126_v16, %v3119_v13  ;;  %v6206_v35 = vpack.c.bf16 %v3128_v22, %v3121_v19  ;;  %v6220_v13 = vpack.c.bf16 %v2403_v9, %v2396_v24  ;;  %v2395_v16 = vld [vmem:[#allocation7 + $0x170] sm:$0xff]  ;;  %v2402_v19 = vld [vmem:[#allocation7 + $0x1a8] sm:$0xff]  ;;  %v2452_v24 = vld [vmem:[#allocation7 + $0x338] sm:$0xff] }
 0x3b6   :  { %6193 = vmatprep.subr.bf16.mxu0 %v6192_v26  ;;  %v6432_v26 = vpack.c.bf16 %v2474_v28, %v2467_v25  ;;  %v2523_v25 = vld [vmem:[#allocation7 + $0x570] sm:$0xff]  ;;  %v2530_v28 = vld [vmem:[#allocation7 + $0x5a8] sm:$0xff] }
 0x3b7   :  { %v6448_v48 = vpack.c.bf16 %v2530_v28, %v2523_v25  ;;  %v2459_v9 = vld [vmem:[#allocation7 + $0x370] sm:$0xff]  ;;  %v2698_v28 = vld [vmem:[#allocation7 + $0xae8] sm:$0xff] }
 0x3b8   :  { %5971 = vmatpush1.bf16.msra.mxu1 %v5970_v4  ;;  %v2481_v4 = vld [vmem:[#allocation7 + $0x420] sm:$0xff]  ;;  %v2691_v25 = vld [vmem:[#allocation7 + $0xab0] sm:$0xff] }
 0x3b9   :  { %6195 = vmatpush1.bf16.msra.mxu0 %v6194_v55  ;;  %5973 = vmatprep.subr.bf16.mxu1 %v5972_v52  ;;  %v2488_v55 = vld [vmem:[#allocation7 + $0x458] sm:$0xff]  ;;  %v7063_v52 = vmax.f32 %v7035_v56, 0.0  ;;  %v6214_v56 = vpack.c.bf16 %v2374_v58, %v2367_v34  ;;  %v6228_v34 = vpack.c.bf16 %v2431_v46, %v2424_v44  ;;  %v2423_v58 = vld [vmem:[#allocation7 + $0x250] sm:$0xff] }
 0x3ba   :  { %6197 = vmatprep.subr.bf16.mxu0 %v6196_v1  ;;  %v2369_v1 = vld [vmem:[#allocation7 + $0xa0] sm:$0xff]  ;;  %v6436_v53 = vpack.c.bf16 %v2488_v55, %v2481_v4  ;;  %v2544_v4 = vld [vmem:[#allocation7 + $0x618] sm:$0xff]  ;;  %v6226_v55 = vpack.c.bf16 %v2416_v47, %v2409_v43  ;;  %v2487_v46 = vld [vmem:[#allocation7 + $0x450] sm:$0xff] }
 0x3bb   :  { %v2465_v43 = vld [vmem:[#allocation7 + $0x3a0] sm:$0xff]  ;;  %v2472_v47 = vld [vmem:[#allocation7 + $0x3d8] sm:$0xff] }
 0x3bc   :  { %5975 = vmatpush1.bf16.msra.mxu1 %v5974_v63  ;;  %v2495_v63 = vld [vmem:[#allocation7 + $0x490] sm:$0xff]  ;;  %v2480_v44 = vld [vmem:[#allocation7 + $0x418] sm:$0xff] }
 0x3bd   :  { %6199 = vmatpush1.bf16.msra.mxu0 %v6198_v54  ;;  %5977 = vmatprep.subr.bf16.mxu1 %v5976_v3  ;;  %v2502_v54 = vld [vmem:[#allocation7 + $0x4c8] sm:$0xff]  ;;  %v6438_v3 = vpack.c.bf16 %v2376_v57, %v2369_v1 }
 0x3be   :  { %6201 = vmatprep.subr.bf16.mxu0 %v6200_v6  ;;  %v2383_v6 = vld [vmem:[#allocation7 + $0x110] sm:$0xff]  ;;  %v6440_v2 = vpack.c.bf16 %v2502_v54, %v2495_v63  ;;  %v2430_v1 = vld [vmem:[#allocation7 + $0x288] sm:$0xff] }
 0x3bf   :  { %v2551_v63 = vld [vmem:[#allocation7 + $0x650] sm:$0xff]  ;;  %v2558_v54 = vld [vmem:[#allocation7 + $0x688] sm:$0xff] }
 0x3c0   :  { %5979 = vmatpush1.bf16.msra.mxu1 %v5978_v11  ;;  %v2516_v11 = vld [vmem:[#allocation7 + $0x538] sm:$0xff] }
 0x3c1   :  { %6203 = vmatpush1.bf16.msra.mxu0 %v6202_v12  ;;  %5981 = vmatprep.subr.bf16.mxu1 %v5980_v15  ;;  %v6218_v12 = vpack.c.bf16 %v2388_v8, %v2381_v5  ;;  %v6442_v15 = vpack.c.bf16 %v2390_v7, %v2383_v6  ;;  %v6444_v22 = vpack.c.bf16 %v2516_v11, %v2509_v10  ;;  %v2437_v5 = vld [vmem:[#allocation7 + $0x2c0] sm:$0xff]  ;;  %v2444_v8 = vld [vmem:[#allocation7 + $0x2f8] sm:$0xff]  ;;  %v2439_v6 = vld [vmem:[#allocation7 + $0x2d0] sm:$0xff] }
 0x3c2   :  { %6205 = vmatprep.subr.bf16.mxu0 %v6204_v21  ;;  %v2397_v21 = vld [vmem:[#allocation7 + $0x180] sm:$0xff]  ;;  %v2446_v7 = vld [vmem:[#allocation7 + $0x308] sm:$0xff]  ;;  %v2572_v11 = vld [vmem:[#allocation7 + $0x6f8] sm:$0xff] }
 0x3c3   :  { %v2565_v10 = vld [vmem:[#allocation7 + $0x6c0] sm:$0xff] }
 0x3c4   :  { %5983 = vmatpush1.bf16.msra.mxu1 %v5982_v39  ;;  %v6222_v39 = vpack.c.bf16 %v2402_v19, %v2395_v16  ;;  %v2451_v16 = vld [vmem:[#allocation7 + $0x330] sm:$0xff]  ;;  %v2458_v19 = vld [vmem:[#allocation7 + $0x368] sm:$0xff] }
 0x3c5   :  { %6207 = vmatpush1.bf16.msra.mxu0 %v6206_v35  ;;  %6209 = vmatprep.subr.bf16.mxu1 %v6208_v41  ;;  %v6224_v41 = vpack.c.bf16 %v2417_v38, %v2410_v23  ;;  %v2466_v23 = vld [vmem:[#allocation7 + $0x3a8] sm:$0xff]  ;;  %v2473_v38 = vld [vmem:[#allocation7 + $0x3e0] sm:$0xff] }
 0x3c6   :  { %6433 = vmatprep.subr.bf16.mxu0 %v6432_v26  ;;  %v2411_v26 = vld [vmem:[#allocation7 + $0x1f0] sm:$0xff] }
 0x3c7   :  { %3411 = vmatmul.mubr.f32.vlgmr.msra.gmra.mrb[10].mxu1 %v7063_v52 }
 0x3c8   :  { %3695 = vmatmul.mubr.f32.vlgmr.msra.gmra.mrb[4].mxu0 %v7063_v52  ;;  %6211 = vmatpush1.bf16.msra.mxu1 %v6210_v59  ;;  %v2537_v59 = vld [vmem:[#allocation7 + $0x5e0] sm:$0xff] }
 0x3c9   :  { %3765 = vmatprep.mubr.f32.mxu1 %v7029_v36  ;;  %6435 = vmatpush3.bf16.msra.mxu0 %v6434_v60  ;;  %v6450_v60 = vpack.c.bf16 %v2418_v51, %v2411_v26  ;;  %v6452_v57 = vpack.c.bf16 %v2544_v4, %v2537_v59  ;;  %v6464_v26 = vpack.c.bf16 %v2698_v28, %v2691_v25  ;;  %v2586_v51 = vld [vmem:[#allocation7 + $0x768] sm:$0xff]  ;;  %v2705_v59 = vld [vmem:[#allocation7 + $0xb20] sm:$0xff]  ;;  %v2712_v4 = vld [vmem:[#allocation7 + $0xb58] sm:$0xff] }
 0x3ca   :  { %4049 = vmatprep.mubr.f32.mxu0 %v7029_v36  ;;  %6213 = vmatprep.subr.bf16.mxu1 %v6212_v20  ;;  %v2404_v36 = vld [vmem:[#allocation7 + $0x1b8] sm:$0xff]  ;;  %v2425_v20 = vld [vmem:[#allocation7 + $0x260] sm:$0xff]  ;;  %v2747_v25 = vld [vmem:[#allocation7 + $0xc70] sm:$0xff] }
 0x3cb   :  { %6437 = vmatprep.subr.bf16.mxu0 %v6436_v53  ;;  %v6446_v35 = vpack.c.bf16 %v2404_v36, %v2397_v21  ;;  %v2445_v53 = vld [vmem:[#allocation7 + $0x300] sm:$0xff]  ;;  %v2460_v36 = vld [vmem:[#allocation7 + $0x378] sm:$0xff]  ;;  %v2754_v28 = vld [vmem:[#allocation7 + $0xca8] sm:$0xff] }
 0x3cc   :  { %6215 = vmatpush1.bf16.msra.mxu1 %v6214_v56  ;;  %v6230_v56 = vpack.c.bf16 %v2430_v1, %v2423_v58  ;;  %v2453_v21 = vld [vmem:[#allocation7 + $0x340] sm:$0xff]  ;;  %v2486_v58 = vld [vmem:[#allocation7 + $0x448] sm:$0xff] }
 0x3cd   :  { %6439 = vmatpush3.bf16.msra.mxu0 %v6438_v3  ;;  %6217 = vmatprep.subr.bf16.mxu1 %v6216_v62  ;;  %v6454_v3 = vpack.c.bf16 %v2432_v18, %v2425_v20  ;;  %v6232_v62 = vpack.c.bf16 %v2445_v53, %v2438_v17  ;;  %v2593_v1 = vld [vmem:[#allocation7 + $0x7a0] sm:$0xff]  ;;  %v6244_v20 = vpack.c.bf16 %v2487_v46, %v2480_v44  ;;  %v2600_v18 = vld [vmem:[#allocation7 + $0x7d8] sm:$0xff]  ;;  %v2494_v17 = vld [vmem:[#allocation7 + $0x488] sm:$0xff] }
 0x3ce   :  { %6441 = vmatprep.subr.bf16.mxu0 %v6440_v2  ;;  %v6456_v2 = vpack.c.bf16 %v2558_v54, %v2551_v63  ;;  %v2501_v53 = vld [vmem:[#allocation7 + $0x4c0] sm:$0xff]  ;;  %v2719_v63 = vld [vmem:[#allocation7 + $0xb90] sm:$0xff]  ;;  %v2726_v54 = vld [vmem:[#allocation7 + $0xbc8] sm:$0xff] }
 0x3cf   :  { %v2536_v44 = vld [vmem:[#allocation7 + $0x5d8] sm:$0xff]  ;;  %v2543_v46 = vld [vmem:[#allocation7 + $0x610] sm:$0xff] }
 0x3d0   :  { %6219 = vmatpush1.bf16.msra.mxu1 %v6218_v12  ;;  %v6234_v12 = vpack.c.bf16 %v2444_v8, %v2437_v5  ;;  %v2493_v5 = vld [vmem:[#allocation7 + $0x480] sm:$0xff]  ;;  %v2500_v8 = vld [vmem:[#allocation7 + $0x4b8] sm:$0xff] }
 0x3d1   :  { %6443 = vmatpush3.bf16.msra.mxu0 %v6442_v15  ;;  %6221 = vmatprep.subr.bf16.mxu1 %v6220_v13  ;;  %v6458_v15 = vpack.c.bf16 %v2446_v7, %v2439_v6  ;;  %v6236_v13 = vpack.c.bf16 %v2459_v9, %v2452_v24  ;;  %v2607_v6 = vld [vmem:[#allocation7 + $0x810] sm:$0xff]  ;;  %v2614_v7 = vld [vmem:[#allocation7 + $0x848] sm:$0xff]  ;;  %v2508_v24 = vld [vmem:[#allocation7 + $0x4f8] sm:$0xff] }
 0x3d2   :  { %6445 = vmatprep.subr.bf16.mxu0 %v6444_v22  ;;  %v6460_v22 = vpack.c.bf16 %v2572_v11, %v2565_v10  ;;  %v2515_v9 = vld [vmem:[#allocation7 + $0x530] sm:$0xff]  ;;  %v2733_v10 = vld [vmem:[#allocation7 + $0xc00] sm:$0xff]  ;;  %v2740_v11 = vld [vmem:[#allocation7 + $0xc38] sm:$0xff] }
 0x3d4   :  { %6223 = vmatpush1.bf16.msra.mxu1 %v6222_v39  ;;  %v6238_v39 = vpack.c.bf16 %v2458_v19, %v2451_v16  ;;  %v2507_v16 = vld [vmem:[#allocation7 + $0x4f0] sm:$0xff]  ;;  %v2514_v19 = vld [vmem:[#allocation7 + $0x528] sm:$0xff] }
 0x3d5   :  { %6447 = vmatpush3.bf16.msra.mxu0 %v6446_v35  ;;  %6225 = vmatprep.subr.bf16.mxu1 %v6224_v41  ;;  %v6462_v35 = vpack.c.bf16 %v2460_v36, %v2453_v21  ;;  %v6240_v41 = vpack.c.bf16 %v2473_v38, %v2466_v23  ;;  %v2621_v21 = vld [vmem:[#allocation7 + $0x880] sm:$0xff]  ;;  %v2628_v36 = vld [vmem:[#allocation7 + $0x8b8] sm:$0xff]  ;;  %v2522_v23 = vld [vmem:[#allocation7 + $0x568] sm:$0xff] }
 0x3d6   :  { %6449 = vmatprep.subr.bf16.mxu0 %v6448_v48  ;;  %v2579_v48 = vld [vmem:[#allocation7 + $0x730] sm:$0xff]  ;;  %v2529_v38 = vld [vmem:[#allocation7 + $0x5a0] sm:$0xff] }
 0x3d8   :  { %6227 = vmatpush1.bf16.msra.mxu1 %v6226_v55  ;;  %v6242_v55 = vpack.c.bf16 %v2472_v47, %v2465_v43  ;;  %v2521_v43 = vld [vmem:[#allocation7 + $0x560] sm:$0xff]  ;;  %v2528_v47 = vld [vmem:[#allocation7 + $0x598] sm:$0xff] }
 0x3d9   :  { %6451 = vmatpush3.bf16.msra.mxu0 %v6450_v60  ;;  %6229 = vmatprep.subr.bf16.mxu1 %v6228_v34  ;;  %v6466_v60 = vpack.c.bf16 %v2586_v51, %v2579_v48  ;;  %v2479_v34 = vld [vmem:[#allocation7 + $0x410] sm:$0xff]  ;;  %v6480_v48 = vpack.c.bf16 %v2754_v28, %v2747_v25  ;;  %v2642_v51 = vld [vmem:[#allocation7 + $0x928] sm:$0xff] }
 0x3da   :  { %6453 = vmatprep.subr.bf16.mxu0 %v6452_v57  ;;  %v6468_v57 = vpack.c.bf16 %v2712_v4, %v2705_v59  ;;  %v2761_v59 = vld [vmem:[#allocation7 + $0xce0] sm:$0xff]  ;;  %v2768_v4 = vld [vmem:[#allocation7 + $0xd18] sm:$0xff]  ;;  %v2915_v25 = vld [vmem:[#allocation7 + $0x11b0] sm:$0xff] }
 0x3db   :  { %v2922_v28 = vld [vmem:[#allocation7 + $0x11e8] sm:$0xff] }
 0x3dc   :  { %6231 = vmatpush1.bf16.msra.mxu1 %v6230_v56  ;;  %v6246_v56 = vpack.c.bf16 %v2486_v58, %v2479_v34  ;;  %v6260_v34 = vpack.c.bf16 %v2543_v46, %v2536_v44  ;;  %v2535_v58 = vld [vmem:[#allocation7 + $0x5d0] sm:$0xff]  ;;  %v2592_v44 = vld [vmem:[#allocation7 + $0x798] sm:$0xff] }
 0x3dd   :  { %6455 = vmatpush3.bf16.msra.mxu0 %v6454_v3  ;;  %6233 = vmatprep.subr.bf16.mxu1 %v6232_v62  ;;  %v6470_v3 = vpack.c.bf16 %v2600_v18, %v2593_v1  ;;  %v6248_v62 = vpack.c.bf16 %v2501_v53, %v2494_v17  ;;  %v2542_v1 = vld [vmem:[#allocation7 + $0x608] sm:$0xff]  ;;  %v2656_v18 = vld [vmem:[#allocation7 + $0x998] sm:$0xff]  ;;  %v2557_v53 = vld [vmem:[#allocation7 + $0x680] sm:$0xff] }
 0x3de   :  { %6457 = vmatprep.subr.bf16.mxu0 %v6456_v2  ;;  %v6472_v2 = vpack.c.bf16 %v2726_v54, %v2719_v63  ;;  %v2550_v17 = vld [vmem:[#allocation7 + $0x648] sm:$0xff]  ;;  %v2775_v63 = vld [vmem:[#allocation7 + $0xd50] sm:$0xff] }
 0x3df   :  { %v2782_v54 = vld [vmem:[#allocation7 + $0xd88] sm:$0xff]  ;;  %v2599_v46 = vld [vmem:[#allocation7 + $0x7d0] sm:$0xff] }
 0x3e0   :  { %6235 = vmatpush1.bf16.msra.mxu1 %v6234_v12  ;;  %v6250_v12 = vpack.c.bf16 %v2500_v8, %v2493_v5  ;;  %v2549_v5 = vld [vmem:[#allocation7 + $0x640] sm:$0xff]  ;;  %v2556_v8 = vld [vmem:[#allocation7 + $0x678] sm:$0xff] }
 0x3e1   :  { %6459 = vmatpush3.bf16.msra.mxu0 %v6458_v15  ;;  %6237 = vmatprep.subr.bf16.mxu1 %v6236_v13  ;;  %v6474_v15 = vpack.c.bf16 %v2614_v7, %v2607_v6  ;;  %v6252_v13 = vpack.c.bf16 %v2515_v9, %v2508_v24  ;;  %v2663_v6 = vld [vmem:[#allocation7 + $0x9d0] sm:$0xff]  ;;  %v2670_v7 = vld [vmem:[#allocation7 + $0xa08] sm:$0xff]  ;;  %v2564_v24 = vld [vmem:[#allocation7 + $0x6b8] sm:$0xff] }
 0x3e2   :  { %6461 = vmatprep.subr.bf16.mxu0 %v6460_v22  ;;  %v6476_v22 = vpack.c.bf16 %v2740_v11, %v2733_v10  ;;  %v2571_v9 = vld [vmem:[#allocation7 + $0x6f0] sm:$0xff]  ;;  %v2789_v10 = vld [vmem:[#allocation7 + $0xdc0] sm:$0xff]  ;;  %v2796_v11 = vld [vmem:[#allocation7 + $0xdf8] sm:$0xff] }
 0x3e4   :  { %6239 = vmatpush1.bf16.msra.mxu1 %v6238_v39  ;;  %v6254_v39 = vpack.c.bf16 %v2514_v19, %v2507_v16  ;;  %v2563_v16 = vld [vmem:[#allocation7 + $0x6b0] sm:$0xff]  ;;  %v2570_v19 = vld [vmem:[#allocation7 + $0x6e8] sm:$0xff] }
 0x3e5   :  { %6463 = vmatpush3.bf16.msra.mxu0 %v6462_v35  ;;  %6241 = vmatprep.subr.bf16.mxu1 %v6240_v41  ;;  %v6478_v35 = vpack.c.bf16 %v2628_v36, %v2621_v21  ;;  %v6256_v41 = vpack.c.bf16 %v2529_v38, %v2522_v23  ;;  %v2677_v21 = vld [vmem:[#allocation7 + $0xa40] sm:$0xff]  ;;  %v2684_v36 = vld [vmem:[#allocation7 + $0xa78] sm:$0xff]  ;;  %v2578_v23 = vld [vmem:[#allocation7 + $0x728] sm:$0xff] }
 0x3e6   :  { %6465 = vmatprep.subr.bf16.mxu0 %v6464_v26  ;;  %v2635_v26 = vld [vmem:[#allocation7 + $0x8f0] sm:$0xff]  ;;  %v2585_v38 = vld [vmem:[#allocation7 + $0x760] sm:$0xff] }
 0x3e8   :  { %4050 = vmatmul.mubr.f32.vlgmr.msra.gmra.mrb[6].mxu0 %v7031_v40  ;;  %6243 = vmatpush1.bf16.msra.mxu1 %v6242_v55  ;;  %v6258_v55 = vpack.c.bf16 %v2528_v47, %v2521_v43  ;;  %v2577_v43 = vld [vmem:[#allocation7 + $0x720] sm:$0xff]  ;;  %v2584_v47 = vld [vmem:[#allocation7 + $0x758] sm:$0xff] }
 0x3e9   :  { %6467 = vmatpush3.bf16.msra.mxu0 %v6466_v60  ;;  %4119 = vmatprep.mubr.f32.mxu0 %v7041_v14  ;;  %v6482_v60 = vpack.c.bf16 %v2642_v51, %v2635_v26  ;;  %v6496_v26 = vpack.c.bf16 %v2922_v28, %v2915_v25  ;;  %v2810_v51 = vld [vmem:[#allocation7 + $0xe68] sm:$0xff] }
 0x3ea   :  { %6245 = vmatprep.subr.bf16.mxu1 %v6244_v20  ;;  %6469 = vmatprep.subr.bf16.mxu0 %v6468_v57  ;;  %v2649_v20 = vld [vmem:[#allocation7 + $0x960] sm:$0xff]  ;;  %v6484_v57 = vpack.c.bf16 %v2768_v4, %v2761_v59  ;;  %v6274_v59 = vpack.c.bf16 %v2584_v47, %v2577_v43  ;;  %v2859_v43 = vld [vmem:[#allocation7 + $0xff0] sm:$0xff] }
 0x3eb   :  { %v2929_v4 = vld [vmem:[#allocation7 + $0x1220] sm:$0xff] }
 0x3ec   :  { %6247 = vmatpush1.bf16.msra.mxu1 %v6246_v56  ;;  %v6262_v56 = vpack.c.bf16 %v2542_v1, %v2535_v58  ;;  %v2598_v58 = vld [vmem:[#allocation7 + $0x7c8] sm:$0xff]  ;;  %v2817_v1 = vld [vmem:[#allocation7 + $0xea0] sm:$0xff] }
 0x3ed   :  { %6471 = vmatpush3.bf16.msra.mxu0 %v6470_v3  ;;  %6249 = vmatprep.subr.bf16.mxu1 %v6248_v62  ;;  %v6486_v3 = vpack.c.bf16 %v2656_v18, %v2649_v20  ;;  %v6264_v62 = vpack.c.bf16 %v2557_v53, %v2550_v17  ;;  %v6276_v20 = vpack.c.bf16 %v2599_v46, %v2592_v44  ;;  %v2606_v18 = vld [vmem:[#allocation7 + $0x808] sm:$0xff]  ;;  %v2613_v17 = vld [vmem:[#allocation7 + $0x840] sm:$0xff]  ;;  %v2992_v46 = vld [vmem:[#allocation7 + $0x1418] sm:$0xff] }
 0x3ee   :  { %6473 = vmatprep.subr.bf16.mxu0 %v6472_v2  ;;  %v6488_v2 = vpack.c.bf16 %v2782_v54, %v2775_v63  ;;  %v2943_v63 = vld [vmem:[#allocation7 + $0x1290] sm:$0xff]  ;;  %v2950_v54 = vld [vmem:[#allocation7 + $0x12c8] sm:$0xff]  ;;  %v2985_v44 = vld [vmem:[#allocation7 + $0x13e0] sm:$0xff] }
 0x3f0   :  { %6251 = vmatpush1.bf16.msra.mxu1 %v6250_v12  ;;  %v6266_v12 = vpack.c.bf16 %v2556_v8, %v2549_v5  ;;  %v2605_v5 = vld [vmem:[#allocation7 + $0x800] sm:$0xff]  ;;  %v2612_v8 = vld [vmem:[#allocation7 + $0x838] sm:$0xff] }
 0x3f1   :  { %6475 = vmatpush3.bf16.msra.mxu0 %v6474_v15  ;;  %6253 = vmatprep.subr.bf16.mxu1 %v6252_v13  ;;  %v6490_v15 = vpack.c.bf16 %v2670_v7, %v2663_v6  ;;  %v6268_v13 = vpack.c.bf16 %v2571_v9, %v2564_v24  ;;  %v2831_v6 = vld [vmem:[#allocation7 + $0xf10] sm:$0xff]  ;;  %v2620_v7 = vld [vmem:[#allocation7 + $0x878] sm:$0xff]  ;;  %v2957_v9 = vld [vmem:[#allocation7 + $0x1300] sm:$0xff] }
 0x3f2   :  { %6477 = vmatprep.subr.bf16.mxu0 %v6476_v22  ;;  %v6492_v22 = vpack.c.bf16 %v2796_v11, %v2789_v10  ;;  %v2627_v24 = vld [vmem:[#allocation7 + $0x8b0] sm:$0xff]  ;;  %v2964_v10 = vld [vmem:[#allocation7 + $0x1338] sm:$0xff]  ;;  %v6282_v11 = vpack.c.bf16 %v2612_v8, %v2605_v5 }
 0x3f3   :  { %v2887_v5 = vld [vmem:[#allocation7 + $0x10d0] sm:$0xff] }
 0x3f4   :  { %6255 = vmatpush1.bf16.msra.mxu1 %v6254_v39  ;;  %v6270_v39 = vpack.c.bf16 %v2570_v19, %v2563_v16  ;;  %v2845_v16 = vld [vmem:[#allocation7 + $0xf80] sm:$0xff]  ;;  %v6508_v19 = vpack.c.bf16 %v2964_v10, %v2957_v9 }
 0x3f5   :  { %6479 = vmatpush3.bf16.msra.mxu0 %v6478_v35  ;;  %6257 = vmatprep.subr.bf16.mxu1 %v6256_v41  ;;  %v6494_v35 = vpack.c.bf16 %v2684_v36, %v2677_v21  ;;  %v6272_v41 = vpack.c.bf16 %v2585_v38, %v2578_v23  ;;  %v2852_v21 = vld [vmem:[#allocation7 + $0xfb8] sm:$0xff]  ;;  %v2641_v36 = vld [vmem:[#allocation7 + $0x920] sm:$0xff]  ;;  %v2971_v23 = vld [vmem:[#allocation7 + $0x1370] sm:$0xff] }
 0x3f6   :  { %6481 = vmatprep.subr.bf16.mxu0 %v6480_v48  ;;  %v2803_v48 = vld [vmem:[#allocation7 + $0xe30] sm:$0xff]  ;;  %v2978_v38 = vld [vmem:[#allocation7 + $0x13a8] sm:$0xff]  ;;  %v6510_v28 = vpack.c.bf16 %v2852_v21, %v2845_v16  ;;  %v2908_v16 = vld [vmem:[#allocation7 + $0x1178] sm:$0xff] }
 0x3f7   :  { %v6512_v47 = vpack.c.bf16 %v2978_v38, %v2971_v23  ;;  %v2697_v21 = vld [vmem:[#allocation7 + $0xae0] sm:$0xff] }
 0x3f8   :  { %6259 = vmatpush1.bf16.msra.mxu1 %v6258_v55  ;;  %v2936_v55 = vld [vmem:[#allocation7 + $0x1258] sm:$0xff]  ;;  %v2689_v38 = vld [vmem:[#allocation7 + $0xaa0] sm:$0xff] }
 0x3f9   :  { %6483 = vmatpush3.bf16.msra.mxu0 %v6482_v60  ;;  %6261 = vmatprep.subr.bf16.mxu1 %v6260_v34  ;;  %v6498_v60 = vpack.c.bf16 %v2810_v51, %v2803_v48  ;;  %v2591_v34 = vld [vmem:[#allocation7 + $0x790] sm:$0xff]  ;;  %v6500_v53 = vpack.c.bf16 %v2936_v55, %v2929_v4  ;;  %v2648_v48 = vld [vmem:[#allocation7 + $0x958] sm:$0xff] }
 0x3fa   :  { %6485 = vmatprep.subr.bf16.mxu0 %v6484_v57  ;;  %v2824_v57 = vld [vmem:[#allocation7 + $0xed8] sm:$0xff]  ;;  %v2655_v51 = vld [vmem:[#allocation7 + $0x990] sm:$0xff] }
 0x3fb   :  { %v6292_v55 = vpack.c.bf16 %v2655_v51, %v2648_v48  ;;  %v2703_v48 = vld [vmem:[#allocation7 + $0xb10] sm:$0xff]  ;;  %v2710_v51 = vld [vmem:[#allocation7 + $0xb48] sm:$0xff] }
 0x3fc   :  { %6263 = vmatpush1.bf16.msra.mxu1 %v6262_v56  ;;  %v6278_v56 = vpack.c.bf16 %v2598_v58, %v2591_v34  ;;  %v2654_v34 = vld [vmem:[#allocation7 + $0x988] sm:$0xff]  ;;  %v2873_v58 = vld [vmem:[#allocation7 + $0x1060] sm:$0xff] }
 0x3fd   :  { %6487 = vmatpush3.bf16.msra.mxu0 %v6486_v3  ;;  %6265 = vmatprep.subr.bf16.mxu1 %v6264_v62  ;;  %v6502_v3 = vpack.c.bf16 %v2824_v57, %v2817_v1  ;;  %v6280_v62 = vpack.c.bf16 %v2613_v17, %v2606_v18  ;;  %v6516_v1 = vpack.c.bf16 %v2992_v46, %v2985_v44  ;;  %v2662_v57 = vld [vmem:[#allocation7 + $0x9c8] sm:$0xff]  ;;  %v2669_v18 = vld [vmem:[#allocation7 + $0xa00] sm:$0xff]  ;;  %v2999_v17 = vld [vmem:[#allocation7 + $0x1450] sm:$0xff] }
 0x3fe   :  { %6489 = vmatprep.subr.bf16.mxu0 %v6488_v2  ;;  %v6504_v2 = vpack.c.bf16 %v2950_v54, %v2943_v63  ;;  %v3041_v44 = vld [vmem:[#allocation7 + $0x15a0] sm:$0xff]  ;;  %v3048_v46 = vld [vmem:[#allocation7 + $0x15d8] sm:$0xff] }
 0x400   :  { %6267 = vmatpush1.bf16.msra.mxu1 %v6266_v12  ;;  %v6284_v12 = vpack.c.bf16 %v2627_v24, %v2620_v7  ;;  %v3013_v7 = vld [vmem:[#allocation7 + $0x14c0] sm:$0xff]  ;;  %v3020_v24 = vld [vmem:[#allocation7 + $0x14f8] sm:$0xff] }
 0x401   :  { %6491 = vmatpush3.bf16.msra.mxu0 %v6490_v15  ;;  %6269 = vmatprep.subr.bf16.mxu1 %v6268_v13  ;;  %v2619_v15 = vld [vmem:[#allocation7 + $0x870] sm:$0xff]  ;;  %v2626_v13 = vld [vmem:[#allocation7 + $0x8a8] sm:$0xff] }
 0x402   :  { %6493 = vmatprep.subr.bf16.mxu0 %v6492_v22  ;;  %v2634_v22 = vld [vmem:[#allocation7 + $0x8e8] sm:$0xff]  ;;  %v6286_v25 = vpack.c.bf16 %v2626_v13, %v2619_v15  ;;  %v2901_v15 = vld [vmem:[#allocation7 + $0x1140] sm:$0xff]  ;;  %v6524_v13 = vpack.c.bf16 %v3020_v24, %v3013_v7 }
 0x403   :  { %v2745_v24 = vld [vmem:[#allocation7 + $0xc60] sm:$0xff] }
 0x404   :  { %6271 = vmatpush1.bf16.msra.mxu1 %v6270_v39  ;;  %v6288_v39 = vpack.c.bf16 %v2641_v36, %v2634_v22  ;;  %v6526_v36 = vpack.c.bf16 %v2908_v16, %v2901_v15 }
 0x405   :  { %6495 = vmatpush3.bf16.msra.mxu0 %v6494_v35  ;;  %6273 = vmatprep.subr.bf16.mxu1 %v6272_v41  ;;  %v2633_v35 = vld [vmem:[#allocation7 + $0x8e0] sm:$0xff]  ;;  %v2640_v41 = vld [vmem:[#allocation7 + $0x918] sm:$0xff] }
 0x406   :  { %6497 = vmatprep.subr.bf16.mxu0 %v6496_v26  ;;  %v2866_v26 = vld [vmem:[#allocation7 + $0x1028] sm:$0xff] }
 0x407   :  { %3766 = vmatmul.mubr.f32.vlgmr.msra.gmra.mrb[12].mxu1 %v7031_v40  ;;  %v2838_v40 = vld [vmem:[#allocation7 + $0xf48] sm:$0xff]  ;;  %v6514_v4 = vpack.c.bf16 %v2866_v26, %v2859_v43 }
 0x408   :  { %4120 = vmatmul.mubr.f32.vlgmr.msra.gmra.mrb[8].mxu0 %v7046_v49  ;;  %6275 = vmatpush1.bf16.msra.mxu1 %v6274_v59  ;;  %v6290_v59 = vpack.c.bf16 %v2640_v41, %v2633_v35  ;;  %v2704_v35 = vld [vmem:[#allocation7 + $0xb18] sm:$0xff]  ;;  %v2711_v41 = vld [vmem:[#allocation7 + $0xb50] sm:$0xff] }
 0x409   :  { %3836 = vmatprep.mubr.f32.mxu1 %v7041_v14  ;;  %6499 = vmatpush3.bf16.msra.mxu0 %v6498_v60  ;;  %v6506_v14 = vpack.c.bf16 %v2838_v40, %v2831_v6  ;;  %v2647_v60 = vld [vmem:[#allocation7 + $0x950] sm:$0xff]  ;;  %v2894_v6 = vld [vmem:[#allocation7 + $0x1108] sm:$0xff]  ;;  %v6308_v26 = vpack.c.bf16 %v2711_v41, %v2704_v35  ;;  %v2773_v35 = vld [vmem:[#allocation7 + $0xd40] sm:$0xff] }
 0x40a   :  { %4189 = vmatprep.mubr.f32.mxu0 %v7049_v61  ;;  %6277 = vmatprep.subr.bf16.mxu1 %v6276_v20  ;;  %v2880_v20 = vld [vmem:[#allocation7 + $0x1098] sm:$0xff]  ;;  %v6294_v63 = vpack.c.bf16 %v2654_v34, %v2647_v60  ;;  %v2683_v40 = vld [vmem:[#allocation7 + $0xa70] sm:$0xff]  ;;  %v6522_v10 = vpack.c.bf16 %v2894_v6, %v2887_v5  ;;  %v6532_v60 = vpack.c.bf16 %v3048_v46, %v3041_v44  ;;  %v2753_v6 = vld [vmem:[#allocation7 + $0xca0] sm:$0xff] }
 0x40b   :  { %6501 = vmatprep.subr.bf16.mxu0 %v6500_v53  ;;  %v3006_v53 = vld [vmem:[#allocation7 + $0x1488] sm:$0xff]  ;;  %v6518_v54 = vpack.c.bf16 %v2880_v20, %v2873_v58  ;;  %v2717_v58 = vld [vmem:[#allocation7 + $0xb80] sm:$0xff]  ;;  %v3055_v20 = vld [vmem:[#allocation7 + $0x1610] sm:$0xff] }
 0x40c   :  { %6279 = vmatpush1.bf16.msra.mxu1 %v6278_v56  ;;  %v6296_v56 = vpack.c.bf16 %v2669_v18, %v2662_v57  ;;  %v6520_v8 = vpack.c.bf16 %v3006_v53, %v2999_v17  ;;  %v3062_v57 = vld [vmem:[#allocation7 + $0x1648] sm:$0xff]  ;;  %v2732_v18 = vld [vmem:[#allocation7 + $0xbf8] sm:$0xff]  ;;  %v2739_v17 = vld [vmem:[#allocation7 + $0xc30] sm:$0xff] }
 0x40d   :  { %6503 = vmatpush3.bf16.msra.mxu0 %v6502_v3  ;;  %6281 = vmatprep.subr.bf16.mxu1 %v6280_v62  ;;  %v2661_v3 = vld [vmem:[#allocation7 + $0x9c0] sm:$0xff]  ;;  %v2668_v62 = vld [vmem:[#allocation7 + $0x9f8] sm:$0xff] }
 0x40e   :  { %6505 = vmatprep.subr.bf16.mxu0 %v6504_v2  ;;  %v2676_v2 = vld [vmem:[#allocation7 + $0xa38] sm:$0xff]  ;;  %v6298_v9 = vpack.c.bf16 %v2668_v62, %v2661_v3  ;;  %v2738_v3 = vld [vmem:[#allocation7 + $0xc28] sm:$0xff]  ;;  %v3069_v62 = vld [vmem:[#allocation7 + $0x1680] sm:$0xff] }
 0x40f   :  { %v3076_v5 = vld [vmem:[#allocation7 + $0x16b8] sm:$0xff] }
 0x410   :  { %6283 = vmatpush1.bf16.msra.mxu1 %v6282_v11  ;;  %v6300_v11 = vpack.c.bf16 %v2683_v40, %v2676_v2  ;;  %v6538_v40 = vpack.c.bf16 %v3076_v5, %v3069_v62  ;;  %v2780_v41 = vld [vmem:[#allocation7 + $0xd78] sm:$0xff]  ;;  %v2822_v62 = vld [vmem:[#allocation7 + $0xec8] sm:$0xff] }
 0x411   :  { %6507 = vmatpush3.bf16.msra.mxu0 %v6506_v14  ;;  %6285 = vmatprep.subr.bf16.mxu1 %v6284_v12  ;;  %v2675_v14 = vld [vmem:[#allocation7 + $0xa30] sm:$0xff]  ;;  %v2682_v12 = vld [vmem:[#allocation7 + $0xa68] sm:$0xff] }
 0x412   :  { %6509 = vmatprep.subr.bf16.mxu0 %v6508_v19  ;;  %v2690_v19 = vld [vmem:[#allocation7 + $0xaa8] sm:$0xff]  ;;  %v6302_v22 = vpack.c.bf16 %v2682_v12, %v2675_v14  ;;  %v2760_v14 = vld [vmem:[#allocation7 + $0xcd8] sm:$0xff]  ;;  %v2767_v12 = vld [vmem:[#allocation7 + $0xd10] sm:$0xff] }
 0x413   :  { %v6304_v23 = vpack.c.bf16 %v2697_v21, %v2690_v19  ;;  %v6324_v16 = vpack.c.bf16 %v2767_v12, %v2760_v14  ;;  %v2759_v19 = vld [vmem:[#allocation7 + $0xcd0] sm:$0xff]  ;;  %v2766_v21 = vld [vmem:[#allocation7 + $0xd08] sm:$0xff] }
 0x414   :  { %6287 = vmatpush1.bf16.msra.mxu1 %v6286_v25  ;;  %v2696_v25 = vld [vmem:[#allocation7 + $0xad8] sm:$0xff]  ;;  %v2830_v5 = vld [vmem:[#allocation7 + $0xf08] sm:$0xff] }
 0x415   :  { %6511 = vmatpush3.bf16.msra.mxu0 %v6510_v28  ;;  %6289 = vmatprep.subr.bf16.mxu1 %v6288_v39  ;;  %v3027_v28 = vld [vmem:[#allocation7 + $0x1530] sm:$0xff]  ;;  %v3034_v39 = vld [vmem:[#allocation7 + $0x1568] sm:$0xff]  ;;  %v6306_v43 = vpack.c.bf16 %v2696_v25, %v2689_v38  ;;  %v2781_v38 = vld [vmem:[#allocation7 + $0xd80] sm:$0xff]  ;;  %v6326_v25 = vpack.c.bf16 %v2766_v21, %v2759_v19 }
 0x416   :  { %6513 = vmatprep.subr.bf16.mxu0 %v6512_v47  ;;  %v6529_v47 = vpack.c.bf16 %v3034_v39, %v3027_v28  ;;  %v2850_v14 = vld [vmem:[#allocation7 + $0xfa8] sm:$0xff]  ;;  %v2872_v19 = vld [vmem:[#allocation7 + $0x1058] sm:$0xff]  ;;  %v2879_v21 = vld [vmem:[#allocation7 + $0x1090] sm:$0xff] }
 0x417   :  { %v2858_v12 = vld [vmem:[#allocation7 + $0xfe8] sm:$0xff] }
 0x418   :  { %6291 = vmatpush1.bf16.msra.mxu1 %v6290_v59  ;;  %v2718_v59 = vld [vmem:[#allocation7 + $0xb88] sm:$0xff] }
 0x419   :  { %6515 = vmatpush3.bf16.msra.mxu0 %v6514_v4  ;;  %6293 = vmatprep.subr.bf16.mxu1 %v6292_v55  ;;  %v2725_v4 = vld [vmem:[#allocation7 + $0xbc0] sm:$0xff]  ;;  %v6310_v55 = vpack.c.bf16 %v2710_v51, %v2703_v48  ;;  %v2795_v48 = vld [vmem:[#allocation7 + $0xdf0] sm:$0xff]  ;;  %v6330_v51 = vpack.c.bf16 %v2780_v41, %v2773_v35 }
 0x41a   :  { %6517 = vmatprep.subr.bf16.mxu0 %v6516_v1  ;;  %v6312_v34 = vpack.c.bf16 %v2725_v4, %v2718_v59  ;;  %v2724_v1 = vld [vmem:[#allocation7 + $0xbb8] sm:$0xff]  ;;  %v2787_v59 = vld [vmem:[#allocation7 + $0xdb0] sm:$0xff]  ;;  %v2794_v4 = vld [vmem:[#allocation7 + $0xde8] sm:$0xff] }
 0x41b   :  { %v6314_v53 = vpack.c.bf16 %v2724_v1, %v2717_v58  ;;  %v2809_v58 = vld [vmem:[#allocation7 + $0xe60] sm:$0xff]  ;;  %v6334_v1 = vpack.c.bf16 %v2794_v4, %v2787_v59  ;;  %v2914_v59 = vld [vmem:[#allocation7 + $0x11a8] sm:$0xff] }
 0x41c   :  { %6295 = vmatpush1.bf16.msra.mxu1 %v6294_v63  ;;  %v6535_v63 = vpack.c.bf16 %v3062_v57, %v3055_v20  ;;  %v2885_v41 = vld [vmem:[#allocation7 + $0x10c0] sm:$0xff] }
 0x41d   :  { %6519 = vmatpush3.bf16.msra.mxu0 %v6518_v54  ;;  %6297 = vmatprep.subr.bf16.mxu1 %v6296_v56  ;;  %v6316_v54 = vpack.c.bf16 %v2739_v17, %v2732_v18  ;;  %v2731_v56 = vld [vmem:[#allocation7 + $0xbf0] sm:$0xff]  ;;  %v2801_v18 = vld [vmem:[#allocation7 + $0xe20] sm:$0xff]  ;;  %v2808_v17 = vld [vmem:[#allocation7 + $0xe58] sm:$0xff] }
 0x41e   :  { %6521 = vmatprep.subr.bf16.mxu0 %v6520_v8  ;;  %v2746_v8 = vld [vmem:[#allocation7 + $0xc68] sm:$0xff]  ;;  %v6318_v2 = vpack.c.bf16 %v2738_v3, %v2731_v56  ;;  %v2815_v3 = vld [vmem:[#allocation7 + $0xe90] sm:$0xff]  ;;  %v2921_v4 = vld [vmem:[#allocation7 + $0x11e0] sm:$0xff] }
 0x41f   :  { %v6320_v7 = vpack.c.bf16 %v2753_v6, %v2746_v8  ;;  %v2837_v8 = vld [vmem:[#allocation7 + $0xf40] sm:$0xff]  ;;  %v6342_v6 = vpack.c.bf16 %v2822_v62, %v2815_v3 }
 0x420   :  { %6299 = vmatpush1.bf16.msra.mxu1 %v6298_v9  ;;  %v2752_v9 = vld [vmem:[#allocation7 + $0xc98] sm:$0xff]  ;;  %v2941_v62 = vld [vmem:[#allocation7 + $0x1280] sm:$0xff] }
 0x421   :  { %6523 = vmatpush3.bf16.msra.mxu0 %v6522_v10  ;;  %6301 = vmatprep.subr.bf16.mxu1 %v6300_v11  ;;  %v3083_v10 = vld [vmem:[#allocation7 + $0x16f0] sm:$0xff]  ;;  %v3090_v11 = vld [vmem:[#allocation7 + $0x1728] sm:$0xff]  ;;  %v6322_v15 = vpack.c.bf16 %v2752_v9, %v2745_v24 }
 0x422   :  { %6525 = vmatprep.subr.bf16.mxu0 %v6524_v13  ;;  %v6541_v13 = vpack.c.bf16 %v3090_v11, %v3083_v10  ;;  %v2851_v24 = vld [vmem:[#allocation7 + $0xfb0] sm:$0xff] }
 0x423   :  { %v2843_v11 = vld [vmem:[#allocation7 + $0xf70] sm:$0xff] }
 0x424   :  { %6303 = vmatpush1.bf16.msra.mxu1 %v6302_v22  ;;  %v3097_v22 = vld [vmem:[#allocation7 + $0x1760] sm:$0xff] }
 0x425   :  { %6527 = vmatpush3.bf16.msra.mxu0 %v6526_v36  ;;  %6305 = vmatprep.subr.bf16.mxu1 %v6304_v23  ;;  %v3104_v36 = vld [vmem:[#allocation7 + $0x1798] sm:$0xff]  ;;  %v2774_v23 = vld [vmem:[#allocation7 + $0xd48] sm:$0xff] }
 0x426   :  { %6528 = vmatprep.subr.bf16.mxu0 %v6766_v50  ;;  %v6544_v28 = vpack.c.bf16 %v3104_v36, %v3097_v22  ;;  %v6328_v39 = vpack.c.bf16 %v2781_v38, %v2774_v23  ;;  %v6356_v36 = vpack.c.bf16 %v2879_v21, %v2872_v19  ;;  %v2871_v23 = vld [vmem:[#allocation7 + $0x1050] sm:$0xff]  ;;  %v2878_v38 = vld [vmem:[#allocation7 + $0x1088] sm:$0xff] }
 0x427   :  { %v2990_v19 = vld [vmem:[#allocation7 + $0x1408] sm:$0xff] }
 0x428   :  { %4190 = vmatmul.mubr.f32.vlgmr.msra.gmra.mrb[10].mxu0 %v7056_v0  ;;  %6307 = vmatpush1.bf16.msra.mxu1 %v6306_v43  ;;  %v3111_v43 = vld [vmem:[#allocation7 + $0x17d0] sm:$0xff]  ;;  %v2998_v21 = vld [vmem:[#allocation7 + $0x1448] sm:$0xff] }
 0x429   :  { %6530 = vmatpush3.bf16.msra.mxu0 %v6529_v47  ;;  %6309 = vmatprep.subr.bf16.mxu1 %v6308_v26  ;;  %v3118_v47 = vld [vmem:[#allocation7 + $0x1808] sm:$0xff]  ;;  %v2788_v26 = vld [vmem:[#allocation7 + $0xdb8] sm:$0xff] }
 0x42a   :  { %6531 = vmatprep.subr.bf16.mxu0 %v6766_v50  ;;  %4965 = vmatprep.mubr.msk.f32.mxu0 %vm6767_vm0, %v6765_v42  ;;  %v6547_v44 = vpack.c.bf16 %v3118_v47, %v3111_v43  ;;  %v6332_v46 = vpack.c.bf16 %v2795_v48, %v2788_v26  ;;  %v2892_v43 = vld [vmem:[#allocation7 + $0x10f8] sm:$0xff]  ;;  %v2907_v26 = vld [vmem:[#allocation7 + $0x1170] sm:$0xff] }
 0x42b   :  { %v2900_v47 = vld [vmem:[#allocation7 + $0x1138] sm:$0xff]  ;;  %v6362_v48 = vpack.c.bf16 %v2892_v43, %v2885_v41  ;;  %v3011_v43 = vld [vmem:[#allocation7 + $0x14b0] sm:$0xff] }
 0x42c   :  { %6311 = vmatpush1.bf16.msra.mxu1 %v6310_v55  ;;  %v3125_v55 = vld [vmem:[#allocation7 + $0x1840] sm:$0xff] }
 0x42d   :  { %6533 = vmatpush3.bf16.msra.mxu0 %v6532_v60  ;;  %6313 = vmatprep.subr.bf16.mxu1 %v6312_v34  ;;  %v3132_v60 = vld [vmem:[#allocation7 + $0x1878] sm:$0xff]  ;;  %v2802_v34 = vld [vmem:[#allocation7 + $0xe28] sm:$0xff] }
 0x42e   :  { %6534 = vmatprep.subr.bf16.mxu0 %v6766_v50  ;;  %v6550_v20 = vpack.c.bf16 %v3132_v60, %v3125_v55  ;;  %v6336_v57 = vpack.c.bf16 %v2809_v58, %v2802_v34  ;;  %v6368_v60 = vpack.c.bf16 %v2921_v4, %v2914_v59  ;;  %v2913_v34 = vld [vmem:[#allocation7 + $0x11a0] sm:$0xff]  ;;  %v2920_v58 = vld [vmem:[#allocation7 + $0x11d8] sm:$0xff] }
 0x42f   :  { %v3032_v59 = vld [vmem:[#allocation7 + $0x1558] sm:$0xff] }
 0x430   :  { %6315 = vmatpush1.bf16.msra.mxu1 %v6314_v53  ;;  %v2816_v53 = vld [vmem:[#allocation7 + $0xe98] sm:$0xff] }
 0x431   :  { %6536 = vmatpush3.bf16.msra.mxu0 %v6535_v63  ;;  %6317 = vmatprep.subr.bf16.mxu1 %v6316_v54  ;;  %v2823_v63 = vld [vmem:[#allocation7 + $0xed0] sm:$0xff]  ;;  %v6338_v54 = vpack.c.bf16 %v2808_v17, %v2801_v18  ;;  %v3040_v4 = vld [vmem:[#allocation7 + $0x1598] sm:$0xff] }
 0x432   :  { %6537 = vmatprep.subr.bf16.mxu0 %v6766_v50  ;;  %v6340_v56 = vpack.c.bf16 %v2823_v63, %v2816_v53  ;;  %v2927_v17 = vld [vmem:[#allocation7 + $0x1210] sm:$0xff]  ;;  %v2934_v53 = vld [vmem:[#allocation7 + $0x1248] sm:$0xff] }
 0x433   :  { %v2942_v63 = vld [vmem:[#allocation7 + $0x1288] sm:$0xff] }
 0x434   :  { %6319 = vmatpush1.bf16.msra.mxu1 %v6318_v2  ;;  %v2829_v2 = vld [vmem:[#allocation7 + $0xf00] sm:$0xff] }
 0x435   :  { %6539 = vmatpush3.bf16.msra.mxu0 %v6538_v40  ;;  %6321 = vmatprep.subr.bf16.mxu1 %v6320_v7  ;;  %v2836_v40 = vld [vmem:[#allocation7 + $0xf38] sm:$0xff] }
 0x436   :  { %6540 = vmatprep.subr.bf16.mxu0 %v6766_v50  ;;  %v2844_v7 = vld [vmem:[#allocation7 + $0xf78] sm:$0xff]  ;;  %v6346_v9 = vpack.c.bf16 %v2836_v40, %v2829_v2  ;;  %v2955_v40 = vld [vmem:[#allocation7 + $0x12f0] sm:$0xff] }
 0x437   :  { %v6348_v10 = vpack.c.bf16 %v2851_v24, %v2844_v7  ;;  %v2962_v7 = vld [vmem:[#allocation7 + $0x1328] sm:$0xff] }
 0x438   :  { %6323 = vmatpush1.bf16.msra.mxu1 %v6322_v15  ;;  %v6350_v15 = vpack.c.bf16 %v2850_v14, %v2843_v11  ;;  %v2970_v24 = vld [vmem:[#allocation7 + $0x1368] sm:$0xff]  ;;  %v2969_v14 = vld [vmem:[#allocation7 + $0x1360] sm:$0xff] }
 0x439   :  { %6542 = vmatpush3.bf16.msra.mxu0 %v6541_v13  ;;  %6325 = vmatprep.subr.bf16.mxu1 %v6324_v16  ;;  %v2857_v16 = vld [vmem:[#allocation7 + $0xfe0] sm:$0xff] }
 0x43a   :  { %6543 = vmatprep.subr.bf16.mxu0 %v6766_v50 }
 0x43c   :  { %6327 = vmatpush1.bf16.msra.mxu1 %v6326_v25  ;;  %v2886_v25 = vld [vmem:[#allocation7 + $0x10c8] sm:$0xff] }
 0x43d   :  { %6545 = vmatpush3.bf16.msra.mxu0 %v6544_v28  ;;  %6329 = vmatprep.subr.bf16.mxu1 %v6328_v39  ;;  %v2893_v28 = vld [vmem:[#allocation7 + $0x1100] sm:$0xff]  ;;  %v6358_v39 = vpack.c.bf16 %v2878_v38, %v2871_v23 }
 0x43e   :  { %6546 = vmatprep.subr.bf16.mxu0 %v6766_v50  ;;  %v6360_v35 = vpack.c.bf16 %v2893_v28, %v2886_v25  ;;  %v2997_v38 = vld [vmem:[#allocation7 + $0x1440] sm:$0xff]  ;;  %v3004_v25 = vld [vmem:[#allocation7 + $0x1478] sm:$0xff] }
 0x43f   :  { %v3012_v28 = vld [vmem:[#allocation7 + $0x14b8] sm:$0xff] }
 0x440   :  { %6331 = vmatpush1.bf16.msra.mxu1 %v6330_v51  ;;  %v6364_v51 = vpack.c.bf16 %v2907_v26, %v2900_v47  ;;  %v3018_v47 = vld [vmem:[#allocation7 + $0x14e8] sm:$0xff] }
 0x441   :  { %6548 = vmatpush3.bf16.msra.mxu0 %v6547_v44  ;;  %6333 = vmatprep.subr.bf16.mxu1 %v6332_v46  ;;  %v2899_v44 = vld [vmem:[#allocation7 + $0x1130] sm:$0xff]  ;;  %v2906_v46 = vld [vmem:[#allocation7 + $0x1168] sm:$0xff] }
 0x442   :  { %6549 = vmatprep.subr.bf16.mxu0 %v6766_v50  ;;  %v6344_v50 = vpack.c.bf16 %v2837_v8, %v2830_v5  ;;  %v6366_v55 = vpack.c.bf16 %v2906_v46, %v2899_v44  ;;  %v2948_v5 = vld [vmem:[#allocation7 + $0x12b8] sm:$0xff]  ;;  %v3026_v26 = vld [vmem:[#allocation7 + $0x1528] sm:$0xff]  ;;  %v3025_v46 = vld [vmem:[#allocation7 + $0x1520] sm:$0xff] }
 0x443   :  { %v2956_v8 = vld [vmem:[#allocation7 + $0x12f8] sm:$0xff] }
 0x444   :  { %6335 = vmatpush1.bf16.msra.mxu1 %v6334_v1  ;;  %v2928_v1 = vld [vmem:[#allocation7 + $0x1218] sm:$0xff] }
 0x445   :  { %6551 = vmatpush3.bf16.msra.mxu0 %v6550_v20  ;;  %6337 = vmatprep.subr.bf16.mxu1 %v6336_v57  ;;  %v2935_v20 = vld [vmem:[#allocation7 + $0x1250] sm:$0xff]  ;;  %v6370_v57 = vpack.c.bf16 %v2920_v58, %v2913_v34 }
 0x446   :  { %v6372_v18 = vpack.c.bf16 %v2935_v20, %v2928_v1  ;;  %v3039_v58 = vld [vmem:[#allocation7 + $0x1590] sm:$0xff]  ;;  %v3046_v1 = vld [vmem:[#allocation7 + $0x15c8] sm:$0xff] }
 0x447   :  { %3837 = vmatmul.mubr.f32.vlgmr.msra.gmra.mrb[12].mxu1 %v7046_v49  ;;  %v2865_v49 = vld [vmem:[#allocation7 + $0x1020] sm:$0xff]  ;;  %v3054_v20 = vld [vmem:[#allocation7 + $0x1608] sm:$0xff] }
 0x448   :  { %4966 = vmatmul.mubr.f32.vlgmr.msra.gmra.mrb[12].mxu0 %v7063_v52  ;;  %6339 = vmatpush1.bf16.msra.mxu1 %v6338_v54  ;;  %v6352_v13 = vpack.c.bf16 %v2865_v49, %v2858_v12  ;;  %v2949_v54 = vld [vmem:[#allocation7 + $0x12c0] sm:$0xff]  ;;  %v2976_v12 = vld [vmem:[#allocation7 + $0x1398] sm:$0xff] }
 0x449   :  { %3907 = vmatprep.mubr.f32.mxu1 %v7049_v61  ;;  %6341 = vmatprep.subr.bf16.mxu1 %v6340_v56  ;;  %v2864_v61 = vld [vmem:[#allocation7 + $0x1018] sm:$0xff]  ;;  %v6374_v56 = vpack.c.bf16 %v2934_v53, %v2927_v17  ;;  %v6376_v3 = vpack.c.bf16 %v2949_v54, %v2942_v63  ;;  %v3053_v53 = vld [vmem:[#allocation7 + $0x1600] sm:$0xff] }
 0x44a   :  { %v6354_v22 = vpack.c.bf16 %v2864_v61, %v2857_v16  ;;  %v2984_v49 = vld [vmem:[#allocation7 + $0x13d8] sm:$0xff]  ;;  %v2983_v61 = vld [vmem:[#allocation7 + $0x13d0] sm:$0xff] }
 0x44b   :  { %v3060_v63 = vld [vmem:[#allocation7 + $0x1638] sm:$0xff] }
 0x44c   :  { %6343 = vmatpush1.bf16.msra.mxu1 %v6342_v6  ;;  %v2963_v6 = vld [vmem:[#allocation7 + $0x1330] sm:$0xff]  ;;  %v3068_v54 = vld [vmem:[#allocation7 + $0x1678] sm:$0xff] }
 0x44d   :  { %6345 = vmatprep.subr.bf16.mxu1 %v6344_v50  ;;  %v6378_v50 = vpack.c.bf16 %v2948_v5, %v2941_v62  ;;  %v6380_v2 = vpack.c.bf16 %v2963_v6, %v2956_v8  ;;  %v3067_v5 = vld [vmem:[#allocation7 + $0x1670] sm:$0xff]  ;;  %v3074_v8 = vld [vmem:[#allocation7 + $0x16a8] sm:$0xff] }
 0x44e   :  { %v3082_v6 = vld [vmem:[#allocation7 + $0x16e8] sm:$0xff] }
 0x450   :  { %6347 = vmatpush1.bf16.msra.mxu1 %v6346_v9  ;;  %v2977_v9 = vld [vmem:[#allocation7 + $0x13a0] sm:$0xff] }
 0x451   :  { %6349 = vmatprep.subr.bf16.mxu1 %v6348_v10  ;;  %v6382_v10 = vpack.c.bf16 %v2962_v7, %v2955_v40  ;;  %v6384_v11 = vpack.c.bf16 %v2977_v9, %v2970_v24  ;;  %v3081_v40 = vld [vmem:[#allocation7 + $0x16e0] sm:$0xff]  ;;  %v3096_v7 = vld [vmem:[#allocation7 + $0x1758] sm:$0xff]  ;;  %v3103_v24 = vld [vmem:[#allocation7 + $0x1790] sm:$0xff] }
 0x454   :  { %6351 = vmatpush1.bf16.msra.mxu1 %v6350_v15  ;;  %v2991_v15 = vld [vmem:[#allocation7 + $0x1410] sm:$0xff] }
 0x455   :  { %6353 = vmatprep.subr.bf16.mxu1 %v6352_v13  ;;  %v6386_v13 = vpack.c.bf16 %v2976_v12, %v2969_v14  ;;  %v6388_v16 = vpack.c.bf16 %v2991_v15, %v2984_v49  ;;  %v3102_v14 = vld [vmem:[#allocation7 + $0x1788] sm:$0xff]  ;;  %v3117_v49 = vld [vmem:[#allocation7 + $0x1800] sm:$0xff] }
 0x456   :  { %v3110_v12 = vld [vmem:[#allocation7 + $0x17c8] sm:$0xff]  ;;  %v3109_v15 = vld [vmem:[#allocation7 + $0x17c0] sm:$0xff] }
 0x458   :  { %6355 = vmatpush1.bf16.msra.mxu1 %v6354_v22  ;;  %v3005_v22 = vld [vmem:[#allocation7 + $0x1480] sm:$0xff] }
 0x459   :  { %6357 = vmatprep.subr.bf16.mxu1 %v6356_v36  ;;  %v6390_v36 = vpack.c.bf16 %v2990_v19, %v2983_v61  ;;  %v6392_v23 = vpack.c.bf16 %v3005_v22, %v2998_v21  ;;  %v3131_v19 = vld [vmem:[#allocation7 + $0x1870] sm:$0xff]  ;;  %v3130_v22 = vld [vmem:[#allocation7 + $0x1868] sm:$0xff] }
 0x45a   :  { %v3123_v21 = vld [vmem:[#allocation7 + $0x1830] sm:$0xff] }
 0x45c   :  { %6359 = vmatpush1.bf16.msra.mxu1 %v6358_v39  ;;  %v3019_v39 = vld [vmem:[#allocation7 + $0x14f0] sm:$0xff] }
 0x45d   :  { %6361 = vmatprep.subr.bf16.mxu1 %v6360_v35  ;;  %v6394_v35 = vpack.c.bf16 %v3004_v25, %v2997_v38  ;;  %v6396_v41 = vpack.c.bf16 %v3019_v39, %v3012_v28 }
 0x460   :  { %6363 = vmatpush1.bf16.msra.mxu1 %v6362_v48  ;;  %v3033_v48 = vld [vmem:[#allocation7 + $0x1560] sm:$0xff] }
 0x461   :  { %6365 = vmatprep.subr.bf16.mxu1 %v6364_v51  ;;  %v6398_v51 = vpack.c.bf16 %v3018_v47, %v3011_v43  ;;  %v6400_v44 = vpack.c.bf16 %v3033_v48, %v3026_v26  ;;  %v6430_v43 = vpack.c.bf16 %v3130_v22, %v3123_v21 }
 0x464   :  { %6367 = vmatpush1.bf16.msra.mxu1 %v6366_v55  ;;  %v3047_v55 = vld [vmem:[#allocation7 + $0x15d0] sm:$0xff] }
 0x465   :  { %6369 = vmatprep.subr.bf16.mxu1 %v6368_v60  ;;  %v6402_v60 = vpack.c.bf16 %v3032_v59, %v3025_v46  ;;  %v6404_v34 = vpack.c.bf16 %v3047_v55, %v3040_v4 }
 0x468   :  { %6371 = vmatpush1.bf16.msra.mxu1 %v6370_v57  ;;  %v3061_v57 = vld [vmem:[#allocation7 + $0x1640] sm:$0xff] }
 0x469   :  { %6373 = vmatprep.subr.bf16.mxu1 %v6372_v18  ;;  %v6406_v18 = vpack.c.bf16 %v3046_v1, %v3039_v58  ;;  %v6408_v17 = vpack.c.bf16 %v3061_v57, %v3054_v20 }
 0x46c   :  { %6375 = vmatpush1.bf16.msra.mxu1 %v6374_v56  ;;  %v3075_v56 = vld [vmem:[#allocation7 + $0x16b0] sm:$0xff] }
 0x46d   :  { %6377 = vmatprep.subr.bf16.mxu1 %v6376_v3  ;;  %v6410_v3 = vpack.c.bf16 %v3060_v63, %v3053_v53  ;;  %v6412_v62 = vpack.c.bf16 %v3075_v56, %v3068_v54 }
 0x470   :  { %6379 = vmatpush1.bf16.msra.mxu1 %v6378_v50  ;;  %v3089_v50 = vld [vmem:[#allocation7 + $0x1720] sm:$0xff] }
 0x471   :  { %6381 = vmatprep.subr.bf16.mxu1 %v6380_v2  ;;  %v6416_v2 = vpack.c.bf16 %v3089_v50, %v3082_v6 }
 0x474   :  { %6383 = vmatpush1.bf16.msra.mxu1 %v6382_v10  ;;  %v6420_v10 = vpack.c.bf16 %v3103_v24, %v3096_v7 }
 0x475   :  { %6385 = vmatprep.subr.bf16.mxu1 %v6384_v11  ;;  %v3095_v11 = vld [vmem:[#allocation7 + $0x1750] sm:$0xff] }
 0x476   :  { %v6422_v61 = vpack.c.bf16 %v3102_v14, %v3095_v11 }
 0x478   :  { %6387 = vmatpush1.bf16.msra.mxu1 %v6386_v13  ;;  %v3116_v13 = vld [vmem:[#allocation7 + $0x17f8] sm:$0xff] }
 0x479   :  { %6389 = vmatprep.subr.bf16.mxu1 %v6388_v16  ;;  %v3124_v16 = vld [vmem:[#allocation7 + $0x1838] sm:$0xff]  ;;  %v6426_v38 = vpack.c.bf16 %v3116_v13, %v3109_v15 }
 0x47c   :  { %6391 = vmatpush1.bf16.msra.mxu1 %v6390_v36  ;;  %v6424_v36 = vpack.c.bf16 %v3117_v49, %v3110_v12 }
 0x47d   :  { %6393 = vmatprep.subr.bf16.mxu1 %v6392_v23 }
 0x480   :  { %6395 = vmatpush1.bf16.msra.mxu1 %v6394_v35 }
 0x481   :  { %6397 = vmatprep.subr.bf16.mxu1 %v6396_v41  ;;  %v6428_v41 = vpack.c.bf16 %v3131_v19, %v3124_v16 }
 0x484   :  { %6399 = vmatpush1.bf16.msra.mxu1 %v6398_v51 }
 0x485   :  { %6401 = vmatprep.subr.bf16.mxu1 %v6400_v44 }
 0x487   :  { %3908 = vmatmul.mubr.f32.vlgmr.msra.gmra.mrb[12].mxu1 %v7056_v0  ;;  %v6414_v0 = vpack.c.bf16 %v3074_v8, %v3067_v5 }
 0x488   :  { %6403 = vmatpush1.bf16.msra.mxu1 %v6402_v60  ;;  %3978 = vmatprep.mubr.f32.mxu1 %v6765_v42  ;;  %v3088_v42 = vld [vmem:[#allocation7 + $0x1718] sm:$0xff] }
 0x489   :  { %6405 = vmatprep.subr.bf16.mxu1 %v6404_v34  ;;  %v6418_v9 = vpack.c.bf16 %v3088_v42, %v3081_v40 }
 0x48c   :  { %6407 = vmatpush1.bf16.msra.mxu1 %v6406_v18 }
 0x48d   :  { %6409 = vmatprep.subr.bf16.mxu1 %v6408_v17 }
 0x490   :  { %6411 = vmatpush1.bf16.msra.mxu1 %v6410_v3 }
 0x491   :  { %6413 = vmatprep.subr.bf16.mxu1 %v6412_v62 }
 0x494   :  { %6415 = vmatpush1.bf16.msra.mxu1 %v6414_v0 }
 0x495   :  { %6417 = vmatprep.subr.bf16.mxu1 %v6416_v2 }
 0x498   :  { %6419 = vmatpush1.bf16.msra.mxu1 %v6418_v9 }
 0x499   :  { %6421 = vmatprep.subr.bf16.mxu1 %v6420_v10 }
 0x49a   :  { %v7091_v23 = vpop.f32.mrb[10].mxu1 }
 0x49b   :  { %v4265_v25 = vrot.slane %v7091_v23, 4  ;;  %v4314_v28 = vmul.f32 %v7091_v23, %v7091_v23  ;;  %v7096_v39 = vpop.f32.mrb[4].mxu0  ;;  %v7098_v35 = vpop.f32.mrb[11].mxu1 }
 0x49c   :  { %v4277_v47 = vrot.slane %v7096_v39, 4  ;;  %v4316_v26 = vmul.f32 %v7096_v39, %v7096_v39  ;;  %v4271_v48 = vrot.slane %v7098_v35, 4  ;;  %v4315_v51 = vmul.f32 %v7098_v35, %v7098_v35  ;;  %v7106_v44 = vpop.f32.mrb[5].mxu0  ;;  %6423 = vmatpush1.bf16.msra.mxu1 %v6422_v61 }
 0x49d   :  { %v4266_v46 = vadd.f32 %v4265_v25, %v7091_v23  ;;  %v4321_v59 = vrot.slane %v4314_v28, 4  ;;  %v4283_v4 = vrot.slane %v7106_v44, 4  ;;  %v4317_v55 = vmul.f32 %v7106_v44, %v7106_v44  ;;  %6425 = vmatprep.subr.bf16.mxu1 %v6424_v36 }
 0x49e   :  { %v4278_v60 = vadd.f32 %v4277_v47, %v7096_v39  ;;  %v4333_v34 = vrot.slane %v4316_v26, 4  ;;  %v4272_v58 = vadd.f32 %v4271_v48, %v7098_v35  ;;  %v4327_v1 = vrot.slane %v4315_v51, 4 }
 0x49f   :  { %v4267_v20 = vrot.slane %v4266_v46, 2  ;;  %v4322_v57 = vadd.f32 %v4321_v59, %v4314_v28  ;;  %v4284_v18 = vadd.f32 %v4283_v4, %v7106_v44  ;;  %v4339_v17 = vrot.slane %v4317_v55, 4 }
 0x4a0   :  { %v4279_v53 = vrot.slane %v4278_v60, 2  ;;  %v4334_v63 = vadd.f32 %v4333_v34, %v4316_v26  ;;  %v4273_v54 = vrot.slane %v4272_v58, 2  ;;  %v4328_v56 = vadd.f32 %v4327_v1, %v4315_v51  ;;  %6427 = vmatpush1.bf16.msra.mxu1 %v6426_v38 }
 0x4a1   :  { %v4268_v3 = vadd.f32 %v4267_v20, %v4266_v46  ;;  %v4323_v62 = vrot.slane %v4322_v57, 2  ;;  %v4285_v5 = vrot.slane %v4284_v18, 2  ;;  %v4340_v8 = vadd.f32 %v4339_v17, %v4317_v55  ;;  %6429 = vmatprep.subr.bf16.mxu1 %v6428_v41 }
 0x4a2   :  { %v4280_v6 = vadd.f32 %v4279_v53, %v4278_v60  ;;  %v4335_v50 = vrot.slane %v4334_v63, 2  ;;  %v4274_v0 = vadd.f32 %v4273_v54, %v4272_v58  ;;  %v4329_v2 = vrot.slane %v4328_v56, 2 }
 0x4a3   :  { %v4269_v40 = vrot.slane %v4268_v3, 1  ;;  %v4324_v42 = vadd.f32 %v4323_v62, %v4322_v57  ;;  %v4286_v7 = vadd.f32 %v4285_v5, %v4284_v18  ;;  %v4341_v24 = vrot.slane %v4340_v8, 2 }
 0x4a4   :  { %v4281_v9 = vrot.slane %v4280_v6, 1  ;;  %v4336_v10 = vadd.f32 %v4335_v50, %v4334_v63  ;;  %v4275_v11 = vrot.slane %v4274_v0, 1  ;;  %v4330_v14 = vadd.f32 %v4329_v2, %v4328_v56  ;;  %6431 = vmatpush1.bf16.msra.mxu1 %v6430_v43 }
 0x4a5   :  { %v4270_v12 = vadd.f32 %v4269_v40, %v4268_v3  ;;  %v4325_v49 = vrot.slane %v4324_v42, 1  ;;  %v4287_v15 = vrot.slane %v4286_v7, 1  ;;  %v4342_v13 = vadd.f32 %v4341_v24, %v4340_v8 }
 0x4a6   :  { %v4282_v16 = vadd.f32 %v4281_v9, %v4280_v6  ;;  %v4337_v61 = vrot.slane %v4336_v10, 1  ;;  %v4276_v19 = vadd.f32 %v4275_v11, %v4274_v0  ;;  %v4331_v21 = vrot.slane %v4330_v14, 1 }
 0x4a7   :  { %v7115_v22 = vmul.f32 0.125, %v4270_v12  ;;  %v4326_v36 = vadd.f32 %v4325_v49, %v4324_v42  ;;  %v4288_v38 = vadd.f32 %v4287_v15, %v4286_v7  ;;  %v4343_v25 = vrot.slane %v4342_v13, 1  ;;  %3979 = vmatmul.mubr.f32.vlgmr.msra.gmra.mrb[12].mxu1 %v7063_v52 }
 0x4a8   :  { %v7118_v28 = vmul.f32 0.125, %v4282_v16  ;;  %v4338_v41 = vadd.f32 %v4337_v61, %v4336_v10  ;;  %v7120_v47 = vmul.f32 0.125, %v4276_v19  ;;  %v4332_v43 = vadd.f32 %v4331_v21, %v4330_v14 }
 0x4a9   :  { %v4363_v26 = vmul.f32 0.125, %v4326_v36  ;;  %v4370_v48 = vmul.f32 %v7115_v22, %v7115_v22  ;;  %v7124_v51 = vmul.f32 0.125, %v4288_v38  ;;  %v4344_v46 = vadd.f32 %v4343_v25, %v4342_v13 }
 0x4aa   :  { %v4365_v59 = vmul.f32 0.125, %v4338_v41  ;;  %v4372_v4 = vmul.f32 %v7118_v28, %v7118_v28  ;;  %v4364_v55 = vmul.f32 0.125, %v4332_v43  ;;  %v4371_v52 = vmul.f32 %v7120_v47, %v7120_v47 }
 0x4ab   :  { %v4377_v60 = vsub.f32 %v4363_v26, %v4370_v48  ;;  %v4366_v34 = vmul.f32 0.125, %v4344_v46  ;;  %v4373_v58 = vmul.f32 %v7124_v51, %v7124_v51 }
 0x4ac   :  { %v4379_v1 = vsub.f32 %v4365_v59, %v4372_v4  ;;  %v4378_v20 = vsub.f32 %v4364_v55, %v4371_v52 }
 0x4ad   :  { %v4384_v57 = vmax.f32 %v4377_v60, 0.0  ;;  %v4380_v18 = vsub.f32 %v4366_v34, %v4373_v58 }
 0x4ae   :  { %v4386_v17 = vmax.f32 %v4379_v1, 0.0  ;;  %v4385_v53 = vmax.f32 %v4378_v20, 0.0 }
 0x4af   :  { %v4393_v63 = vadd.f32 1e-05, %v4384_v57  ;;  %v4387_v54 = vmax.f32 %v4380_v18, 0.0 }
 0x4b0   :  { %v4395_v56 = vadd.f32 1e-05, %v4386_v17  ;;  %v4394_v3 = vadd.f32 1e-05, %v4385_v53 }
 0x4b1   :  { %6613 = vrsqrt.f32 %v4393_v63  ;;  %v4396_v62 = vadd.f32 1e-05, %v4387_v54 }
 0x4b2   :  { %6615 = vrsqrt.f32 %v4395_v56 }
 0x4b3   :  { %6617 = vrsqrt.f32 %v4394_v3 }
 0x4b4   :  { %6619 = vrsqrt.f32 %v4396_v62 }
 0x4bb   :  { %v6614_v5 = vpop.eup %6613  ;;  %v4808_v8 = vpop.f32.mrb[6].mxu0 }
 0x4bc   :  { %v6616_v6 = vpop.eup %6615  ;;  %v4809_v50 = vpop.f32.mrb[7].mxu0 }
 0x4bd   :  { %v6618_v0 = vpop.eup %6617  ;;  %v4810_v2 = vadd.f32 %v4809_v50, %v4808_v8 }
 0x4be   :  { %v6620_v40 = vpop.eup %6619  ;;  %v4414_v42 = vcombine.low %v6614_v5, %v6618_v0 }
 0x4bf   :  { %v4415_v7 = vcombine.low %v6616_v6, %v6620_v40 }
 0x4c0   :  { %v7133_v24 = vrot.slane %v4414_v42, %v6930_v30 }
 0x4c1   :  { %v7136_v9 = vrot.slane %v4415_v7, %v6930_v30 }
 0x4c3   :  { %v4445_v10 = vcombine.low %v7133_v24, %v7136_v9 }
 0x4db   :  { %v4843_v11 = vpop.f32.mrb[8].mxu0 }
 0x4dc   :  { %v4844_v14 = vpop.f32.mrb[9].mxu0 }
 0x4dd   :  { %v4845_v12 = vadd.f32 %v4844_v14, %v4843_v11 }
 0x4df   :  { %v4122_v49 = vadd.f32 %v4845_v12, %v4810_v2 }
 0x4fb   :  { %v4878_v15 = vpop.f32.mrb[10].mxu0 }
 0x4fc   :  { %v4879_v13 = vpop.f32.mrb[11].mxu0 }
 0x4fd   :  { %v4880_v16 = vadd.f32 %v4879_v13, %v4878_v15 }
 0x4ff   :  { %v4192_v61 = vadd.f32 %v4880_v16, %v4122_v49 }
 0x51b   :  { %v4261_v19 = vpop.f32.mrb[12].mxu0 }
 0x51c   :  { %v7140_v21 = vadd.f32 %v4261_v19, %v4192_v61  ;;  %v4967_v36 = vpop.f32.mrb[13].mxu0 }
 0x51e   :  { %v4301_v38 = vrot.slane %v7140_v21, 4  ;;  %v4320_v25 = vmul.f32 %v7140_v21, %v7140_v21 }
 0x520   :  { %v4302_v41 = vadd.f32 %v4301_v38, %v7140_v21  ;;  %v4357_v43 = vrot.slane %v4320_v25, 4 }
 0x522   :  { %v4303_v26 = vrot.slane %v4302_v41, 2  ;;  %v4358_v48 = vadd.f32 %v4357_v43, %v4320_v25 }
 0x524   :  { %v4304_v46 = vadd.f32 %v4303_v26, %v4302_v41  ;;  %v4359_v59 = vrot.slane %v4358_v48, 2 }
 0x526   :  { %v4305_v4 = vrot.slane %v4304_v46, 1  ;;  %v4360_v55 = vadd.f32 %v4359_v59, %v4358_v48 }
 0x528   :  { %v4306_v52 = vadd.f32 %v4305_v4, %v4304_v46  ;;  %v4361_v60 = vrot.slane %v4360_v55, 1 }
 0x52a   :  { %v7153_v57 = vmul.f32 0.125, %v4306_v52  ;;  %v4362_v18 = vadd.f32 %v4361_v60, %v4360_v55 }
 0x52c   :  { %v4369_v8 = vmul.f32 0.125, %v4362_v18  ;;  %v4376_v6 = vmul.f32 %v7153_v57, %v7153_v57 }
 0x52e   :  { %v4383_v12 = vsub.f32 %v4369_v8, %v4376_v6  ;;  %v4392_v6 = vld [vmem:[#allocation8 + $0x2] ss:$4 sm:$0xff] }
 0x530   :  { %v4390_v25 = vmax.f32 %v4383_v12, 0.0 }
 0x532   :  { %v4399_v55 = vadd.f32 1e-05, %v4390_v25 }
 0x534   :  { %6621 = vrsqrt.f32 %v4399_v55 }
 0x57a   :  { %v7146_v34 = vpop.f32.mrb[12].mxu1 }
 0x57b   :  { %v4289_v58 = vrot.slane %v7146_v34, 4  ;;  %v4318_v1 = vmul.f32 %v7146_v34, %v7146_v34  ;;  %v7151_v20 = vpop.f32.mrb[13].mxu1 }
 0x57c   :  { %v4295_v17 = vrot.slane %v7151_v20, 4  ;;  %v4319_v53 = vmul.f32 %v7151_v20, %v7151_v20 }
 0x57d   :  { %v4290_v63 = vadd.f32 %v4289_v58, %v7146_v34  ;;  %v4345_v54 = vrot.slane %v4318_v1, 4 }
 0x57e   :  { %v4296_v56 = vadd.f32 %v4295_v17, %v7151_v20  ;;  %v4351_v3 = vrot.slane %v4319_v53, 4  ;;  %v6622_v17 = vpop.eup %6621 }
 0x57f   :  { %v4291_v62 = vrot.slane %v4290_v63, 2  ;;  %v4346_v5 = vadd.f32 %v4345_v54, %v4318_v1 }
 0x580   :  { %v4297_v50 = vrot.slane %v4296_v56, 2  ;;  %v4352_v0 = vadd.f32 %v4351_v3, %v4319_v53 }
 0x581   :  { %v4292_v2 = vadd.f32 %v4291_v62, %v4290_v63  ;;  %v4347_v40 = vrot.slane %v4346_v5, 2 }
 0x582   :  { %v4298_v42 = vadd.f32 %v4297_v50, %v4296_v56  ;;  %v4353_v7 = vrot.slane %v4352_v0, 2  ;;  %v4444_v56 = vrot.slane %v6622_v17, %v6930_v30 }
 0x583   :  { %v4293_v11 = vrot.slane %v4292_v2, 1  ;;  %v4348_v14 = vadd.f32 %v4347_v40, %v4346_v5  ;;  %v4453_v5 = vrot.slane %v4445_v10, %v6930_v30 }
 0x584   :  { %v4299_v49 = vrot.slane %v4298_v42, 1  ;;  %v4354_v15 = vadd.f32 %v4353_v7, %v4352_v0 }
 0x585   :  { %v4294_v13 = vadd.f32 %v4293_v11, %v4292_v2  ;;  %v4349_v16 = vrot.slane %v4348_v14, 1 }
 0x586   :  { %v4300_v61 = vadd.f32 %v4299_v49, %v4298_v42  ;;  %v4355_v19 = vrot.slane %v4354_v15, 1 }
 0x587   :  { %v4311_v36 = vmul.f32 0.125, %v4294_v13  ;;  %v4350_v38 = vadd.f32 %v4349_v16, %v4348_v14 }
 0x588   :  { %v4312_v41 = vmul.f32 0.125, %v4300_v61  ;;  %v4356_v43 = vadd.f32 %v4355_v19, %v4354_v15 }
 0x589   :  { %v4367_v26 = vmul.f32 0.125, %v4350_v38  ;;  %v4374_v48 = vmul.f32 %v4311_v36, %v4311_v36 }
 0x58a   :  { %v4368_v46 = vmul.f32 0.125, %v4356_v43  ;;  %v4375_v59 = vmul.f32 %v4312_v41, %v4312_v41 }
 0x58b   :  { %v4381_v4 = vsub.f32 %v4367_v26, %v4374_v48 }
 0x58c   :  { %v4382_v52 = vsub.f32 %v4368_v46, %v4375_v59  ;;  %v4465_v46 = vld [vmem:[#allocation8 + $0x3] ss:$4 sm:$0xff] }
 0x58d   :  { %v4388_v60 = vmax.f32 %v4381_v4, 0.0 }
 0x58e   :  { %v4389_v58 = vmax.f32 %v4382_v52, 0.0 }
 0x58f   :  { %v4397_v1 = vadd.f32 1e-05, %v4388_v60 }
 0x590   :  { %v4398_v18 = vadd.f32 1e-05, %v4389_v58 }
 0x591   :  { %6623 = vrsqrt.f32 %v4397_v1 }
 0x592   :  { %6625 = vrsqrt.f32 %v4398_v18 }
 0x59b   :  { %v6624_v53 = vpop.eup %6623 }
 0x59c   :  { %v6626_v63 = vpop.eup %6625 }
 0x59d   :  { %v4416_v54 = vcombine.low %v6624_v53, %v6626_v63 }
 0x59f   :  { %v4437_v3 = vrot.slane %v4416_v54, %v6930_v30 }
 0x5a1   :  { %v4446_v62 = vcombine.low %v4437_v3, %v4444_v56 }
 0x5a3   :  { %v4460_v8 = vrot.slane %v4446_v62, %v6930_v30  ;;  %v6634_v62 = vld [vmem:[#allocation2 + $0x20] sm:$0xff] }
 0x5a5   :  { %v4461_v50 = vcombine.low %v4453_v5, %v4460_v8  ;;  %v6635_v5 = vld [vmem:[#allocation2 + $0x28] sm:$0xff]  ;;  %v6636_v8 = vld [vmem:[#allocation2] sm:$0xff] }
 0x5a7   :  { %v4463_v0 = vmul.f32 %v4461_v50, %v4392_v6  ;;  %v6637_v50 = vld [vmem:[#allocation2 + $0x30] sm:$0xff] }
 0x5a9   :  { %v4470_v2 = vrot.slane %v4463_v0, %v6973_v27  ;;  %v4474_v40 = vrot.slane %v4463_v0, %v6976_v29  ;;  %v4478_v42 = vrot.slane %v4463_v0, %v6979_v31  ;;  %v4482_v7 = vrot.slane %v4463_v0, %v6982_v32 }
 0x5aa   :  { %v4486_v11 = vrot.slane %v4463_v0, %v6985_v33  ;;  %v4490_v14 = vrot.slane %v4463_v0, %v6988_v37  ;;  %v4494_v24 = vrot.slane %v4463_v0, %v6991_v45 }
 0x5ab   :  { %v4502_v9 = vmul.f32 %v4470_v2, %v7115_v22  ;;  %v4503_v10 = vmul.f32 %v4474_v40, %v7120_v47  ;;  %v4504_v12 = vmul.f32 %v4478_v42, %v7118_v28  ;;  %v4505_v49 = vmul.f32 %v4482_v7, %v7124_v51 }
 0x5ac   :  { %v4506_v15 = vmul.f32 %v4486_v11, %v4311_v36  ;;  %v4507_v13 = vmul.f32 %v4490_v14, %v4312_v41  ;;  %v4508_v16 = vmul.f32 %v4494_v24, %v7153_v57  ;;  %v4570_v61 = vmul.f32 %v4486_v11, %v7146_v34  ;;  %v6640_v11 = vld [vmem:[#allocation2 + $0x18] sm:$0xff] }
 0x5ad   :  { %v4516_v19 = vcombine.low %v4502_v9, %v4503_v10  ;;  %v4517_v38 = vcombine.low %v4504_v12, %v4505_v49  ;;  %v4571_v25 = vmul.f32 %v4490_v14, %v7151_v20  ;;  %v4572_v43 = vmul.f32 %v4494_v24, %v7140_v21 }
 0x5ae   :  { %v4518_v26 = vcombine.low %v4506_v15, %v4507_v13  ;;  %v4566_v22 = vmul.f32 %v4470_v2, %v7091_v23  ;;  %v4567_v47 = vmul.f32 %v4474_v40, %v7098_v35  ;;  %v4568_v36 = vmul.f32 %v4478_v42, %v7096_v39  ;;  %v6638_v2 = vld [vmem:[#allocation2 + $0x8] sm:$0xff]  ;;  %v6639_v42 = vld [vmem:[#allocation2 + $0x10] sm:$0xff] }
 0x5af   :  { %v4525_v28 = vrot.slane %v4516_v19, %v6930_v30  ;;  %v4532_v51 = vrot.slane %v4517_v38, %v6930_v30  ;;  %v4569_v57 = vmul.f32 %v4482_v7, %v7106_v44  ;;  %v4546_v41 = vrot.slane %v4508_v16, %v6930_v30 }
 0x5b0   :  { %v4539_v34 = vrot.slane %v4518_v26, %v6930_v30 }
 0x5b1   :  { %v4547_v20 = vcombine.low %v4525_v28, %v4532_v51 }
 0x5b2   :  { %v4548_v48 = vcombine.low %v4539_v34, %v4546_v41 }
 0x5b3   :  { %v4555_v21 = vrot.slane %v4547_v20, %v6930_v30 }
 0x5b4   :  { %v4562_v23 = vrot.slane %v4548_v48, %v6930_v30 }
 0x5b6   :  { %v4563_v35 = vcombine.low %v4555_v21, %v4562_v23 }
 0x5b8   :  { %v4565_v59 = vsub.f32 %v4465_v46, %v4563_v35 }
 0x5ba   :  { %v4593_v4 = vrot.slane %v4565_v59, %v6985_v33  ;;  %v4597_v55 = vrot.slane %v4565_v59, %v6988_v37  ;;  %v4601_v39 = vrot.slane %v4565_v59, %v6991_v45  ;;  %v4577_v44 = vrot.slane %v4565_v59, %v6973_v27 }
 0x5bb   :  { %v4581_v52 = vrot.slane %v4565_v59, %v6976_v29  ;;  %v4585_v60 = vrot.slane %v4565_v59, %v6979_v31  ;;  %v4589_v58 = vrot.slane %v4565_v59, %v6982_v32 }
 0x5bc   :  { %v4613_v1 = vadd.f32 %v4593_v4, %v4570_v61  ;;  %v4614_v18 = vadd.f32 %v4597_v55, %v4571_v25  ;;  %v4615_v30 = vadd.f32 %v4601_v39, %v4572_v43  ;;  %v4609_v17 = vadd.f32 %v4577_v44, %v4566_v22 }
 0x5bd   :  { %v4610_v53 = vadd.f32 %v4581_v52, %v4567_v47  ;;  %v4611_v63 = vadd.f32 %v4585_v60, %v4568_v36  ;;  %v4612_v54 = vadd.f32 %v4589_v58, %v4569_v57 }
 0x5be   :  { %v4620_v33 = vmax.f32 %v4613_v1, 0.0  ;;  %v4621_v56 = vmax.f32 %v4614_v18, 0.0  ;;  %v4616_v37 = vmax.f32 %v4609_v17, 0.0  ;;  %v4622_v3 = vmax.f32 %v4615_v30, 0.0 }
 0x5bf   :  { %v4617_v27 = vmax.f32 %v4610_v53, 0.0  ;;  %v4618_v45 = vmax.f32 %v4611_v63, 0.0  ;;  %v4619_v29 = vmax.f32 %v4612_v54, 0.0 }
 0x5c0   :  { %v4627_v31 = vadd.f32 %v6634_v62, %v4620_v33  ;;  %v4628_v32 = vadd.f32 %v6635_v5, %v4621_v56  ;;  %v4623_v6 = vadd.f32 %v6636_v8, %v4616_v37  ;;  %v4629_v0 = vadd.f32 %v6637_v50, %v4622_v3 }
 0x5c1   :  { %v4624_v40 = vadd.f32 %v6638_v2, %v4617_v27  ;;  %v4625_v7 = vadd.f32 %v6639_v42, %v4618_v45  ;;  %v4626_v14 = vadd.f32 %v6640_v11, %v4619_v29 }
 0x5c2   :  { %4635 = vst [vmem:[#allocation10 + $0x28] sm:$0xff] %v4628_v32  ;;  %4634 = vst [vmem:[#allocation10 + $0x20] sm:$0xff] %v4627_v31 }
 0x5c3   :  { %4630 = vst [vmem:[#allocation10] sm:$0xff] %v4623_v6  ;;  %4636 = vst [vmem:[#allocation10 + $0x30] sm:$0xff] %v4629_v0 }
 0x5c4   :  { %4631 = vst [vmem:[#allocation10 + $0x8] sm:$0xff] %v4624_v40  ;;  %4632 = vst [vmem:[#allocation10 + $0x10] sm:$0xff] %v4625_v7 }
 0x5c5   :  { %4633 = vst [vmem:[#allocation10 + $0x18] sm:$0xff] %v4626_v14 }
 0x5c6   :  { %6740 = shalt.err (!%p6737_p8)
}
 0x5c7   :  { %s6741_s1 = scalar_lea.hbm %s7217_s4, 896 }
 0x5c8   :  { %p6742_p9 = scmp.ne.s32.totalorder %s7217_s4, %s6741_s1  ;;  %p6745_p10 = scmp.lt.u32.totalorder %s6741_s1, %s7217_s4 }
 0x5ca   :  { %p6747_p11 = pnand %p6745_p10, %p6742_p9 }
 0x5cc   :  { %6750 = shalt.err (!%p6747_p11)
}
 0x5cd   :  { %4646 = dma.vmem_to_hbm [thread:$0]  %s4644_s26, 896, %s7217_s4, [#allocation4]  }
 0x5ce   :  { %6757 = dma.done.wait [#allocation4], 896  }
 0x5cf   :  { %6758 = vsyncadd [#allocation4], 4294966400 }
 0x5d0   :  { %4650 = vsyncpa [#allocation3], 1 }
 0x5d1   :  { %4651 = vsyncpa [#allocation6], 1 }
 0x5d2   :  { %4652 = vsyncpa [#allocation9], 1 }
 0x5d3   :  { %4653 = vsyncpa [#allocation4], 1 }

</bundles_post_ra>
